<compile_context>
chip_gen: v6e
topology: v6e:2x2x1
jax: 0.10.0
libtpu: 0.0.40
codegen_flags: <defaults>
</compile_context>

<pallas_src>
import math

import jax
import jax.numpy as jnp
from jax import lax
from jax.experimental import pallas as pl
from jax.experimental.pallas import tpu as pltpu

K = 5                           # conv / deconv kernel size (fixed by the module)
VMEM_LIMIT = 32 * 1024 * 1024   # explicit scoped-VMEM budget (safe on v5e/v6e/v7x)


def _relu(v):
    return jnp.maximum(v, 0.0)


# ------------------------------- fused kernel ------------------------------- #

def _rnet_kernel(x_ref, w2_ref, b2_ref, wd2_ref, bd2_ref, wd1_ref, bd1_ref,
                 o_ref,
                 pool_ref, mask_ref, h1p_ref, h2_ref, h3p_ref):
    """Whole RNet forward for one batch element, entirely in VMEM.

    x_ref    : (1, H, W, 20)        NHWC input block
    w*_ref   : (25, Cin, Cout)      per-tap weight matrices, b*: (1, Cout)
    o_ref    : (1, H+4, W+4, 1)     output block
    pool_ref : (H/2, W/2, 20)       pooled activations
    mask_ref : (H, W, 20)           0/1 unpool scatter masks (first-wins argmax)
    h1p_ref  : (H/2+4, W/2+4, 50)   conv2 output, zero-padded for deconv2
    h2_ref   : (H/2, W/2, 20)       deconv2 output
    h3p_ref  : (H+8, W+8, 20)       unpooled output, zero-padded for deconv1
    """
    f32 = jnp.float32
    _, H, W, _ = x_ref.shape
    Hp, Wp = H // 2, W // 2

    # Padded buffers must have zero borders (they provide the conv padding).
    h1p_ref[...] = jnp.zeros_like(h1p_ref)
    h3p_ref[...] = jnp.zeros_like(h3p_ref)

    # Constant (exact 0/1) even/odd column selection / replication matrices.
    c_i = lax.broadcasted_iota(jnp.int32, (Wp, W), 1)
    r2_i = 2 * lax.broadcasted_iota(jnp.int32, (Wp, W), 0)
    sel_even = (c_i == r2_i).astype(f32)            # (Wp, W): picks even cols
    sel_odd = (c_i == r2_i + 1).astype(f32)         # (Wp, W): picks odd cols
    xr_i = lax.broadcasted_iota(jnp.int32, (W, Wp), 0)
    xc_i = lax.broadcasted_iota(jnp.int32, (W, Wp), 1)
    put_even = (xr_i == 2 * xc_i).astype(f32)       # (W, Wp): scatter to even cols
    put_odd = (xr_i == 2 * xc_i + 1).astype(f32)    # (W, Wp): scatter to odd cols
    repl = put_even + put_odd                       # (W, Wp): replicate p[x//2]

    def _dot(a, b):
        return jnp.dot(a, b, preferred_element_type=f32)

    # ---- 1) MaxPool2d(2, return_indices=True): pooled values + scatter mask.
    def pool_body(yp, carry):
        r0 = x_ref[0, 2 * yp, :, :]                 # (W, 20)
        r1 = x_ref[0, 2 * yp + 1, :, :]
        a = _dot(sel_even, r0)                      # window (0, 0)
        b = _dot(sel_odd, r0)                       # window (0, 1)
        c = _dot(sel_even, r1)                      # window (1, 0)
        d = _dot(sel_odd, r1)                       # window (1, 1)
        m = jnp.maximum(jnp.maximum(a, b), jnp.maximum(c, d))
        pool_ref[yp, :, :] = m
        e0 = a == m                                 # first-wins argmax
        e1 = (b == m) & jnp.logical_not(e0)
        e2 = (c == m) & jnp.logical_not(e0 | e1)
        e3 = jnp.logical_not(e0 | e1 | e2)
        m0, m1, m2, m3 = (e.astype(f32) for e in (e0, e1, e2, e3))
        mask_ref[2 * yp, :, :] = _dot(put_even, m0) + _dot(put_odd, m1)
        mask_ref[2 * yp + 1, :, :] = _dot(put_even, m2) + _dot(put_odd, m3)
        return carry

    lax.fori_loop(0, Hp, pool_body, 0)

    # ---- shared 5x5 stride-1 "valid" conv: 25 in-kernel taps, row by row.
    def conv_layer(in_ref, w_ref, b_ref, act_fn, write_fn):
        hin, win, _ = in_ref.shape
        cout = w_ref.shape[2]
        ho, wo = hin - K + 1, win - K + 1
        bias = b_ref[...]                           # (1, cout)

        def row_body(y, carry):
            acc = jnp.zeros((wo, cout), f32)
            for t in range(K * K):
                ky, kx = divmod(t, K)
                lhs = in_ref[y + ky, kx:kx + wo, :]          # (wo, cin)
                acc = acc + _dot(lhs, w_ref[t])              # (wo, cout)
            write_fn(y, act_fn(acc + bias))
            return carry

        lax.fori_loop(0, ho, row_body, 0)

    # ---- 2) conv2 + ReLU, written into deconv2's zero-padded input buffer.
    def write_h1(y, val):                           # val: (Wp-4, 50)
        h1p_ref[K - 1 + y, K - 1:K - 1 + val.shape[0], :] = val

    conv_layer(pool_ref, w2_ref, b2_ref, _relu, write_h1)

    # ---- 3) deconv2 (= conv with pre-flipped weights on padded input) + ReLU.
    def write_h2(y, val):                           # val: (Wp, 20)
        h2_ref[y, :, :] = val

    conv_layer(h1p_ref, wd2_ref, bd2_ref, _relu, write_h2)

    # ---- 4) MaxUnpool2d(2): scatter h2 to each window's argmax position,
    #         written into deconv1's zero-padded input buffer.
    def unpool_body(yp, carry):
        up = _dot(repl, h2_ref[yp, :, :])           # (W, 20), column-replicated
        y0 = 2 * yp
        h3p_ref[K - 1 + y0, K - 1:K - 1 + W, :] = up * mask_ref[y0, :, :]
        h3p_ref[K - 1 + y0 + 1, K - 1:K - 1 + W, :] = up * mask_ref[y0 + 1, :, :]
        return carry

    lax.fori_loop(0, Hp, unpool_body, 0)

    # ---- 5) deconv1 + sigmoid -> single output channel (lanes padded to 8).
    def write_out(y, val):                          # val: (W+4, 8); channel 0 valid
        o_ref[0, y, :, :] = val[:, 0:1]

    conv_layer(h3p_ref, wd1_ref, bd1_ref, jax.nn.sigmoid, write_out)


# --------------------------------- forward ---------------------------------- #

def rnet_forward(x_nchw, prep):
    """x_nchw: (N, 20, H, W) -> (N, 1, H+4, W+4); matches RNet.forward."""
    n, c0, h, w = x_nchw.shape
    x = x_nchw.transpose(0, 2, 3, 1)                # tiny one-off NHWC relayout
    hp, wp = h // 2, w // 2
    ho, wo = h + K - 1, w + K - 1                   # = H+4, W+4
    c1 = prep["w2"].shape[2]                        # 50

    out = pl.pallas_call(
        _rnet_kernel,
        out_shape=jax.ShapeDtypeStruct((n, ho, wo, 1), jnp.float32),
        grid=(n,),
        in_specs=[
            pl.BlockSpec((1, h, w, c0), lambda b: (b, 0, 0, 0)),
            pl.BlockSpec(prep["w2"].shape, lambda b: (0, 0, 0)),
            pl.BlockSpec(prep["b2"].shape, lambda b: (0, 0)),
            pl.BlockSpec(prep["wd2"].shape, lambda b: (0, 0, 0)),
            pl.BlockSpec(prep["bd2"].shape, lambda b: (0, 0)),
            pl.BlockSpec(prep["wd1"].shape, lambda b: (0, 0, 0)),
            pl.BlockSpec(prep["bd1"].shape, lambda b: (0, 0)),
        ],
        out_specs=pl.BlockSpec((1, ho, wo, 1), lambda b: (b, 0, 0, 0)),
        scratch_shapes=[
            pltpu.VMEM((hp, wp, c0), jnp.float32),                       # pooled
            pltpu.VMEM((h, w, c0), jnp.float32),                         # unpool masks
            pltpu.VMEM((hp + K - 1, wp + K - 1, c1), jnp.float32),       # padded h1
            pltpu.VMEM((hp, wp, c0), jnp.float32),                       # h2
            pltpu.VMEM((h + 2 * (K - 1), w + 2 * (K - 1), c0), jnp.float32),  # padded h3
        ],
        compiler_params=pltpu.CompilerParams(
            dimension_semantics=("parallel",),       # both TCs on v7x
            vmem_limit_bytes=VMEM_LIMIT),
    )(x, prep["w2"], prep["b2"], prep["wd2"], prep["bd2"],
      prep["wd1"], prep["bd1"])

    # Channel dim is 1, so NHWC -> NCHW is a free reshape (no data movement).
    return out.reshape(n, 1, ho, wo)


# ------------------------------- parameters --------------------------------- #

def init_params(key):
    ks = jax.random.split(key, 6)

    def u(k, shape, fan_in):
        bound = 1.0 / math.sqrt(fan_in)
        return jax.random.uniform(k, shape, jnp.float32, -bound, bound)

    return {
        "conv2_w": u(ks[0], (50, 20, 5, 5), 20 * 25),    # nn.Conv2d(20, 50, 5)
        "conv2_b": u(ks[1], (50,), 20 * 25),
        "deconv2_w": u(ks[2], (50, 20, 5, 5), 50 * 25),  # nn.ConvTranspose2d(50, 20, 5)
        "deconv2_b": u(ks[3], (20,), 50 * 25),
        "deconv1_w": u(ks[4], (20, 1, 5, 5), 20 * 25),   # nn.ConvTranspose2d(20, 1, 5)
        "deconv1_b": u(ks[5], (1,), 20 * 25),
    }


def prepare_params(params):
    """One-time prep outside the jitted forward: per-tap (Cin, Cout) matmul
    weights (tap t = ky*K + kx); transposed-conv weights are spatially flipped
    with in/out channels swapped (equivalent 'valid' conv on a (K-1)-padded
    input).  deconv1's single output channel is lane-padded to 8."""
    w2 = params["conv2_w"].transpose(2, 3, 1, 0).reshape(K * K, 20, 50)
    wd2 = (params["deconv2_w"][:, :, ::-1, ::-1]
           .transpose(2, 3, 0, 1).reshape(K * K, 50, 20))
    wd1 = (params["deconv1_w"][:, :, ::-1, ::-1]
           .transpose(2, 3, 0, 1).reshape(K * K, 20, 1))
    wd1 = jnp.pad(wd1, ((0, 0), (0, 0), (0, 7)))
    return {
        "w2": w2.astype(jnp.float32),
        "b2": params["conv2_b"].reshape(1, 50).astype(jnp.float32),
        "wd2": wd2.astype(jnp.float32),
        "bd2": params["deconv2_b"].reshape(1, 20).astype(jnp.float32),
        "wd1": wd1.astype(jnp.float32),
        "bd1": jnp.pad(params["deconv1_b"], (0, 7)).reshape(1, 8).astype(jnp.float32),
    }


# --------------------------- pure-XLA reference ------------------------------ #

def rnet_reference(x_nchw, params):
    def conv(v, w_oihw, bias, pad):
        dn = lax.conv_dimension_numbers(v.shape, w_oihw.shape,
                                        ("NHWC", "OIHW", "NHWC"))
        return lax.conv_general_dilated(
            v, w_oihw, (1, 1), [(pad, pad), (pad, pad)],
            dimension_numbers=dn, precision=lax.Precision.HIGHEST) + bias

    x = x_nchw.transpose(0, 2, 3, 1)
    a = x[:, 0::2, 0::2, :]
    b = x[:, 0::2, 1::2, :]
    c = x[:, 1::2, 0::2, :]
    d = x[:, 1::2, 1::2, :]
    m = jnp.maximum(jnp.maximum(a, b), jnp.maximum(c, d))
    e0 = a == m
    e1 = (b == m) & ~e0
    e2 = (c == m) & ~(e0 | e1)
    e3 = ~(e0 | e1 | e2)

    h1 = jax.nn.relu(conv(m, params["conv2_w"], params["conv2_b"], 0))
    wd2 = params["deconv2_w"].transpose(1, 0, 2, 3)[:, :, ::-1, ::-1]
    h2 = jax.nn.relu(conv(h1, wd2, params["deconv2_b"], K - 1))

    n, hp, wp, cc = h2.shape
    z = [jnp.where(e, h2, 0.0) for e in (e0, e1, e2, e3)]
    top = jnp.stack([z[0], z[1]], axis=3).reshape(n, hp, 2 * wp, cc)
    bot = jnp.stack([z[2], z[3]], axis=3).reshape(n, hp, 2 * wp, cc)
    h3 = jnp.stack([top, bot], axis=2).reshape(n, 2 * hp, 2 * wp, cc)

    wd1 = params["deconv1_w"].transpose(1, 0, 2, 3)[:, :, ::-1, ::-1]
    h4 = jax.nn.sigmoid(conv(h3, wd1, params["deconv1_b"], K - 1))
    return h4.transpose(0, 3, 1, 2)


if __name__ == "__main__":
    key = jax.random.PRNGKey(0)
    pkey, xkey = jax.random.split(key)
    params = init_params(pkey)
    prep = prepare_params(params)        # one-time weight prep, outside forward

    # Input implied by the module: 20 channels, even spatial size >= 10.
    x = jax.random.normal(xkey, (2, 20, 16, 16), dtype=jnp.float32)

    out = jax.block_until_ready(jax.jit(rnet_forward)(x, prep))

    assert out.shape == (2, 1, 20, 20), out.shape
    assert bool(jnp.all((out >= 0.0) & (out <= 1.0)))        # sigmoid range

    ref = jax.block_until_ready(jax.jit(rnet_reference)(x, params))
    max_err = float(jnp.max(jnp.abs(out - ref)))
    assert max_err < 1e-4, max_err
    print("KERNEL_OK")
</pallas_src>

<mosaic_0001>
module attributes {stable_mosaic.version = 11 : i64} {
  func.func @_rnet_kernel(%arg0: i32, %arg1: memref<1x16x16x20xf32, #tpu.memory_space<vmem>>, %arg2: memref<25x20x50xf32, #tpu.memory_space<vmem>>, %arg3: memref<1x50xf32, #tpu.memory_space<vmem>>, %arg4: memref<25x50x20xf32, #tpu.memory_space<vmem>>, %arg5: memref<1x20xf32, #tpu.memory_space<vmem>>, %arg6: memref<25x20x8xf32, #tpu.memory_space<vmem>>, %arg7: memref<1x8xf32, #tpu.memory_space<vmem>>, %arg8: memref<1x20x20x1xf32, #tpu.memory_space<vmem>>, %arg9: memref<8x8x20xf32, #tpu.memory_space<vmem>>, %arg10: memref<16x16x20xf32, #tpu.memory_space<vmem>>, %arg11: memref<12x12x50xf32, #tpu.memory_space<vmem>>, %arg12: memref<8x8x20xf32, #tpu.memory_space<vmem>>, %arg13: memref<24x24x20xf32, #tpu.memory_space<vmem>>) attributes {dimension_semantics = [#tpu.dimension_semantics<parallel>], iteration_bounds = array<i64: 2>, scalar_prefetch = 0 : i64, scratch_operands = 5 : i64, tpu.core_type = #tpu.core_type<tc>, window_params = [{transform_indices = @transform_0, window_bounds = array<i64: 1, 16, 16, 20>}, {pipeline_mode = #tpu.pipeline_mode<synchronous>, transform_indices = @transform_1, window_bounds = array<i64: 25, 20, 50>}, {pipeline_mode = #tpu.pipeline_mode<synchronous>, transform_indices = @transform_2, window_bounds = array<i64: 1, 50>}, {pipeline_mode = #tpu.pipeline_mode<synchronous>, transform_indices = @transform_3, window_bounds = array<i64: 25, 50, 20>}, {pipeline_mode = #tpu.pipeline_mode<synchronous>, transform_indices = @transform_4, window_bounds = array<i64: 1, 20>}, {pipeline_mode = #tpu.pipeline_mode<synchronous>, transform_indices = @transform_5, window_bounds = array<i64: 25, 20, 8>}, {pipeline_mode = #tpu.pipeline_mode<synchronous>, transform_indices = @transform_6, window_bounds = array<i64: 1, 8>}, {transform_indices = @transform_7, window_bounds = array<i64: 1, 20, 20, 1>}]} {
    %cst = arith.constant 0.000000e+00 : f32
    %0 = vector.broadcast %cst : f32 to vector<12x12x50xf32>
    %c0 = arith.constant 0 : index
    %c0_0 = arith.constant 0 : index
    %c0_1 = arith.constant 0 : index
    %1 = vector.load %arg11[%c0, %c0_0, %c0_1] : memref<12x12x50xf32, #tpu.memory_space<vmem>>, vector<12x12x50xf32>
    tpu.vector_store %arg11[%c0, %c0_0, %c0_1], %0 {strides = array<i32>} : memref<12x12x50xf32, #tpu.memory_space<vmem>>, vector<12x12x50xf32>,
    %cst_2 = arith.constant 0.000000e+00 : f32
    %2 = vector.broadcast %cst_2 : f32 to vector<24x24x20xf32>
    %c0_3 = arith.constant 0 : index
    %c0_4 = arith.constant 0 : index
    %c0_5 = arith.constant 0 : index
    %3 = vector.load %arg13[%c0_3, %c0_4, %c0_5] : memref<24x24x20xf32, #tpu.memory_space<vmem>>, vector<24x24x20xf32>
    tpu.vector_store %arg13[%c0_3, %c0_4, %c0_5], %2 {strides = array<i32>} : memref<24x24x20xf32, #tpu.memory_space<vmem>>, vector<24x24x20xf32>,
    %4 = tpu.iota {dimensions = array<i32: 1>} : vector<8x16xi32>
    %5 = tpu.iota {dimensions = array<i32: 0>} : vector<8x16xi32>
    %c2_i32 = arith.constant 2 : i32
    %6 = vector.broadcast %c2_i32 : i32 to vector<8x16xi32>
    %7 = arith.muli %6, %5 : vector<8x16xi32>
    %8 = arith.cmpi eq, %4, %7 : vector<8x16xi32>
    %9 = arith.extui %8 : vector<8x16xi1> to vector<8x16xi32>
    %10 = arith.sitofp %9 : vector<8x16xi32> to vector<8x16xf32>
    %c1_i32 = arith.constant 1 : i32
    %11 = vector.broadcast %c1_i32 : i32 to vector<8x16xi32>
    %12 = arith.addi %7, %11 : vector<8x16xi32>
    %13 = arith.cmpi eq, %4, %12 : vector<8x16xi32>
    %14 = arith.extui %13 : vector<8x16xi1> to vector<8x16xi32>
    %15 = arith.sitofp %14 : vector<8x16xi32> to vector<8x16xf32>
    %16 = tpu.iota {dimensions = array<i32: 0>} : vector<16x8xi32>
    %17 = tpu.iota {dimensions = array<i32: 1>} : vector<16x8xi32>
    %c2_i32_6 = arith.constant 2 : i32
    %18 = vector.broadcast %c2_i32_6 : i32 to vector<16x8xi32>
    %19 = arith.muli %18, %17 : vector<16x8xi32>
    %20 = arith.cmpi eq, %16, %19 : vector<16x8xi32>
    %21 = arith.extui %20 : vector<16x8xi1> to vector<16x8xi32>
    %22 = arith.sitofp %21 : vector<16x8xi32> to vector<16x8xf32>
    %c2_i32_7 = arith.constant 2 : i32
    %23 = vector.broadcast %c2_i32_7 : i32 to vector<16x8xi32>
    %24 = arith.muli %23, %17 : vector<16x8xi32>
    %c1_i32_8 = arith.constant 1 : i32
    %25 = vector.broadcast %c1_i32_8 : i32 to vector<16x8xi32>
    %26 = arith.addi %24, %25 : vector<16x8xi32>
    %27 = arith.cmpi eq, %16, %26 : vector<16x8xi32>
    %28 = arith.extui %27 : vector<16x8xi1> to vector<16x8xi32>
    %29 = arith.sitofp %28 : vector<16x8xi32> to vector<16x8xf32>
    %30 = arith.addf %22, %29 : vector<16x8xf32>
    %c0_i32 = arith.constant 0 : i32
    %c8_i32 = arith.constant 8 : i32
    %31 = arith.addi %c0_i32, %c8_i32 : i32
    %c1_i32_9 = arith.constant 1 : i32
    scf.for %arg14 = %c0_i32 to %31 step %c1_i32_9  : i32 {
      %c2_i32_31 = arith.constant 2 : i32
      %39 = arith.muli %c2_i32_31, %arg14 : i32
      %c0_32 = arith.constant 0 : index
      %40 = arith.index_cast %39 : i32 to index
      %c0_33 = arith.constant 0 : index
      %c0_34 = arith.constant 0 : index
      %41 = vector.load %arg1[%c0_32, %40, %c0_33, %c0_34] : memref<1x16x16x20xf32, #tpu.memory_space<vmem>>, vector<1x1x16x20xf32>
      %42 = vector.shape_cast %41 : vector<1x1x16x20xf32> to vector<16x20xf32>
      %c2_i32_35 = arith.constant 2 : i32
      %43 = arith.muli %c2_i32_35, %arg14 : i32
      %c1_i32_36 = arith.constant 1 : i32
      %44 = arith.addi %43, %c1_i32_36 : i32
      %c0_37 = arith.constant 0 : index
      %45 = arith.index_cast %44 : i32 to index
      %c0_38 = arith.constant 0 : index
      %c0_39 = arith.constant 0 : index
      %46 = vector.load %arg1[%c0_37, %45, %c0_38, %c0_39] : memref<1x16x16x20xf32, #tpu.memory_space<vmem>>, vector<1x1x16x20xf32>
      %47 = vector.shape_cast %46 : vector<1x1x16x20xf32> to vector<16x20xf32>
      %cst_40 = arith.constant dense<0.000000e+00> : vector<8x20xf32>
      %48 = tpu.matmul %10, %42, %cst_40 {dimension_numbers = #tpu.dot_dimension_numbers<[1], [0], [0], [1], [0, 0, 1, 1], [], []>} : vector<8x16xf32>, vector<16x20xf32>, vector<8x20xf32> -> vector<8x20xf32>
      %cst_41 = arith.constant dense<0.000000e+00> : vector<8x20xf32>
      %49 = tpu.matmul %15, %42, %cst_41 {dimension_numbers = #tpu.dot_dimension_numbers<[1], [0], [0], [1], [0, 0, 1, 1], [], []>} : vector<8x16xf32>, vector<16x20xf32>, vector<8x20xf32> -> vector<8x20xf32>
      %cst_42 = arith.constant dense<0.000000e+00> : vector<8x20xf32>
      %50 = tpu.matmul %10, %47, %cst_42 {dimension_numbers = #tpu.dot_dimension_numbers<[1], [0], [0], [1], [0, 0, 1, 1], [], []>} : vector<8x16xf32>, vector<16x20xf32>, vector<8x20xf32> -> vector<8x20xf32>
      %cst_43 = arith.constant dense<0.000000e+00> : vector<8x20xf32>
      %51 = tpu.matmul %15, %47, %cst_43 {dimension_numbers = #tpu.dot_dimension_numbers<[1], [0], [0], [1], [0, 0, 1, 1], [], []>} : vector<8x16xf32>, vector<16x20xf32>, vector<8x20xf32> -> vector<8x20xf32>
      %52 = arith.maximumf %48, %49 : vector<8x20xf32>
      %53 = arith.maximumf %50, %51 : vector<8x20xf32>
      %54 = arith.maximumf %52, %53 : vector<8x20xf32>
      %55 = arith.index_cast %arg14 : i32 to index
      %c0_44 = arith.constant 0 : index
      %c0_45 = arith.constant 0 : index
      %56 = vector.load %arg9[%55, %c0_44, %c0_45] : memref<8x8x20xf32, #tpu.memory_space<vmem>>, vector<1x8x20xf32>
      %57 = vector.shape_cast %56 : vector<1x8x20xf32> to vector<8x20xf32>
      %58 = vector.shape_cast %54 : vector<8x20xf32> to vector<1x8x20xf32>
      tpu.vector_store %arg9[%55, %c0_44, %c0_45], %58 {strides = array<i32>} : memref<8x8x20xf32, #tpu.memory_space<vmem>>, vector<1x8x20xf32>,
      %59 = arith.cmpf oeq, %48, %54 : vector<8x20xf32>
      %60 = arith.cmpf oeq, %49, %54 : vector<8x20xf32>
      %cst_46 = arith.constant dense<true> : vector<8x20xi1>
      %61 = arith.xori %59, %cst_46 : vector<8x20xi1>
      %62 = arith.andi %60, %61 : vector<8x20xi1>
      %63 = arith.cmpf oeq, %50, %54 : vector<8x20xf32>
      %64 = arith.ori %59, %62 : vector<8x20xi1>
      %cst_47 = arith.constant dense<true> : vector<8x20xi1>
      %65 = arith.xori %64, %cst_47 : vector<8x20xi1>
      %66 = arith.andi %63, %65 : vector<8x20xi1>
      %67 = arith.ori %59, %62 : vector<8x20xi1>
      %68 = arith.ori %67, %66 : vector<8x20xi1>
      %cst_48 = arith.constant dense<true> : vector<8x20xi1>
      %69 = arith.xori %68, %cst_48 : vector<8x20xi1>
      %70 = arith.extui %59 : vector<8x20xi1> to vector<8x20xi32>
      %71 = arith.sitofp %70 : vector<8x20xi32> to vector<8x20xf32>
      %72 = arith.extui %62 : vector<8x20xi1> to vector<8x20xi32>
      %73 = arith.sitofp %72 : vector<8x20xi32> to vector<8x20xf32>
      %74 = arith.extui %66 : vector<8x20xi1> to vector<8x20xi32>
      %75 = arith.sitofp %74 : vector<8x20xi32> to vector<8x20xf32>
      %76 = arith.extui %69 : vector<8x20xi1> to vector<8x20xi32>
      %77 = arith.sitofp %76 : vector<8x20xi32> to vector<8x20xf32>
      %cst_49 = arith.constant dense<0.000000e+00> : vector<16x20xf32>
      %78 = tpu.matmul %22, %71, %cst_49 {dimension_numbers = #tpu.dot_dimension_numbers<[1], [0], [0], [1], [0, 0, 1, 1], [], []>} : vector<16x8xf32>, vector<8x20xf32>, vector<16x20xf32> -> vector<16x20xf32>
      %cst_50 = arith.constant dense<0.000000e+00> : vector<16x20xf32>
      %79 = tpu.matmul %29, %73, %cst_50 {dimension_numbers = #tpu.dot_dimension_numbers<[1], [0], [0], [1], [0, 0, 1, 1], [], []>} : vector<16x8xf32>, vector<8x20xf32>, vector<16x20xf32> -> vector<16x20xf32>
      %80 = arith.addf %78, %79 : vector<16x20xf32>
      %c2_i32_51 = arith.constant 2 : i32
      %81 = arith.muli %c2_i32_51, %arg14 : i32
      %82 = arith.index_cast %81 : i32 to index
      %c0_52 = arith.constant 0 : index
      %c0_53 = arith.constant 0 : index
      %83 = vector.load %arg10[%82, %c0_52, %c0_53] : memref<16x16x20xf32, #tpu.memory_space<vmem>>, vector<1x16x20xf32>
      %84 = vector.shape_cast %83 : vector<1x16x20xf32> to vector<16x20xf32>
      %85 = vector.shape_cast %80 : vector<16x20xf32> to vector<1x16x20xf32>
      tpu.vector_store %arg10[%82, %c0_52, %c0_53], %85 {strides = array<i32>} : memref<16x16x20xf32, #tpu.memory_space<vmem>>, vector<1x16x20xf32>,
      %cst_54 = arith.constant dense<0.000000e+00> : vector<16x20xf32>
      %86 = tpu.matmul %22, %75, %cst_54 {dimension_numbers = #tpu.dot_dimension_numbers<[1], [0], [0], [1], [0, 0, 1, 1], [], []>} : vector<16x8xf32>, vector<8x20xf32>, vector<16x20xf32> -> vector<16x20xf32>
      %cst_55 = arith.constant dense<0.000000e+00> : vector<16x20xf32>
      %87 = tpu.matmul %29, %77, %cst_55 {dimension_numbers = #tpu.dot_dimension_numbers<[1], [0], [0], [1], [0, 0, 1, 1], [], []>} : vector<16x8xf32>, vector<8x20xf32>, vector<16x20xf32> -> vector<16x20xf32>
      %88 = arith.addf %86, %87 : vector<16x20xf32>
      %c2_i32_56 = arith.constant 2 : i32
      %89 = arith.muli %c2_i32_56, %arg14 : i32
      %c1_i32_57 = arith.constant 1 : i32
      %90 = arith.addi %89, %c1_i32_57 : i32
      %91 = arith.index_cast %90 : i32 to index
      %c0_58 = arith.constant 0 : index
      %c0_59 = arith.constant 0 : index
      %92 = vector.load %arg10[%91, %c0_58, %c0_59] : memref<16x16x20xf32, #tpu.memory_space<vmem>>, vector<1x16x20xf32>
      %93 = vector.shape_cast %92 : vector<1x16x20xf32> to vector<16x20xf32>
      %94 = vector.shape_cast %88 : vector<16x20xf32> to vector<1x16x20xf32>
      tpu.vector_store %arg10[%91, %c0_58, %c0_59], %94 {strides = array<i32>} : memref<16x16x20xf32, #tpu.memory_space<vmem>>, vector<1x16x20xf32>,
    }
    %c8_i32_10 = arith.constant 8 : i32
    %c0_11 = arith.constant 0 : index
    %c0_12 = arith.constant 0 : index
    %32 = vector.load %arg3[%c0_11, %c0_12] : memref<1x50xf32, #tpu.memory_space<vmem>>, vector<1x50xf32>
    %c0_i32_13 = arith.constant 0 : i32
    %c4_i32 = arith.constant 4 : i32
    %33 = arith.addi %c0_i32_13, %c4_i32 : i32
    %c1_i32_14 = arith.constant 1 : i32
    scf.for %arg14 = %c0_i32_13 to %33 step %c1_i32_14  : i32 {
      %cst_31 = arith.constant 0.000000e+00 : f32
      %39 = vector.broadcast %cst_31 : f32 to vector<4x50xf32>
      %c0_i32_32 = arith.constant 0 : i32
      %40 = arith.addi %arg14, %c0_i32_32 : i32
      %41 = arith.index_cast %40 : i32 to index
      %c0_33 = arith.constant 0 : index
      %c0_34 = arith.constant 0 : index
      %42 = vector.load %arg9[%41, %c0_33, %c0_34] : memref<8x8x20xf32, #tpu.memory_space<vmem>>, vector<1x4x20xf32>
      %43 = vector.shape_cast %42 : vector<1x4x20xf32> to vector<4x20xf32>
      %c0_35 = arith.constant 0 : index
      %c0_36 = arith.constant 0 : index
      %c0_37 = arith.constant 0 : index
      %44 = vector.load %arg2[%c0_35, %c0_36, %c0_37] : memref<25x20x50xf32, #tpu.memory_space<vmem>>, vector<1x20x50xf32>
      %45 = vector.shape_cast %44 : vector<1x20x50xf32> to vector<20x50xf32>
      %cst_38 = arith.constant dense<0.000000e+00> : vector<4x50xf32>
      %46 = tpu.matmul %43, %45, %cst_38 {dimension_numbers = #tpu.dot_dimension_numbers<[1], [0], [0], [1], [0, 0, 1, 1], [], []>} : vector<4x20xf32>, vector<20x50xf32>, vector<4x50xf32> -> vector<4x50xf32>
      %47 = arith.addf %39, %46 : vector<4x50xf32>
      %c0_i32_39 = arith.constant 0 : i32
      %48 = arith.addi %arg14, %c0_i32_39 : i32
      %49 = arith.index_cast %48 : i32 to index
      %c1 = arith.constant 1 : index
      %c0_40 = arith.constant 0 : index
      %50 = vector.load %arg9[%49, %c1, %c0_40] : memref<8x8x20xf32, #tpu.memory_space<vmem>>, vector<1x4x20xf32>
      %51 = vector.shape_cast %50 : vector<1x4x20xf32> to vector<4x20xf32>
      %c1_41 = arith.constant 1 : index
      %c0_42 = arith.constant 0 : index
      %c0_43 = arith.constant 0 : index
      %52 = vector.load %arg2[%c1_41, %c0_42, %c0_43] : memref<25x20x50xf32, #tpu.memory_space<vmem>>, vector<1x20x50xf32>
      %53 = vector.shape_cast %52 : vector<1x20x50xf32> to vector<20x50xf32>
      %cst_44 = arith.constant dense<0.000000e+00> : vector<4x50xf32>
      %54 = tpu.matmul %51, %53, %cst_44 {dimension_numbers = #tpu.dot_dimension_numbers<[1], [0], [0], [1], [0, 0, 1, 1], [], []>} : vector<4x20xf32>, vector<20x50xf32>, vector<4x50xf32> -> vector<4x50xf32>
      %55 = arith.addf %47, %54 : vector<4x50xf32>
      %c0_i32_45 = arith.constant 0 : i32
      %56 = arith.addi %arg14, %c0_i32_45 : i32
      %57 = arith.index_cast %56 : i32 to index
      %c2 = arith.constant 2 : index
      %c0_46 = arith.constant 0 : index
      %58 = vector.load %arg9[%57, %c2, %c0_46] : memref<8x8x20xf32, #tpu.memory_space<vmem>>, vector<1x4x20xf32>
      %59 = vector.shape_cast %58 : vector<1x4x20xf32> to vector<4x20xf32>
      %c2_47 = arith.constant 2 : index
      %c0_48 = arith.constant 0 : index
      %c0_49 = arith.constant 0 : index
      %60 = vector.load %arg2[%c2_47, %c0_48, %c0_49] : memref<25x20x50xf32, #tpu.memory_space<vmem>>, vector<1x20x50xf32>
      %61 = vector.shape_cast %60 : vector<1x20x50xf32> to vector<20x50xf32>
      %cst_50 = arith.constant dense<0.000000e+00> : vector<4x50xf32>
      %62 = tpu.matmul %59, %61, %cst_50 {dimension_numbers = #tpu.dot_dimension_numbers<[1], [0], [0], [1], [0, 0, 1, 1], [], []>} : vector<4x20xf32>, vector<20x50xf32>, vector<4x50xf32> -> vector<4x50xf32>
      %63 = arith.addf %55, %62 : vector<4x50xf32>
      %c0_i32_51 = arith.constant 0 : i32
      %64 = arith.addi %arg14, %c0_i32_51 : i32
      %65 = arith.index_cast %64 : i32 to index
      %c3 = arith.constant 3 : index
      %c0_52 = arith.constant 0 : index
      %66 = vector.load %arg9[%65, %c3, %c0_52] : memref<8x8x20xf32, #tpu.memory_space<vmem>>, vector<1x4x20xf32>
      %67 = vector.shape_cast %66 : vector<1x4x20xf32> to vector<4x20xf32>
      %c3_53 = arith.constant 3 : index
      %c0_54 = arith.constant 0 : index
      %c0_55 = arith.constant 0 : index
      %68 = vector.load %arg2[%c3_53, %c0_54, %c0_55] : memref<25x20x50xf32, #tpu.memory_space<vmem>>, vector<1x20x50xf32>
      %69 = vector.shape_cast %68 : vector<1x20x50xf32> to vector<20x50xf32>
      %cst_56 = arith.constant dense<0.000000e+00> : vector<4x50xf32>
      %70 = tpu.matmul %67, %69, %cst_56 {dimension_numbers = #tpu.dot_dimension_numbers<[1], [0], [0], [1], [0, 0, 1, 1], [], []>} : vector<4x20xf32>, vector<20x50xf32>, vector<4x50xf32> -> vector<4x50xf32>
      %71 = arith.addf %63, %70 : vector<4x50xf32>
      %c0_i32_57 = arith.constant 0 : i32
      %72 = arith.addi %arg14, %c0_i32_57 : i32
      %73 = arith.index_cast %72 : i32 to index
      %c4 = arith.constant 4 : index
      %c0_58 = arith.constant 0 : index
      %74 = vector.load %arg9[%73, %c4, %c0_58] : memref<8x8x20xf32, #tpu.memory_space<vmem>>, vector<1x4x20xf32>
      %75 = vector.shape_cast %74 : vector<1x4x20xf32> to vector<4x20xf32>
      %c4_59 = arith.constant 4 : index
      %c0_60 = arith.constant 0 : index
      %c0_61 = arith.constant 0 : index
      %76 = vector.load %arg2[%c4_59, %c0_60, %c0_61] : memref<25x20x50xf32, #tpu.memory_space<vmem>>, vector<1x20x50xf32>
      %77 = vector.shape_cast %76 : vector<1x20x50xf32> to vector<20x50xf32>
      %cst_62 = arith.constant dense<0.000000e+00> : vector<4x50xf32>
      %78 = tpu.matmul %75, %77, %cst_62 {dimension_numbers = #tpu.dot_dimension_numbers<[1], [0], [0], [1], [0, 0, 1, 1], [], []>} : vector<4x20xf32>, vector<20x50xf32>, vector<4x50xf32> -> vector<4x50xf32>
      %79 = arith.addf %71, %78 : vector<4x50xf32>
      %c1_i32_63 = arith.constant 1 : i32
      %80 = arith.addi %arg14, %c1_i32_63 : i32
      %81 = arith.index_cast %80 : i32 to index
      %c0_64 = arith.constant 0 : index
      %c0_65 = arith.constant 0 : index
      %82 = vector.load %arg9[%81, %c0_64, %c0_65] : memref<8x8x20xf32, #tpu.memory_space<vmem>>, vector<1x4x20xf32>
      %83 = vector.shape_cast %82 : vector<1x4x20xf32> to vector<4x20xf32>
      %c5 = arith.constant 5 : index
      %c0_66 = arith.constant 0 : index
      %c0_67 = arith.constant 0 : index
      %84 = vector.load %arg2[%c5, %c0_66, %c0_67] : memref<25x20x50xf32, #tpu.memory_space<vmem>>, vector<1x20x50xf32>
      %85 = vector.shape_cast %84 : vector<1x20x50xf32> to vector<20x50xf32>
      %cst_68 = arith.constant dense<0.000000e+00> : vector<4x50xf32>
      %86 = tpu.matmul %83, %85, %cst_68 {dimension_numbers = #tpu.dot_dimension_numbers<[1], [0], [0], [1], [0, 0, 1, 1], [], []>} : vector<4x20xf32>, vector<20x50xf32>, vector<4x50xf32> -> vector<4x50xf32>
      %87 = arith.addf %79, %86 : vector<4x50xf32>
      %c1_i32_69 = arith.constant 1 : i32
      %88 = arith.addi %arg14, %c1_i32_69 : i32
      %89 = arith.index_cast %88 : i32 to index
      %c1_70 = arith.constant 1 : index
      %c0_71 = arith.constant 0 : index
      %90 = vector.load %arg9[%89, %c1_70, %c0_71] : memref<8x8x20xf32, #tpu.memory_space<vmem>>, vector<1x4x20xf32>
      %91 = vector.shape_cast %90 : vector<1x4x20xf32> to vector<4x20xf32>
      %c6 = arith.constant 6 : index
      %c0_72 = arith.constant 0 : index
      %c0_73 = arith.constant 0 : index
      %92 = vector.load %arg2[%c6, %c0_72, %c0_73] : memref<25x20x50xf32, #tpu.memory_space<vmem>>, vector<1x20x50xf32>
      %93 = vector.shape_cast %92 : vector<1x20x50xf32> to vector<20x50xf32>
      %cst_74 = arith.constant dense<0.000000e+00> : vector<4x50xf32>
      %94 = tpu.matmul %91, %93, %cst_74 {dimension_numbers = #tpu.dot_dimension_numbers<[1], [0], [0], [1], [0, 0, 1, 1], [], []>} : vector<4x20xf32>, vector<20x50xf32>, vector<4x50xf32> -> vector<4x50xf32>
      %95 = arith.addf %87, %94 : vector<4x50xf32>
      %c1_i32_75 = arith.constant 1 : i32
      %96 = arith.addi %arg14, %c1_i32_75 : i32
      %97 = arith.index_cast %96 : i32 to index
      %c2_76 = arith.constant 2 : index
      %c0_77 = arith.constant 0 : index
      %98 = vector.load %arg9[%97, %c2_76, %c0_77] : memref<8x8x20xf32, #tpu.memory_space<vmem>>, vector<1x4x20xf32>
      %99 = vector.shape_cast %98 : vector<1x4x20xf32> to vector<4x20xf32>
      %c7 = arith.constant 7 : index
      %c0_78 = arith.constant 0 : index
      %c0_79 = arith.constant 0 : index
      %100 = vector.load %arg2[%c7, %c0_78, %c0_79] : memref<25x20x50xf32, #tpu.memory_space<vmem>>, vector<1x20x50xf32>
      %101 = vector.shape_cast %100 : vector<1x20x50xf32> to vector<20x50xf32>
      %cst_80 = arith.constant dense<0.000000e+00> : vector<4x50xf32>
      %102 = tpu.matmul %99, %101, %cst_80 {dimension_numbers = #tpu.dot_dimension_numbers<[1], [0], [0], [1], [0, 0, 1, 1], [], []>} : vector<4x20xf32>, vector<20x50xf32>, vector<4x50xf32> -> vector<4x50xf32>
      %103 = arith.addf %95, %102 : vector<4x50xf32>
      %c1_i32_81 = arith.constant 1 : i32
      %104 = arith.addi %arg14, %c1_i32_81 : i32
      %105 = arith.index_cast %104 : i32 to index
      %c3_82 = arith.constant 3 : index
      %c0_83 = arith.constant 0 : index
      %106 = vector.load %arg9[%105, %c3_82, %c0_83] : memref<8x8x20xf32, #tpu.memory_space<vmem>>, vector<1x4x20xf32>
      %107 = vector.shape_cast %106 : vector<1x4x20xf32> to vector<4x20xf32>
      %c8 = arith.constant 8 : index
      %c0_84 = arith.constant 0 : index
      %c0_85 = arith.constant 0 : index
      %108 = vector.load %arg2[%c8, %c0_84, %c0_85] : memref<25x20x50xf32, #tpu.memory_space<vmem>>, vector<1x20x50xf32>
      %109 = vector.shape_cast %108 : vector<1x20x50xf32> to vector<20x50xf32>
      %cst_86 = arith.constant dense<0.000000e+00> : vector<4x50xf32>
      %110 = tpu.matmul %107, %109, %cst_86 {dimension_numbers = #tpu.dot_dimension_numbers<[1], [0], [0], [1], [0, 0, 1, 1], [], []>} : vector<4x20xf32>, vector<20x50xf32>, vector<4x50xf32> -> vector<4x50xf32>
      %111 = arith.addf %103, %110 : vector<4x50xf32>
      %c1_i32_87 = arith.constant 1 : i32
      %112 = arith.addi %arg14, %c1_i32_87 : i32
      %113 = arith.index_cast %112 : i32 to index
      %c4_88 = arith.constant 4 : index
      %c0_89 = arith.constant 0 : index
      %114 = vector.load %arg9[%113, %c4_88, %c0_89] : memref<8x8x20xf32, #tpu.memory_space<vmem>>, vector<1x4x20xf32>
      %115 = vector.shape_cast %114 : vector<1x4x20xf32> to vector<4x20xf32>
      %c9 = arith.constant 9 : index
      %c0_90 = arith.constant 0 : index
      %c0_91 = arith.constant 0 : index
      %116 = vector.load %arg2[%c9, %c0_90, %c0_91] : memref<25x20x50xf32, #tpu.memory_space<vmem>>, vector<1x20x50xf32>
      %117 = vector.shape_cast %116 : vector<1x20x50xf32> to vector<20x50xf32>
      %cst_92 = arith.constant dense<0.000000e+00> : vector<4x50xf32>
      %118 = tpu.matmul %115, %117, %cst_92 {dimension_numbers = #tpu.dot_dimension_numbers<[1], [0], [0], [1], [0, 0, 1, 1], [], []>} : vector<4x20xf32>, vector<20x50xf32>, vector<4x50xf32> -> vector<4x50xf32>
      %119 = arith.addf %111, %118 : vector<4x50xf32>
      %c2_i32_93 = arith.constant 2 : i32
      %120 = arith.addi %arg14, %c2_i32_93 : i32
      %121 = arith.index_cast %120 : i32 to index
      %c0_94 = arith.constant 0 : index
      %c0_95 = arith.constant 0 : index
      %122 = vector.load %arg9[%121, %c0_94, %c0_95] : memref<8x8x20xf32, #tpu.memory_space<vmem>>, vector<1x4x20xf32>
      %123 = vector.shape_cast %122 : vector<1x4x20xf32> to vector<4x20xf32>
      %c10 = arith.constant 10 : index
      %c0_96 = arith.constant 0 : index
      %c0_97 = arith.constant 0 : index
      %124 = vector.load %arg2[%c10, %c0_96, %c0_97] : memref<25x20x50xf32, #tpu.memory_space<vmem>>, vector<1x20x50xf32>
      %125 = vector.shape_cast %124 : vector<1x20x50xf32> to vector<20x50xf32>
      %cst_98 = arith.constant dense<0.000000e+00> : vector<4x50xf32>
      %126 = tpu.matmul %123, %125, %cst_98 {dimension_numbers = #tpu.dot_dimension_numbers<[1], [0], [0], [1], [0, 0, 1, 1], [], []>} : vector<4x20xf32>, vector<20x50xf32>, vector<4x50xf32> -> vector<4x50xf32>
      %127 = arith.addf %119, %126 : vector<4x50xf32>
      %c2_i32_99 = arith.constant 2 : i32
      %128 = arith.addi %arg14, %c2_i32_99 : i32
      %129 = arith.index_cast %128 : i32 to index
      %c1_100 = arith.constant 1 : index
      %c0_101 = arith.constant 0 : index
      %130 = vector.load %arg9[%129, %c1_100, %c0_101] : memref<8x8x20xf32, #tpu.memory_space<vmem>>, vector<1x4x20xf32>
      %131 = vector.shape_cast %130 : vector<1x4x20xf32> to vector<4x20xf32>
      %c11 = arith.constant 11 : index
      %c0_102 = arith.constant 0 : index
      %c0_103 = arith.constant 0 : index
      %132 = vector.load %arg2[%c11, %c0_102, %c0_103] : memref<25x20x50xf32, #tpu.memory_space<vmem>>, vector<1x20x50xf32>
      %133 = vector.shape_cast %132 : vector<1x20x50xf32> to vector<20x50xf32>
      %cst_104 = arith.constant dense<0.000000e+00> : vector<4x50xf32>
      %134 = tpu.matmul %131, %133, %cst_104 {dimension_numbers = #tpu.dot_dimension_numbers<[1], [0], [0], [1], [0, 0, 1, 1], [], []>} : vector<4x20xf32>, vector<20x50xf32>, vector<4x50xf32> -> vector<4x50xf32>
      %135 = arith.addf %127, %134 : vector<4x50xf32>
      %c2_i32_105 = arith.constant 2 : i32
      %136 = arith.addi %arg14, %c2_i32_105 : i32
      %137 = arith.index_cast %136 : i32 to index
      %c2_106 = arith.constant 2 : index
      %c0_107 = arith.constant 0 : index
      %138 = vector.load %arg9[%137, %c2_106, %c0_107] : memref<8x8x20xf32, #tpu.memory_space<vmem>>, vector<1x4x20xf32>
      %139 = vector.shape_cast %138 : vector<1x4x20xf32> to vector<4x20xf32>
      %c12 = arith.constant 12 : index
      %c0_108 = arith.constant 0 : index
      %c0_109 = arith.constant 0 : index
      %140 = vector.load %arg2[%c12, %c0_108, %c0_109] : memref<25x20x50xf32, #tpu.memory_space<vmem>>, vector<1x20x50xf32>
      %141 = vector.shape_cast %140 : vector<1x20x50xf32> to vector<20x50xf32>
      %cst_110 = arith.constant dense<0.000000e+00> : vector<4x50xf32>
      %142 = tpu.matmul %139, %141, %cst_110 {dimension_numbers = #tpu.dot_dimension_numbers<[1], [0], [0], [1], [0, 0, 1, 1], [], []>} : vector<4x20xf32>, vector<20x50xf32>, vector<4x50xf32> -> vector<4x50xf32>
      %143 = arith.addf %135, %142 : vector<4x50xf32>
      %c2_i32_111 = arith.constant 2 : i32
      %144 = arith.addi %arg14, %c2_i32_111 : i32
      %145 = arith.index_cast %144 : i32 to index
      %c3_112 = arith.constant 3 : index
      %c0_113 = arith.constant 0 : index
      %146 = vector.load %arg9[%145, %c3_112, %c0_113] : memref<8x8x20xf32, #tpu.memory_space<vmem>>, vector<1x4x20xf32>
      %147 = vector.shape_cast %146 : vector<1x4x20xf32> to vector<4x20xf32>
      %c13 = arith.constant 13 : index
      %c0_114 = arith.constant 0 : index
      %c0_115 = arith.constant 0 : index
      %148 = vector.load %arg2[%c13, %c0_114, %c0_115] : memref<25x20x50xf32, #tpu.memory_space<vmem>>, vector<1x20x50xf32>
      %149 = vector.shape_cast %148 : vector<1x20x50xf32> to vector<20x50xf32>
      %cst_116 = arith.constant dense<0.000000e+00> : vector<4x50xf32>
      %150 = tpu.matmul %147, %149, %cst_116 {dimension_numbers = #tpu.dot_dimension_numbers<[1], [0], [0], [1], [0, 0, 1, 1], [], []>} : vector<4x20xf32>, vector<20x50xf32>, vector<4x50xf32> -> vector<4x50xf32>
      %151 = arith.addf %143, %150 : vector<4x50xf32>
      %c2_i32_117 = arith.constant 2 : i32
      %152 = arith.addi %arg14, %c2_i32_117 : i32
      %153 = arith.index_cast %152 : i32 to index
      %c4_118 = arith.constant 4 : index
      %c0_119 = arith.constant 0 : index
      %154 = vector.load %arg9[%153, %c4_118, %c0_119] : memref<8x8x20xf32, #tpu.memory_space<vmem>>, vector<1x4x20xf32>
      %155 = vector.shape_cast %154 : vector<1x4x20xf32> to vector<4x20xf32>
      %c14 = arith.constant 14 : index
      %c0_120 = arith.constant 0 : index
      %c0_121 = arith.constant 0 : index
      %156 = vector.load %arg2[%c14, %c0_120, %c0_121] : memref<25x20x50xf32, #tpu.memory_space<vmem>>, vector<1x20x50xf32>
      %157 = vector.shape_cast %156 : vector<1x20x50xf32> to vector<20x50xf32>
      %cst_122 = arith.constant dense<0.000000e+00> : vector<4x50xf32>
      %158 = tpu.matmul %155, %157, %cst_122 {dimension_numbers = #tpu.dot_dimension_numbers<[1], [0], [0], [1], [0, 0, 1, 1], [], []>} : vector<4x20xf32>, vector<20x50xf32>, vector<4x50xf32> -> vector<4x50xf32>
      %159 = arith.addf %151, %158 : vector<4x50xf32>
      %c3_i32 = arith.constant 3 : i32
      %160 = arith.addi %arg14, %c3_i32 : i32
      %161 = arith.index_cast %160 : i32 to index
      %c0_123 = arith.constant 0 : index
      %c0_124 = arith.constant 0 : index
      %162 = vector.load %arg9[%161, %c0_123, %c0_124] : memref<8x8x20xf32, #tpu.memory_space<vmem>>, vector<1x4x20xf32>
      %163 = vector.shape_cast %162 : vector<1x4x20xf32> to vector<4x20xf32>
      %c15 = arith.constant 15 : index
      %c0_125 = arith.constant 0 : index
      %c0_126 = arith.constant 0 : index
      %164 = vector.load %arg2[%c15, %c0_125, %c0_126] : memref<25x20x50xf32, #tpu.memory_space<vmem>>, vector<1x20x50xf32>
      %165 = vector.shape_cast %164 : vector<1x20x50xf32> to vector<20x50xf32>
      %cst_127 = arith.constant dense<0.000000e+00> : vector<4x50xf32>
      %166 = tpu.matmul %163, %165, %cst_127 {dimension_numbers = #tpu.dot_dimension_numbers<[1], [0], [0], [1], [0, 0, 1, 1], [], []>} : vector<4x20xf32>, vector<20x50xf32>, vector<4x50xf32> -> vector<4x50xf32>
      %167 = arith.addf %159, %166 : vector<4x50xf32>
      %c3_i32_128 = arith.constant 3 : i32
      %168 = arith.addi %arg14, %c3_i32_128 : i32
      %169 = arith.index_cast %168 : i32 to index
      %c1_129 = arith.constant 1 : index
      %c0_130 = arith.constant 0 : index
      %170 = vector.load %arg9[%169, %c1_129, %c0_130] : memref<8x8x20xf32, #tpu.memory_space<vmem>>, vector<1x4x20xf32>
      %171 = vector.shape_cast %170 : vector<1x4x20xf32> to vector<4x20xf32>
      %c16 = arith.constant 16 : index
      %c0_131 = arith.constant 0 : index
      %c0_132 = arith.constant 0 : index
      %172 = vector.load %arg2[%c16, %c0_131, %c0_132] : memref<25x20x50xf32, #tpu.memory_space<vmem>>, vector<1x20x50xf32>
      %173 = vector.shape_cast %172 : vector<1x20x50xf32> to vector<20x50xf32>
      %cst_133 = arith.constant dense<0.000000e+00> : vector<4x50xf32>
      %174 = tpu.matmul %171, %173, %cst_133 {dimension_numbers = #tpu.dot_dimension_numbers<[1], [0], [0], [1], [0, 0, 1, 1], [], []>} : vector<4x20xf32>, vector<20x50xf32>, vector<4x50xf32> -> vector<4x50xf32>
      %175 = arith.addf %167, %174 : vector<4x50xf32>
      %c3_i32_134 = arith.constant 3 : i32
      %176 = arith.addi %arg14, %c3_i32_134 : i32
      %177 = arith.index_cast %176 : i32 to index
      %c2_135 = arith.constant 2 : index
      %c0_136 = arith.constant 0 : index
      %178 = vector.load %arg9[%177, %c2_135, %c0_136] : memref<8x8x20xf32, #tpu.memory_space<vmem>>, vector<1x4x20xf32>
      %179 = vector.shape_cast %178 : vector<1x4x20xf32> to vector<4x20xf32>
      %c17 = arith.constant 17 : index
      %c0_137 = arith.constant 0 : index
      %c0_138 = arith.constant 0 : index
      %180 = vector.load %arg2[%c17, %c0_137, %c0_138] : memref<25x20x50xf32, #tpu.memory_space<vmem>>, vector<1x20x50xf32>
      %181 = vector.shape_cast %180 : vector<1x20x50xf32> to vector<20x50xf32>
      %cst_139 = arith.constant dense<0.000000e+00> : vector<4x50xf32>
      %182 = tpu.matmul %179, %181, %cst_139 {dimension_numbers = #tpu.dot_dimension_numbers<[1], [0], [0], [1], [0, 0, 1, 1], [], []>} : vector<4x20xf32>, vector<20x50xf32>, vector<4x50xf32> -> vector<4x50xf32>
      %183 = arith.addf %175, %182 : vector<4x50xf32>
      %c3_i32_140 = arith.constant 3 : i32
      %184 = arith.addi %arg14, %c3_i32_140 : i32
      %185 = arith.index_cast %184 : i32 to index
      %c3_141 = arith.constant 3 : index
      %c0_142 = arith.constant 0 : index
      %186 = vector.load %arg9[%185, %c3_141, %c0_142] : memref<8x8x20xf32, #tpu.memory_space<vmem>>, vector<1x4x20xf32>
      %187 = vector.shape_cast %186 : vector<1x4x20xf32> to vector<4x20xf32>
      %c18 = arith.constant 18 : index
      %c0_143 = arith.constant 0 : index
      %c0_144 = arith.constant 0 : index
      %188 = vector.load %arg2[%c18, %c0_143, %c0_144] : memref<25x20x50xf32, #tpu.memory_space<vmem>>, vector<1x20x50xf32>
      %189 = vector.shape_cast %188 : vector<1x20x50xf32> to vector<20x50xf32>
      %cst_145 = arith.constant dense<0.000000e+00> : vector<4x50xf32>
      %190 = tpu.matmul %187, %189, %cst_145 {dimension_numbers = #tpu.dot_dimension_numbers<[1], [0], [0], [1], [0, 0, 1, 1], [], []>} : vector<4x20xf32>, vector<20x50xf32>, vector<4x50xf32> -> vector<4x50xf32>
      %191 = arith.addf %183, %190 : vector<4x50xf32>
      %c3_i32_146 = arith.constant 3 : i32
      %192 = arith.addi %arg14, %c3_i32_146 : i32
      %193 = arith.index_cast %192 : i32 to index
      %c4_147 = arith.constant 4 : index
      %c0_148 = arith.constant 0 : index
      %194 = vector.load %arg9[%193, %c4_147, %c0_148] : memref<8x8x20xf32, #tpu.memory_space<vmem>>, vector<1x4x20xf32>
      %195 = vector.shape_cast %194 : vector<1x4x20xf32> to vector<4x20xf32>
      %c19 = arith.constant 19 : index
      %c0_149 = arith.constant 0 : index
      %c0_150 = arith.constant 0 : index
      %196 = vector.load %arg2[%c19, %c0_149, %c0_150] : memref<25x20x50xf32, #tpu.memory_space<vmem>>, vector<1x20x50xf32>
      %197 = vector.shape_cast %196 : vector<1x20x50xf32> to vector<20x50xf32>
      %cst_151 = arith.constant dense<0.000000e+00> : vector<4x50xf32>
      %198 = tpu.matmul %195, %197, %cst_151 {dimension_numbers = #tpu.dot_dimension_numbers<[1], [0], [0], [1], [0, 0, 1, 1], [], []>} : vector<4x20xf32>, vector<20x50xf32>, vector<4x50xf32> -> vector<4x50xf32>
      %199 = arith.addf %191, %198 : vector<4x50xf32>
      %c4_i32_152 = arith.constant 4 : i32
      %200 = arith.addi %arg14, %c4_i32_152 : i32
      %201 = arith.index_cast %200 : i32 to index
      %c0_153 = arith.constant 0 : index
      %c0_154 = arith.constant 0 : index
      %202 = vector.load %arg9[%201, %c0_153, %c0_154] : memref<8x8x20xf32, #tpu.memory_space<vmem>>, vector<1x4x20xf32>
      %203 = vector.shape_cast %202 : vector<1x4x20xf32> to vector<4x20xf32>
      %c20 = arith.constant 20 : index
      %c0_155 = arith.constant 0 : index
      %c0_156 = arith.constant 0 : index
      %204 = vector.load %arg2[%c20, %c0_155, %c0_156] : memref<25x20x50xf32, #tpu.memory_space<vmem>>, vector<1x20x50xf32>
      %205 = vector.shape_cast %204 : vector<1x20x50xf32> to vector<20x50xf32>
      %cst_157 = arith.constant dense<0.000000e+00> : vector<4x50xf32>
      %206 = tpu.matmul %203, %205, %cst_157 {dimension_numbers = #tpu.dot_dimension_numbers<[1], [0], [0], [1], [0, 0, 1, 1], [], []>} : vector<4x20xf32>, vector<20x50xf32>, vector<4x50xf32> -> vector<4x50xf32>
      %207 = arith.addf %199, %206 : vector<4x50xf32>
      %c4_i32_158 = arith.constant 4 : i32
      %208 = arith.addi %arg14, %c4_i32_158 : i32
      %209 = arith.index_cast %208 : i32 to index
      %c1_159 = arith.constant 1 : index
      %c0_160 = arith.constant 0 : index
      %210 = vector.load %arg9[%209, %c1_159, %c0_160] : memref<8x8x20xf32, #tpu.memory_space<vmem>>, vector<1x4x20xf32>
      %211 = vector.shape_cast %210 : vector<1x4x20xf32> to vector<4x20xf32>
      %c21 = arith.constant 21 : index
      %c0_161 = arith.constant 0 : index
      %c0_162 = arith.constant 0 : index
      %212 = vector.load %arg2[%c21, %c0_161, %c0_162] : memref<25x20x50xf32, #tpu.memory_space<vmem>>, vector<1x20x50xf32>
      %213 = vector.shape_cast %212 : vector<1x20x50xf32> to vector<20x50xf32>
      %cst_163 = arith.constant dense<0.000000e+00> : vector<4x50xf32>
      %214 = tpu.matmul %211, %213, %cst_163 {dimension_numbers = #tpu.dot_dimension_numbers<[1], [0], [0], [1], [0, 0, 1, 1], [], []>} : vector<4x20xf32>, vector<20x50xf32>, vector<4x50xf32> -> vector<4x50xf32>
      %215 = arith.addf %207, %214 : vector<4x50xf32>
      %c4_i32_164 = arith.constant 4 : i32
      %216 = arith.addi %arg14, %c4_i32_164 : i32
      %217 = arith.index_cast %216 : i32 to index
      %c2_165 = arith.constant 2 : index
      %c0_166 = arith.constant 0 : index
      %218 = vector.load %arg9[%217, %c2_165, %c0_166] : memref<8x8x20xf32, #tpu.memory_space<vmem>>, vector<1x4x20xf32>
      %219 = vector.shape_cast %218 : vector<1x4x20xf32> to vector<4x20xf32>
      %c22 = arith.constant 22 : index
      %c0_167 = arith.constant 0 : index
      %c0_168 = arith.constant 0 : index
      %220 = vector.load %arg2[%c22, %c0_167, %c0_168] : memref<25x20x50xf32, #tpu.memory_space<vmem>>, vector<1x20x50xf32>
      %221 = vector.shape_cast %220 : vector<1x20x50xf32> to vector<20x50xf32>
      %cst_169 = arith.constant dense<0.000000e+00> : vector<4x50xf32>
      %222 = tpu.matmul %219, %221, %cst_169 {dimension_numbers = #tpu.dot_dimension_numbers<[1], [0], [0], [1], [0, 0, 1, 1], [], []>} : vector<4x20xf32>, vector<20x50xf32>, vector<4x50xf32> -> vector<4x50xf32>
      %223 = arith.addf %215, %222 : vector<4x50xf32>
      %c4_i32_170 = arith.constant 4 : i32
      %224 = arith.addi %arg14, %c4_i32_170 : i32
      %225 = arith.index_cast %224 : i32 to index
      %c3_171 = arith.constant 3 : index
      %c0_172 = arith.constant 0 : index
      %226 = vector.load %arg9[%225, %c3_171, %c0_172] : memref<8x8x20xf32, #tpu.memory_space<vmem>>, vector<1x4x20xf32>
      %227 = vector.shape_cast %226 : vector<1x4x20xf32> to vector<4x20xf32>
      %c23 = arith.constant 23 : index
      %c0_173 = arith.constant 0 : index
      %c0_174 = arith.constant 0 : index
      %228 = vector.load %arg2[%c23, %c0_173, %c0_174] : memref<25x20x50xf32, #tpu.memory_space<vmem>>, vector<1x20x50xf32>
      %229 = vector.shape_cast %228 : vector<1x20x50xf32> to vector<20x50xf32>
      %cst_175 = arith.constant dense<0.000000e+00> : vector<4x50xf32>
      %230 = tpu.matmul %227, %229, %cst_175 {dimension_numbers = #tpu.dot_dimension_numbers<[1], [0], [0], [1], [0, 0, 1, 1], [], []>} : vector<4x20xf32>, vector<20x50xf32>, vector<4x50xf32> -> vector<4x50xf32>
      %231 = arith.addf %223, %230 : vector<4x50xf32>
      %c4_i32_176 = arith.constant 4 : i32
      %232 = arith.addi %arg14, %c4_i32_176 : i32
      %233 = arith.index_cast %232 : i32 to index
      %c4_177 = arith.constant 4 : index
      %c0_178 = arith.constant 0 : index
      %234 = vector.load %arg9[%233, %c4_177, %c0_178] : memref<8x8x20xf32, #tpu.memory_space<vmem>>, vector<1x4x20xf32>
      %235 = vector.shape_cast %234 : vector<1x4x20xf32> to vector<4x20xf32>
      %c24 = arith.constant 24 : index
      %c0_179 = arith.constant 0 : index
      %c0_180 = arith.constant 0 : index
      %236 = vector.load %arg2[%c24, %c0_179, %c0_180] : memref<25x20x50xf32, #tpu.memory_space<vmem>>, vector<1x20x50xf32>
      %237 = vector.shape_cast %236 : vector<1x20x50xf32> to vector<20x50xf32>
      %cst_181 = arith.constant dense<0.000000e+00> : vector<4x50xf32>
      %238 = tpu.matmul %235, %237, %cst_181 {dimension_numbers = #tpu.dot_dimension_numbers<[1], [0], [0], [1], [0, 0, 1, 1], [], []>} : vector<4x20xf32>, vector<20x50xf32>, vector<4x50xf32> -> vector<4x50xf32>
      %239 = arith.addf %231, %238 : vector<4x50xf32>
      %240 = vector.broadcast %32 : vector<1x50xf32> to vector<4x50xf32>
      %241 = arith.addf %239, %240 : vector<4x50xf32>
      %cst_182 = arith.constant 0.000000e+00 : f32
      %242 = vector.broadcast %cst_182 : f32 to vector<4x50xf32>
      %243 = arith.maximumf %241, %242 : vector<4x50xf32>
      %c4_i32_183 = arith.constant 4 : i32
      %244 = arith.addi %c4_i32_183, %arg14 : i32
      %245 = arith.index_cast %244 : i32 to index
      %c4_184 = arith.constant 4 : index
      %c0_185 = arith.constant 0 : index
      %246 = vector.load %arg11[%245, %c4_184, %c0_185] : memref<12x12x50xf32, #tpu.memory_space<vmem>>, vector<1x4x50xf32>
      %247 = vector.shape_cast %246 : vector<1x4x50xf32> to vector<4x50xf32>
      %248 = vector.shape_cast %243 : vector<4x50xf32> to vector<1x4x50xf32>
      tpu.vector_store %arg11[%245, %c4_184, %c0_185], %248 {strides = array<i32>} : memref<12x12x50xf32, #tpu.memory_space<vmem>>, vector<1x4x50xf32>,
    }
    %c4_i32_15 = arith.constant 4 : i32
    %c0_16 = arith.constant 0 : index
    %c0_17 = arith.constant 0 : index
    %34 = vector.load %arg5[%c0_16, %c0_17] : memref<1x20xf32, #tpu.memory_space<vmem>>, vector<1x20xf32>
    %c0_i32_18 = arith.constant 0 : i32
    %c8_i32_19 = arith.constant 8 : i32
    %35 = arith.addi %c0_i32_18, %c8_i32_19 : i32
    %c1_i32_20 = arith.constant 1 : i32
    scf.for %arg14 = %c0_i32_18 to %35 step %c1_i32_20  : i32 {
      %cst_31 = arith.constant 0.000000e+00 : f32
      %39 = vector.broadcast %cst_31 : f32 to vector<8x20xf32>
      %c0_i32_32 = arith.constant 0 : i32
      %40 = arith.addi %arg14, %c0_i32_32 : i32
      %41 = arith.index_cast %40 : i32 to index
      %c0_33 = arith.constant 0 : index
      %c0_34 = arith.constant 0 : index
      %42 = vector.load %arg11[%41, %c0_33, %c0_34] : memref<12x12x50xf32, #tpu.memory_space<vmem>>, vector<1x8x50xf32>
      %43 = vector.shape_cast %42 : vector<1x8x50xf32> to vector<8x50xf32>
      %c0_35 = arith.constant 0 : index
      %c0_36 = arith.constant 0 : index
      %c0_37 = arith.constant 0 : index
      %44 = vector.load %arg4[%c0_35, %c0_36, %c0_37] : memref<25x50x20xf32, #tpu.memory_space<vmem>>, vector<1x50x20xf32>
      %45 = vector.shape_cast %44 : vector<1x50x20xf32> to vector<50x20xf32>
      %cst_38 = arith.constant dense<0.000000e+00> : vector<8x20xf32>
      %46 = tpu.matmul %43, %45, %cst_38 {dimension_numbers = #tpu.dot_dimension_numbers<[1], [0], [0], [1], [0, 0, 1, 1], [], []>} : vector<8x50xf32>, vector<50x20xf32>, vector<8x20xf32> -> vector<8x20xf32>
      %47 = arith.addf %39, %46 : vector<8x20xf32>
      %c0_i32_39 = arith.constant 0 : i32
      %48 = arith.addi %arg14, %c0_i32_39 : i32
      %49 = arith.index_cast %48 : i32 to index
      %c1 = arith.constant 1 : index
      %c0_40 = arith.constant 0 : index
      %50 = vector.load %arg11[%49, %c1, %c0_40] : memref<12x12x50xf32, #tpu.memory_space<vmem>>, vector<1x8x50xf32>
      %51 = vector.shape_cast %50 : vector<1x8x50xf32> to vector<8x50xf32>
      %c1_41 = arith.constant 1 : index
      %c0_42 = arith.constant 0 : index
      %c0_43 = arith.constant 0 : index
      %52 = vector.load %arg4[%c1_41, %c0_42, %c0_43] : memref<25x50x20xf32, #tpu.memory_space<vmem>>, vector<1x50x20xf32>
      %53 = vector.shape_cast %52 : vector<1x50x20xf32> to vector<50x20xf32>
      %cst_44 = arith.constant dense<0.000000e+00> : vector<8x20xf32>
      %54 = tpu.matmul %51, %53, %cst_44 {dimension_numbers = #tpu.dot_dimension_numbers<[1], [0], [0], [1], [0, 0, 1, 1], [], []>} : vector<8x50xf32>, vector<50x20xf32>, vector<8x20xf32> -> vector<8x20xf32>
      %55 = arith.addf %47, %54 : vector<8x20xf32>
      %c0_i32_45 = arith.constant 0 : i32
      %56 = arith.addi %arg14, %c0_i32_45 : i32
      %57 = arith.index_cast %56 : i32 to index
      %c2 = arith.constant 2 : index
      %c0_46 = arith.constant 0 : index
      %58 = vector.load %arg11[%57, %c2, %c0_46] : memref<12x12x50xf32, #tpu.memory_space<vmem>>, vector<1x8x50xf32>
      %59 = vector.shape_cast %58 : vector<1x8x50xf32> to vector<8x50xf32>
      %c2_47 = arith.constant 2 : index
      %c0_48 = arith.constant 0 : index
      %c0_49 = arith.constant 0 : index
      %60 = vector.load %arg4[%c2_47, %c0_48, %c0_49] : memref<25x50x20xf32, #tpu.memory_space<vmem>>, vector<1x50x20xf32>
      %61 = vector.shape_cast %60 : vector<1x50x20xf32> to vector<50x20xf32>
      %cst_50 = arith.constant dense<0.000000e+00> : vector<8x20xf32>
      %62 = tpu.matmul %59, %61, %cst_50 {dimension_numbers = #tpu.dot_dimension_numbers<[1], [0], [0], [1], [0, 0, 1, 1], [], []>} : vector<8x50xf32>, vector<50x20xf32>, vector<8x20xf32> -> vector<8x20xf32>
      %63 = arith.addf %55, %62 : vector<8x20xf32>
      %c0_i32_51 = arith.constant 0 : i32
      %64 = arith.addi %arg14, %c0_i32_51 : i32
      %65 = arith.index_cast %64 : i32 to index
      %c3 = arith.constant 3 : index
      %c0_52 = arith.constant 0 : index
      %66 = vector.load %arg11[%65, %c3, %c0_52] : memref<12x12x50xf32, #tpu.memory_space<vmem>>, vector<1x8x50xf32>
      %67 = vector.shape_cast %66 : vector<1x8x50xf32> to vector<8x50xf32>
      %c3_53 = arith.constant 3 : index
      %c0_54 = arith.constant 0 : index
      %c0_55 = arith.constant 0 : index
      %68 = vector.load %arg4[%c3_53, %c0_54, %c0_55] : memref<25x50x20xf32, #tpu.memory_space<vmem>>, vector<1x50x20xf32>
      %69 = vector.shape_cast %68 : vector<1x50x20xf32> to vector<50x20xf32>
      %cst_56 = arith.constant dense<0.000000e+00> : vector<8x20xf32>
      %70 = tpu.matmul %67, %69, %cst_56 {dimension_numbers = #tpu.dot_dimension_numbers<[1], [0], [0], [1], [0, 0, 1, 1], [], []>} : vector<8x50xf32>, vector<50x20xf32>, vector<8x20xf32> -> vector<8x20xf32>
      %71 = arith.addf %63, %70 : vector<8x20xf32>
      %c0_i32_57 = arith.constant 0 : i32
      %72 = arith.addi %arg14, %c0_i32_57 : i32
      %73 = arith.index_cast %72 : i32 to index
      %c4 = arith.constant 4 : index
      %c0_58 = arith.constant 0 : index
      %74 = vector.load %arg11[%73, %c4, %c0_58] : memref<12x12x50xf32, #tpu.memory_space<vmem>>, vector<1x8x50xf32>
      %75 = vector.shape_cast %74 : vector<1x8x50xf32> to vector<8x50xf32>
      %c4_59 = arith.constant 4 : index
      %c0_60 = arith.constant 0 : index
      %c0_61 = arith.constant 0 : index
      %76 = vector.load %arg4[%c4_59, %c0_60, %c0_61] : memref<25x50x20xf32, #tpu.memory_space<vmem>>, vector<1x50x20xf32>
      %77 = vector.shape_cast %76 : vector<1x50x20xf32> to vector<50x20xf32>
      %cst_62 = arith.constant dense<0.000000e+00> : vector<8x20xf32>
      %78 = tpu.matmul %75, %77, %cst_62 {dimension_numbers = #tpu.dot_dimension_numbers<[1], [0], [0], [1], [0, 0, 1, 1], [], []>} : vector<8x50xf32>, vector<50x20xf32>, vector<8x20xf32> -> vector<8x20xf32>
      %79 = arith.addf %71, %78 : vector<8x20xf32>
      %c1_i32_63 = arith.constant 1 : i32
      %80 = arith.addi %arg14, %c1_i32_63 : i32
      %81 = arith.index_cast %80 : i32 to index
      %c0_64 = arith.constant 0 : index
      %c0_65 = arith.constant 0 : index
      %82 = vector.load %arg11[%81, %c0_64, %c0_65] : memref<12x12x50xf32, #tpu.memory_space<vmem>>, vector<1x8x50xf32>
      %83 = vector.shape_cast %82 : vector<1x8x50xf32> to vector<8x50xf32>
      %c5 = arith.constant 5 : index
      %c0_66 = arith.constant 0 : index
      %c0_67 = arith.constant 0 : index
      %84 = vector.load %arg4[%c5, %c0_66, %c0_67] : memref<25x50x20xf32, #tpu.memory_space<vmem>>, vector<1x50x20xf32>
      %85 = vector.shape_cast %84 : vector<1x50x20xf32> to vector<50x20xf32>
      %cst_68 = arith.constant dense<0.000000e+00> : vector<8x20xf32>
      %86 = tpu.matmul %83, %85, %cst_68 {dimension_numbers = #tpu.dot_dimension_numbers<[1], [0], [0], [1], [0, 0, 1, 1], [], []>} : vector<8x50xf32>, vector<50x20xf32>, vector<8x20xf32> -> vector<8x20xf32>
      %87 = arith.addf %79, %86 : vector<8x20xf32>
      %c1_i32_69 = arith.constant 1 : i32
      %88 = arith.addi %arg14, %c1_i32_69 : i32
      %89 = arith.index_cast %88 : i32 to index
      %c1_70 = arith.constant 1 : index
      %c0_71 = arith.constant 0 : index
      %90 = vector.load %arg11[%89, %c1_70, %c0_71] : memref<12x12x50xf32, #tpu.memory_space<vmem>>, vector<1x8x50xf32>
      %91 = vector.shape_cast %90 : vector<1x8x50xf32> to vector<8x50xf32>
      %c6 = arith.constant 6 : index
      %c0_72 = arith.constant 0 : index
      %c0_73 = arith.constant 0 : index
      %92 = vector.load %arg4[%c6, %c0_72, %c0_73] : memref<25x50x20xf32, #tpu.memory_space<vmem>>, vector<1x50x20xf32>
      %93 = vector.shape_cast %92 : vector<1x50x20xf32> to vector<50x20xf32>
      %cst_74 = arith.constant dense<0.000000e+00> : vector<8x20xf32>
      %94 = tpu.matmul %91, %93, %cst_74 {dimension_numbers = #tpu.dot_dimension_numbers<[1], [0], [0], [1], [0, 0, 1, 1], [], []>} : vector<8x50xf32>, vector<50x20xf32>, vector<8x20xf32> -> vector<8x20xf32>
      %95 = arith.addf %87, %94 : vector<8x20xf32>
      %c1_i32_75 = arith.constant 1 : i32
      %96 = arith.addi %arg14, %c1_i32_75 : i32
      %97 = arith.index_cast %96 : i32 to index
      %c2_76 = arith.constant 2 : index
      %c0_77 = arith.constant 0 : index
      %98 = vector.load %arg11[%97, %c2_76, %c0_77] : memref<12x12x50xf32, #tpu.memory_space<vmem>>, vector<1x8x50xf32>
      %99 = vector.shape_cast %98 : vector<1x8x50xf32> to vector<8x50xf32>
      %c7 = arith.constant 7 : index
      %c0_78 = arith.constant 0 : index
      %c0_79 = arith.constant 0 : index
      %100 = vector.load %arg4[%c7, %c0_78, %c0_79] : memref<25x50x20xf32, #tpu.memory_space<vmem>>, vector<1x50x20xf32>
      %101 = vector.shape_cast %100 : vector<1x50x20xf32> to vector<50x20xf32>
      %cst_80 = arith.constant dense<0.000000e+00> : vector<8x20xf32>
      %102 = tpu.matmul %99, %101, %cst_80 {dimension_numbers = #tpu.dot_dimension_numbers<[1], [0], [0], [1], [0, 0, 1, 1], [], []>} : vector<8x50xf32>, vector<50x20xf32>, vector<8x20xf32> -> vector<8x20xf32>
      %103 = arith.addf %95, %102 : vector<8x20xf32>
      %c1_i32_81 = arith.constant 1 : i32
      %104 = arith.addi %arg14, %c1_i32_81 : i32
      %105 = arith.index_cast %104 : i32 to index
      %c3_82 = arith.constant 3 : index
      %c0_83 = arith.constant 0 : index
      %106 = vector.load %arg11[%105, %c3_82, %c0_83] : memref<12x12x50xf32, #tpu.memory_space<vmem>>, vector<1x8x50xf32>
      %107 = vector.shape_cast %106 : vector<1x8x50xf32> to vector<8x50xf32>
      %c8 = arith.constant 8 : index
      %c0_84 = arith.constant 0 : index
      %c0_85 = arith.constant 0 : index
      %108 = vector.load %arg4[%c8, %c0_84, %c0_85] : memref<25x50x20xf32, #tpu.memory_space<vmem>>, vector<1x50x20xf32>
      %109 = vector.shape_cast %108 : vector<1x50x20xf32> to vector<50x20xf32>
      %cst_86 = arith.constant dense<0.000000e+00> : vector<8x20xf32>
      %110 = tpu.matmul %107, %109, %cst_86 {dimension_numbers = #tpu.dot_dimension_numbers<[1], [0], [0], [1], [0, 0, 1, 1], [], []>} : vector<8x50xf32>, vector<50x20xf32>, vector<8x20xf32> -> vector<8x20xf32>
      %111 = arith.addf %103, %110 : vector<8x20xf32>
      %c1_i32_87 = arith.constant 1 : i32
      %112 = arith.addi %arg14, %c1_i32_87 : i32
      %113 = arith.index_cast %112 : i32 to index
      %c4_88 = arith.constant 4 : index
      %c0_89 = arith.constant 0 : index
      %114 = vector.load %arg11[%113, %c4_88, %c0_89] : memref<12x12x50xf32, #tpu.memory_space<vmem>>, vector<1x8x50xf32>
      %115 = vector.shape_cast %114 : vector<1x8x50xf32> to vector<8x50xf32>
      %c9 = arith.constant 9 : index
      %c0_90 = arith.constant 0 : index
      %c0_91 = arith.constant 0 : index
      %116 = vector.load %arg4[%c9, %c0_90, %c0_91] : memref<25x50x20xf32, #tpu.memory_space<vmem>>, vector<1x50x20xf32>
      %117 = vector.shape_cast %116 : vector<1x50x20xf32> to vector<50x20xf32>
      %cst_92 = arith.constant dense<0.000000e+00> : vector<8x20xf32>
      %118 = tpu.matmul %115, %117, %cst_92 {dimension_numbers = #tpu.dot_dimension_numbers<[1], [0], [0], [1], [0, 0, 1, 1], [], []>} : vector<8x50xf32>, vector<50x20xf32>, vector<8x20xf32> -> vector<8x20xf32>
      %119 = arith.addf %111, %118 : vector<8x20xf32>
      %c2_i32_93 = arith.constant 2 : i32
      %120 = arith.addi %arg14, %c2_i32_93 : i32
      %121 = arith.index_cast %120 : i32 to index
      %c0_94 = arith.constant 0 : index
      %c0_95 = arith.constant 0 : index
      %122 = vector.load %arg11[%121, %c0_94, %c0_95] : memref<12x12x50xf32, #tpu.memory_space<vmem>>, vector<1x8x50xf32>
      %123 = vector.shape_cast %122 : vector<1x8x50xf32> to vector<8x50xf32>
      %c10 = arith.constant 10 : index
      %c0_96 = arith.constant 0 : index
      %c0_97 = arith.constant 0 : index
      %124 = vector.load %arg4[%c10, %c0_96, %c0_97] : memref<25x50x20xf32, #tpu.memory_space<vmem>>, vector<1x50x20xf32>
      %125 = vector.shape_cast %124 : vector<1x50x20xf32> to vector<50x20xf32>
      %cst_98 = arith.constant dense<0.000000e+00> : vector<8x20xf32>
      %126 = tpu.matmul %123, %125, %cst_98 {dimension_numbers = #tpu.dot_dimension_numbers<[1], [0], [0], [1], [0, 0, 1, 1], [], []>} : vector<8x50xf32>, vector<50x20xf32>, vector<8x20xf32> -> vector<8x20xf32>
      %127 = arith.addf %119, %126 : vector<8x20xf32>
      %c2_i32_99 = arith.constant 2 : i32
      %128 = arith.addi %arg14, %c2_i32_99 : i32
      %129 = arith.index_cast %128 : i32 to index
      %c1_100 = arith.constant 1 : index
      %c0_101 = arith.constant 0 : index
      %130 = vector.load %arg11[%129, %c1_100, %c0_101] : memref<12x12x50xf32, #tpu.memory_space<vmem>>, vector<1x8x50xf32>
      %131 = vector.shape_cast %130 : vector<1x8x50xf32> to vector<8x50xf32>
      %c11 = arith.constant 11 : index
      %c0_102 = arith.constant 0 : index
      %c0_103 = arith.constant 0 : index
      %132 = vector.load %arg4[%c11, %c0_102, %c0_103] : memref<25x50x20xf32, #tpu.memory_space<vmem>>, vector<1x50x20xf32>
      %133 = vector.shape_cast %132 : vector<1x50x20xf32> to vector<50x20xf32>
      %cst_104 = arith.constant dense<0.000000e+00> : vector<8x20xf32>
      %134 = tpu.matmul %131, %133, %cst_104 {dimension_numbers = #tpu.dot_dimension_numbers<[1], [0], [0], [1], [0, 0, 1, 1], [], []>} : vector<8x50xf32>, vector<50x20xf32>, vector<8x20xf32> -> vector<8x20xf32>
      %135 = arith.addf %127, %134 : vector<8x20xf32>
      %c2_i32_105 = arith.constant 2 : i32
      %136 = arith.addi %arg14, %c2_i32_105 : i32
      %137 = arith.index_cast %136 : i32 to index
      %c2_106 = arith.constant 2 : index
      %c0_107 = arith.constant 0 : index
      %138 = vector.load %arg11[%137, %c2_106, %c0_107] : memref<12x12x50xf32, #tpu.memory_space<vmem>>, vector<1x8x50xf32>
      %139 = vector.shape_cast %138 : vector<1x8x50xf32> to vector<8x50xf32>
      %c12 = arith.constant 12 : index
      %c0_108 = arith.constant 0 : index
      %c0_109 = arith.constant 0 : index
      %140 = vector.load %arg4[%c12, %c0_108, %c0_109] : memref<25x50x20xf32, #tpu.memory_space<vmem>>, vector<1x50x20xf32>
      %141 = vector.shape_cast %140 : vector<1x50x20xf32> to vector<50x20xf32>
      %cst_110 = arith.constant dense<0.000000e+00> : vector<8x20xf32>
      %142 = tpu.matmul %139, %141, %cst_110 {dimension_numbers = #tpu.dot_dimension_numbers<[1], [0], [0], [1], [0, 0, 1, 1], [], []>} : vector<8x50xf32>, vector<50x20xf32>, vector<8x20xf32> -> vector<8x20xf32>
      %143 = arith.addf %135, %142 : vector<8x20xf32>
      %c2_i32_111 = arith.constant 2 : i32
      %144 = arith.addi %arg14, %c2_i32_111 : i32
      %145 = arith.index_cast %144 : i32 to index
      %c3_112 = arith.constant 3 : index
      %c0_113 = arith.constant 0 : index
      %146 = vector.load %arg11[%145, %c3_112, %c0_113] : memref<12x12x50xf32, #tpu.memory_space<vmem>>, vector<1x8x50xf32>
      %147 = vector.shape_cast %146 : vector<1x8x50xf32> to vector<8x50xf32>
      %c13 = arith.constant 13 : index
      %c0_114 = arith.constant 0 : index
      %c0_115 = arith.constant 0 : index
      %148 = vector.load %arg4[%c13, %c0_114, %c0_115] : memref<25x50x20xf32, #tpu.memory_space<vmem>>, vector<1x50x20xf32>
      %149 = vector.shape_cast %148 : vector<1x50x20xf32> to vector<50x20xf32>
      %cst_116 = arith.constant dense<0.000000e+00> : vector<8x20xf32>
      %150 = tpu.matmul %147, %149, %cst_116 {dimension_numbers = #tpu.dot_dimension_numbers<[1], [0], [0], [1], [0, 0, 1, 1], [], []>} : vector<8x50xf32>, vector<50x20xf32>, vector<8x20xf32> -> vector<8x20xf32>
      %151 = arith.addf %143, %150 : vector<8x20xf32>
      %c2_i32_117 = arith.constant 2 : i32
      %152 = arith.addi %arg14, %c2_i32_117 : i32
      %153 = arith.index_cast %152 : i32 to index
      %c4_118 = arith.constant 4 : index
      %c0_119 = arith.constant 0 : index
      %154 = vector.load %arg11[%153, %c4_118, %c0_119] : memref<12x12x50xf32, #tpu.memory_space<vmem>>, vector<1x8x50xf32>
      %155 = vector.shape_cast %154 : vector<1x8x50xf32> to vector<8x50xf32>
      %c14 = arith.constant 14 : index
      %c0_120 = arith.constant 0 : index
      %c0_121 = arith.constant 0 : index
      %156 = vector.load %arg4[%c14, %c0_120, %c0_121] : memref<25x50x20xf32, #tpu.memory_space<vmem>>, vector<1x50x20xf32>
      %157 = vector.shape_cast %156 : vector<1x50x20xf32> to vector<50x20xf32>
      %cst_122 = arith.constant dense<0.000000e+00> : vector<8x20xf32>
      %158 = tpu.matmul %155, %157, %cst_122 {dimension_numbers = #tpu.dot_dimension_numbers<[1], [0], [0], [1], [0, 0, 1, 1], [], []>} : vector<8x50xf32>, vector<50x20xf32>, vector<8x20xf32> -> vector<8x20xf32>
      %159 = arith.addf %151, %158 : vector<8x20xf32>
      %c3_i32 = arith.constant 3 : i32
      %160 = arith.addi %arg14, %c3_i32 : i32
      %161 = arith.index_cast %160 : i32 to index
      %c0_123 = arith.constant 0 : index
      %c0_124 = arith.constant 0 : index
      %162 = vector.load %arg11[%161, %c0_123, %c0_124] : memref<12x12x50xf32, #tpu.memory_space<vmem>>, vector<1x8x50xf32>
      %163 = vector.shape_cast %162 : vector<1x8x50xf32> to vector<8x50xf32>
      %c15 = arith.constant 15 : index
      %c0_125 = arith.constant 0 : index
      %c0_126 = arith.constant 0 : index
      %164 = vector.load %arg4[%c15, %c0_125, %c0_126] : memref<25x50x20xf32, #tpu.memory_space<vmem>>, vector<1x50x20xf32>
      %165 = vector.shape_cast %164 : vector<1x50x20xf32> to vector<50x20xf32>
      %cst_127 = arith.constant dense<0.000000e+00> : vector<8x20xf32>
      %166 = tpu.matmul %163, %165, %cst_127 {dimension_numbers = #tpu.dot_dimension_numbers<[1], [0], [0], [1], [0, 0, 1, 1], [], []>} : vector<8x50xf32>, vector<50x20xf32>, vector<8x20xf32> -> vector<8x20xf32>
      %167 = arith.addf %159, %166 : vector<8x20xf32>
      %c3_i32_128 = arith.constant 3 : i32
      %168 = arith.addi %arg14, %c3_i32_128 : i32
      %169 = arith.index_cast %168 : i32 to index
      %c1_129 = arith.constant 1 : index
      %c0_130 = arith.constant 0 : index
      %170 = vector.load %arg11[%169, %c1_129, %c0_130] : memref<12x12x50xf32, #tpu.memory_space<vmem>>, vector<1x8x50xf32>
      %171 = vector.shape_cast %170 : vector<1x8x50xf32> to vector<8x50xf32>
      %c16 = arith.constant 16 : index
      %c0_131 = arith.constant 0 : index
      %c0_132 = arith.constant 0 : index
      %172 = vector.load %arg4[%c16, %c0_131, %c0_132] : memref<25x50x20xf32, #tpu.memory_space<vmem>>, vector<1x50x20xf32>
      %173 = vector.shape_cast %172 : vector<1x50x20xf32> to vector<50x20xf32>
      %cst_133 = arith.constant dense<0.000000e+00> : vector<8x20xf32>
      %174 = tpu.matmul %171, %173, %cst_133 {dimension_numbers = #tpu.dot_dimension_numbers<[1], [0], [0], [1], [0, 0, 1, 1], [], []>} : vector<8x50xf32>, vector<50x20xf32>, vector<8x20xf32> -> vector<8x20xf32>
      %175 = arith.addf %167, %174 : vector<8x20xf32>
      %c3_i32_134 = arith.constant 3 : i32
      %176 = arith.addi %arg14, %c3_i32_134 : i32
      %177 = arith.index_cast %176 : i32 to index
      %c2_135 = arith.constant 2 : index
      %c0_136 = arith.constant 0 : index
      %178 = vector.load %arg11[%177, %c2_135, %c0_136] : memref<12x12x50xf32, #tpu.memory_space<vmem>>, vector<1x8x50xf32>
      %179 = vector.shape_cast %178 : vector<1x8x50xf32> to vector<8x50xf32>
      %c17 = arith.constant 17 : index
      %c0_137 = arith.constant 0 : index
      %c0_138 = arith.constant 0 : index
      %180 = vector.load %arg4[%c17, %c0_137, %c0_138] : memref<25x50x20xf32, #tpu.memory_space<vmem>>, vector<1x50x20xf32>
      %181 = vector.shape_cast %180 : vector<1x50x20xf32> to vector<50x20xf32>
      %cst_139 = arith.constant dense<0.000000e+00> : vector<8x20xf32>
      %182 = tpu.matmul %179, %181, %cst_139 {dimension_numbers = #tpu.dot_dimension_numbers<[1], [0], [0], [1], [0, 0, 1, 1], [], []>} : vector<8x50xf32>, vector<50x20xf32>, vector<8x20xf32> -> vector<8x20xf32>
      %183 = arith.addf %175, %182 : vector<8x20xf32>
      %c3_i32_140 = arith.constant 3 : i32
      %184 = arith.addi %arg14, %c3_i32_140 : i32
      %185 = arith.index_cast %184 : i32 to index
      %c3_141 = arith.constant 3 : index
      %c0_142 = arith.constant 0 : index
      %186 = vector.load %arg11[%185, %c3_141, %c0_142] : memref<12x12x50xf32, #tpu.memory_space<vmem>>, vector<1x8x50xf32>
      %187 = vector.shape_cast %186 : vector<1x8x50xf32> to vector<8x50xf32>
      %c18 = arith.constant 18 : index
      %c0_143 = arith.constant 0 : index
      %c0_144 = arith.constant 0 : index
      %188 = vector.load %arg4[%c18, %c0_143, %c0_144] : memref<25x50x20xf32, #tpu.memory_space<vmem>>, vector<1x50x20xf32>
      %189 = vector.shape_cast %188 : vector<1x50x20xf32> to vector<50x20xf32>
      %cst_145 = arith.constant dense<0.000000e+00> : vector<8x20xf32>
      %190 = tpu.matmul %187, %189, %cst_145 {dimension_numbers = #tpu.dot_dimension_numbers<[1], [0], [0], [1], [0, 0, 1, 1], [], []>} : vector<8x50xf32>, vector<50x20xf32>, vector<8x20xf32> -> vector<8x20xf32>
      %191 = arith.addf %183, %190 : vector<8x20xf32>
      %c3_i32_146 = arith.constant 3 : i32
      %192 = arith.addi %arg14, %c3_i32_146 : i32
      %193 = arith.index_cast %192 : i32 to index
      %c4_147 = arith.constant 4 : index
      %c0_148 = arith.constant 0 : index
      %194 = vector.load %arg11[%193, %c4_147, %c0_148] : memref<12x12x50xf32, #tpu.memory_space<vmem>>, vector<1x8x50xf32>
      %195 = vector.shape_cast %194 : vector<1x8x50xf32> to vector<8x50xf32>
      %c19 = arith.constant 19 : index
      %c0_149 = arith.constant 0 : index
      %c0_150 = arith.constant 0 : index
      %196 = vector.load %arg4[%c19, %c0_149, %c0_150] : memref<25x50x20xf32, #tpu.memory_space<vmem>>, vector<1x50x20xf32>
      %197 = vector.shape_cast %196 : vector<1x50x20xf32> to vector<50x20xf32>
      %cst_151 = arith.constant dense<0.000000e+00> : vector<8x20xf32>
      %198 = tpu.matmul %195, %197, %cst_151 {dimension_numbers = #tpu.dot_dimension_numbers<[1], [0], [0], [1], [0, 0, 1, 1], [], []>} : vector<8x50xf32>, vector<50x20xf32>, vector<8x20xf32> -> vector<8x20xf32>
      %199 = arith.addf %191, %198 : vector<8x20xf32>
      %c4_i32_152 = arith.constant 4 : i32
      %200 = arith.addi %arg14, %c4_i32_152 : i32
      %201 = arith.index_cast %200 : i32 to index
      %c0_153 = arith.constant 0 : index
      %c0_154 = arith.constant 0 : index
      %202 = vector.load %arg11[%201, %c0_153, %c0_154] : memref<12x12x50xf32, #tpu.memory_space<vmem>>, vector<1x8x50xf32>
      %203 = vector.shape_cast %202 : vector<1x8x50xf32> to vector<8x50xf32>
      %c20 = arith.constant 20 : index
      %c0_155 = arith.constant 0 : index
      %c0_156 = arith.constant 0 : index
      %204 = vector.load %arg4[%c20, %c0_155, %c0_156] : memref<25x50x20xf32, #tpu.memory_space<vmem>>, vector<1x50x20xf32>
      %205 = vector.shape_cast %204 : vector<1x50x20xf32> to vector<50x20xf32>
      %cst_157 = arith.constant dense<0.000000e+00> : vector<8x20xf32>
      %206 = tpu.matmul %203, %205, %cst_157 {dimension_numbers = #tpu.dot_dimension_numbers<[1], [0], [0], [1], [0, 0, 1, 1], [], []>} : vector<8x50xf32>, vector<50x20xf32>, vector<8x20xf32> -> vector<8x20xf32>
      %207 = arith.addf %199, %206 : vector<8x20xf32>
      %c4_i32_158 = arith.constant 4 : i32
      %208 = arith.addi %arg14, %c4_i32_158 : i32
      %209 = arith.index_cast %208 : i32 to index
      %c1_159 = arith.constant 1 : index
      %c0_160 = arith.constant 0 : index
      %210 = vector.load %arg11[%209, %c1_159, %c0_160] : memref<12x12x50xf32, #tpu.memory_space<vmem>>, vector<1x8x50xf32>
      %211 = vector.shape_cast %210 : vector<1x8x50xf32> to vector<8x50xf32>
      %c21 = arith.constant 21 : index
      %c0_161 = arith.constant 0 : index
      %c0_162 = arith.constant 0 : index
      %212 = vector.load %arg4[%c21, %c0_161, %c0_162] : memref<25x50x20xf32, #tpu.memory_space<vmem>>, vector<1x50x20xf32>
      %213 = vector.shape_cast %212 : vector<1x50x20xf32> to vector<50x20xf32>
      %cst_163 = arith.constant dense<0.000000e+00> : vector<8x20xf32>
      %214 = tpu.matmul %211, %213, %cst_163 {dimension_numbers = #tpu.dot_dimension_numbers<[1], [0], [0], [1], [0, 0, 1, 1], [], []>} : vector<8x50xf32>, vector<50x20xf32>, vector<8x20xf32> -> vector<8x20xf32>
      %215 = arith.addf %207, %214 : vector<8x20xf32>
      %c4_i32_164 = arith.constant 4 : i32
      %216 = arith.addi %arg14, %c4_i32_164 : i32
      %217 = arith.index_cast %216 : i32 to index
      %c2_165 = arith.constant 2 : index
      %c0_166 = arith.constant 0 : index
      %218 = vector.load %arg11[%217, %c2_165, %c0_166] : memref<12x12x50xf32, #tpu.memory_space<vmem>>, vector<1x8x50xf32>
      %219 = vector.shape_cast %218 : vector<1x8x50xf32> to vector<8x50xf32>
      %c22 = arith.constant 22 : index
      %c0_167 = arith.constant 0 : index
      %c0_168 = arith.constant 0 : index
      %220 = vector.load %arg4[%c22, %c0_167, %c0_168] : memref<25x50x20xf32, #tpu.memory_space<vmem>>, vector<1x50x20xf32>
      %221 = vector.shape_cast %220 : vector<1x50x20xf32> to vector<50x20xf32>
      %cst_169 = arith.constant dense<0.000000e+00> : vector<8x20xf32>
      %222 = tpu.matmul %219, %221, %cst_169 {dimension_numbers = #tpu.dot_dimension_numbers<[1], [0], [0], [1], [0, 0, 1, 1], [], []>} : vector<8x50xf32>, vector<50x20xf32>, vector<8x20xf32> -> vector<8x20xf32>
      %223 = arith.addf %215, %222 : vector<8x20xf32>
      %c4_i32_170 = arith.constant 4 : i32
      %224 = arith.addi %arg14, %c4_i32_170 : i32
      %225 = arith.index_cast %224 : i32 to index
      %c3_171 = arith.constant 3 : index
      %c0_172 = arith.constant 0 : index
      %226 = vector.load %arg11[%225, %c3_171, %c0_172] : memref<12x12x50xf32, #tpu.memory_space<vmem>>, vector<1x8x50xf32>
      %227 = vector.shape_cast %226 : vector<1x8x50xf32> to vector<8x50xf32>
      %c23 = arith.constant 23 : index
      %c0_173 = arith.constant 0 : index
      %c0_174 = arith.constant 0 : index
      %228 = vector.load %arg4[%c23, %c0_173, %c0_174] : memref<25x50x20xf32, #tpu.memory_space<vmem>>, vector<1x50x20xf32>
      %229 = vector.shape_cast %228 : vector<1x50x20xf32> to vector<50x20xf32>
      %cst_175 = arith.constant dense<0.000000e+00> : vector<8x20xf32>
      %230 = tpu.matmul %227, %229, %cst_175 {dimension_numbers = #tpu.dot_dimension_numbers<[1], [0], [0], [1], [0, 0, 1, 1], [], []>} : vector<8x50xf32>, vector<50x20xf32>, vector<8x20xf32> -> vector<8x20xf32>
      %231 = arith.addf %223, %230 : vector<8x20xf32>
      %c4_i32_176 = arith.constant 4 : i32
      %232 = arith.addi %arg14, %c4_i32_176 : i32
      %233 = arith.index_cast %232 : i32 to index
      %c4_177 = arith.constant 4 : index
      %c0_178 = arith.constant 0 : index
      %234 = vector.load %arg11[%233, %c4_177, %c0_178] : memref<12x12x50xf32, #tpu.memory_space<vmem>>, vector<1x8x50xf32>
      %235 = vector.shape_cast %234 : vector<1x8x50xf32> to vector<8x50xf32>
      %c24 = arith.constant 24 : index
      %c0_179 = arith.constant 0 : index
      %c0_180 = arith.constant 0 : index
      %236 = vector.load %arg4[%c24, %c0_179, %c0_180] : memref<25x50x20xf32, #tpu.memory_space<vmem>>, vector<1x50x20xf32>
      %237 = vector.shape_cast %236 : vector<1x50x20xf32> to vector<50x20xf32>
      %cst_181 = arith.constant dense<0.000000e+00> : vector<8x20xf32>
      %238 = tpu.matmul %235, %237, %cst_181 {dimension_numbers = #tpu.dot_dimension_numbers<[1], [0], [0], [1], [0, 0, 1, 1], [], []>} : vector<8x50xf32>, vector<50x20xf32>, vector<8x20xf32> -> vector<8x20xf32>
      %239 = arith.addf %231, %238 : vector<8x20xf32>
      %240 = vector.broadcast %34 : vector<1x20xf32> to vector<8x20xf32>
      %241 = arith.addf %239, %240 : vector<8x20xf32>
      %cst_182 = arith.constant 0.000000e+00 : f32
      %242 = vector.broadcast %cst_182 : f32 to vector<8x20xf32>
      %243 = arith.maximumf %241, %242 : vector<8x20xf32>
      %244 = arith.index_cast %arg14 : i32 to index
      %c0_183 = arith.constant 0 : index
      %c0_184 = arith.constant 0 : index
      %245 = vector.load %arg12[%244, %c0_183, %c0_184] : memref<8x8x20xf32, #tpu.memory_space<vmem>>, vector<1x8x20xf32>
      %246 = vector.shape_cast %245 : vector<1x8x20xf32> to vector<8x20xf32>
      %247 = vector.shape_cast %243 : vector<8x20xf32> to vector<1x8x20xf32>
      tpu.vector_store %arg12[%244, %c0_183, %c0_184], %247 {strides = array<i32>} : memref<8x8x20xf32, #tpu.memory_space<vmem>>, vector<1x8x20xf32>,
    }
    %c8_i32_21 = arith.constant 8 : i32
    %c0_i32_22 = arith.constant 0 : i32
    %c8_i32_23 = arith.constant 8 : i32
    %36 = arith.addi %c0_i32_22, %c8_i32_23 : i32
    %c1_i32_24 = arith.constant 1 : i32
    scf.for %arg14 = %c0_i32_22 to %36 step %c1_i32_24  : i32 {
      %39 = arith.index_cast %arg14 : i32 to index
      %c0_31 = arith.constant 0 : index
      %c0_32 = arith.constant 0 : index
      %40 = vector.load %arg12[%39, %c0_31, %c0_32] : memref<8x8x20xf32, #tpu.memory_space<vmem>>, vector<1x8x20xf32>
      %41 = vector.shape_cast %40 : vector<1x8x20xf32> to vector<8x20xf32>
      %cst_33 = arith.constant dense<0.000000e+00> : vector<16x20xf32>
      %42 = tpu.matmul %30, %41, %cst_33 {dimension_numbers = #tpu.dot_dimension_numbers<[1], [0], [0], [1], [0, 0, 1, 1], [], []>} : vector<16x8xf32>, vector<8x20xf32>, vector<16x20xf32> -> vector<16x20xf32>
      %c2_i32_34 = arith.constant 2 : i32
      %43 = arith.muli %c2_i32_34, %arg14 : i32
      %44 = arith.index_cast %43 : i32 to index
      %c0_35 = arith.constant 0 : index
      %c0_36 = arith.constant 0 : index
      %45 = vector.load %arg10[%44, %c0_35, %c0_36] : memref<16x16x20xf32, #tpu.memory_space<vmem>>, vector<1x16x20xf32>
      %46 = vector.shape_cast %45 : vector<1x16x20xf32> to vector<16x20xf32>
      %47 = arith.mulf %42, %46 : vector<16x20xf32>
      %c4_i32_37 = arith.constant 4 : i32
      %48 = arith.addi %c4_i32_37, %43 : i32
      %49 = arith.index_cast %48 : i32 to index
      %c4 = arith.constant 4 : index
      %c0_38 = arith.constant 0 : index
      %50 = vector.load %arg13[%49, %c4, %c0_38] : memref<24x24x20xf32, #tpu.memory_space<vmem>>, vector<1x16x20xf32>
      %51 = vector.shape_cast %50 : vector<1x16x20xf32> to vector<16x20xf32>
      %52 = vector.shape_cast %47 : vector<16x20xf32> to vector<1x16x20xf32>
      tpu.vector_store %arg13[%49, %c4, %c0_38], %52 {strides = array<i32>} : memref<24x24x20xf32, #tpu.memory_space<vmem>>, vector<1x16x20xf32>,
      %c1_i32_39 = arith.constant 1 : i32
      %53 = arith.addi %43, %c1_i32_39 : i32
      %54 = arith.index_cast %53 : i32 to index
      %c0_40 = arith.constant 0 : index
      %c0_41 = arith.constant 0 : index
      %55 = vector.load %arg10[%54, %c0_40, %c0_41] : memref<16x16x20xf32, #tpu.memory_space<vmem>>, vector<1x16x20xf32>
      %56 = vector.shape_cast %55 : vector<1x16x20xf32> to vector<16x20xf32>
      %57 = arith.mulf %42, %56 : vector<16x20xf32>
      %c4_i32_42 = arith.constant 4 : i32
      %58 = arith.addi %c4_i32_42, %43 : i32
      %c1_i32_43 = arith.constant 1 : i32
      %59 = arith.addi %58, %c1_i32_43 : i32
      %60 = arith.index_cast %59 : i32 to index
      %c4_44 = arith.constant 4 : index
      %c0_45 = arith.constant 0 : index
      %61 = vector.load %arg13[%60, %c4_44, %c0_45] : memref<24x24x20xf32, #tpu.memory_space<vmem>>, vector<1x16x20xf32>
      %62 = vector.shape_cast %61 : vector<1x16x20xf32> to vector<16x20xf32>
      %63 = vector.shape_cast %57 : vector<16x20xf32> to vector<1x16x20xf32>
      tpu.vector_store %arg13[%60, %c4_44, %c0_45], %63 {strides = array<i32>} : memref<24x24x20xf32, #tpu.memory_space<vmem>>, vector<1x16x20xf32>,
    }
    %c8_i32_25 = arith.constant 8 : i32
    %c0_26 = arith.constant 0 : index
    %c0_27 = arith.constant 0 : index
    %37 = vector.load %arg7[%c0_26, %c0_27] : memref<1x8xf32, #tpu.memory_space<vmem>>, vector<1x8xf32>
    %c0_i32_28 = arith.constant 0 : i32
    %c20_i32 = arith.constant 20 : i32
    %38 = arith.addi %c0_i32_28, %c20_i32 : i32
    %c1_i32_29 = arith.constant 1 : i32
    scf.for %arg14 = %c0_i32_28 to %38 step %c1_i32_29  : i32 {
      %cst_31 = arith.constant 0.000000e+00 : f32
      %39 = vector.broadcast %cst_31 : f32 to vector<20x8xf32>
      %c0_i32_32 = arith.constant 0 : i32
      %40 = arith.addi %arg14, %c0_i32_32 : i32
      %41 = arith.index_cast %40 : i32 to index
      %c0_33 = arith.constant 0 : index
      %c0_34 = arith.constant 0 : index
      %42 = vector.load %arg13[%41, %c0_33, %c0_34] : memref<24x24x20xf32, #tpu.memory_space<vmem>>, vector<1x20x20xf32>
      %43 = vector.shape_cast %42 : vector<1x20x20xf32> to vector<20x20xf32>
      %c0_35 = arith.constant 0 : index
      %c0_36 = arith.constant 0 : index
      %c0_37 = arith.constant 0 : index
      %44 = vector.load %arg6[%c0_35, %c0_36, %c0_37] : memref<25x20x8xf32, #tpu.memory_space<vmem>>, vector<1x20x8xf32>
      %45 = vector.shape_cast %44 : vector<1x20x8xf32> to vector<20x8xf32>
      %cst_38 = arith.constant dense<0.000000e+00> : vector<20x8xf32>
      %46 = tpu.matmul %43, %45, %cst_38 {dimension_numbers = #tpu.dot_dimension_numbers<[1], [0], [0], [1], [0, 0, 1, 1], [], []>} : vector<20x20xf32>, vector<20x8xf32>, vector<20x8xf32> -> vector<20x8xf32>
      %47 = arith.addf %39, %46 : vector<20x8xf32>
      %c0_i32_39 = arith.constant 0 : i32
      %48 = arith.addi %arg14, %c0_i32_39 : i32
      %49 = arith.index_cast %48 : i32 to index
      %c1 = arith.constant 1 : index
      %c0_40 = arith.constant 0 : index
      %50 = vector.load %arg13[%49, %c1, %c0_40] : memref<24x24x20xf32, #tpu.memory_space<vmem>>, vector<1x20x20xf32>
      %51 = vector.shape_cast %50 : vector<1x20x20xf32> to vector<20x20xf32>
      %c1_41 = arith.constant 1 : index
      %c0_42 = arith.constant 0 : index
      %c0_43 = arith.constant 0 : index
      %52 = vector.load %arg6[%c1_41, %c0_42, %c0_43] : memref<25x20x8xf32, #tpu.memory_space<vmem>>, vector<1x20x8xf32>
      %53 = vector.shape_cast %52 : vector<1x20x8xf32> to vector<20x8xf32>
      %cst_44 = arith.constant dense<0.000000e+00> : vector<20x8xf32>
      %54 = tpu.matmul %51, %53, %cst_44 {dimension_numbers = #tpu.dot_dimension_numbers<[1], [0], [0], [1], [0, 0, 1, 1], [], []>} : vector<20x20xf32>, vector<20x8xf32>, vector<20x8xf32> -> vector<20x8xf32>
      %55 = arith.addf %47, %54 : vector<20x8xf32>
      %c0_i32_45 = arith.constant 0 : i32
      %56 = arith.addi %arg14, %c0_i32_45 : i32
      %57 = arith.index_cast %56 : i32 to index
      %c2 = arith.constant 2 : index
      %c0_46 = arith.constant 0 : index
      %58 = vector.load %arg13[%57, %c2, %c0_46] : memref<24x24x20xf32, #tpu.memory_space<vmem>>, vector<1x20x20xf32>
      %59 = vector.shape_cast %58 : vector<1x20x20xf32> to vector<20x20xf32>
      %c2_47 = arith.constant 2 : index
      %c0_48 = arith.constant 0 : index
      %c0_49 = arith.constant 0 : index
      %60 = vector.load %arg6[%c2_47, %c0_48, %c0_49] : memref<25x20x8xf32, #tpu.memory_space<vmem>>, vector<1x20x8xf32>
      %61 = vector.shape_cast %60 : vector<1x20x8xf32> to vector<20x8xf32>
      %cst_50 = arith.constant dense<0.000000e+00> : vector<20x8xf32>
      %62 = tpu.matmul %59, %61, %cst_50 {dimension_numbers = #tpu.dot_dimension_numbers<[1], [0], [0], [1], [0, 0, 1, 1], [], []>} : vector<20x20xf32>, vector<20x8xf32>, vector<20x8xf32> -> vector<20x8xf32>
      %63 = arith.addf %55, %62 : vector<20x8xf32>
      %c0_i32_51 = arith.constant 0 : i32
      %64 = arith.addi %arg14, %c0_i32_51 : i32
      %65 = arith.index_cast %64 : i32 to index
      %c3 = arith.constant 3 : index
      %c0_52 = arith.constant 0 : index
      %66 = vector.load %arg13[%65, %c3, %c0_52] : memref<24x24x20xf32, #tpu.memory_space<vmem>>, vector<1x20x20xf32>
      %67 = vector.shape_cast %66 : vector<1x20x20xf32> to vector<20x20xf32>
      %c3_53 = arith.constant 3 : index
      %c0_54 = arith.constant 0 : index
      %c0_55 = arith.constant 0 : index
      %68 = vector.load %arg6[%c3_53, %c0_54, %c0_55] : memref<25x20x8xf32, #tpu.memory_space<vmem>>, vector<1x20x8xf32>
      %69 = vector.shape_cast %68 : vector<1x20x8xf32> to vector<20x8xf32>
      %cst_56 = arith.constant dense<0.000000e+00> : vector<20x8xf32>
      %70 = tpu.matmul %67, %69, %cst_56 {dimension_numbers = #tpu.dot_dimension_numbers<[1], [0], [0], [1], [0, 0, 1, 1], [], []>} : vector<20x20xf32>, vector<20x8xf32>, vector<20x8xf32> -> vector<20x8xf32>
      %71 = arith.addf %63, %70 : vector<20x8xf32>
      %c0_i32_57 = arith.constant 0 : i32
      %72 = arith.addi %arg14, %c0_i32_57 : i32
      %73 = arith.index_cast %72 : i32 to index
      %c4 = arith.constant 4 : index
      %c0_58 = arith.constant 0 : index
      %74 = vector.load %arg13[%73, %c4, %c0_58] : memref<24x24x20xf32, #tpu.memory_space<vmem>>, vector<1x20x20xf32>
      %75 = vector.shape_cast %74 : vector<1x20x20xf32> to vector<20x20xf32>
      %c4_59 = arith.constant 4 : index
      %c0_60 = arith.constant 0 : index
      %c0_61 = arith.constant 0 : index
      %76 = vector.load %arg6[%c4_59, %c0_60, %c0_61] : memref<25x20x8xf32, #tpu.memory_space<vmem>>, vector<1x20x8xf32>
      %77 = vector.shape_cast %76 : vector<1x20x8xf32> to vector<20x8xf32>
      %cst_62 = arith.constant dense<0.000000e+00> : vector<20x8xf32>
      %78 = tpu.matmul %75, %77, %cst_62 {dimension_numbers = #tpu.dot_dimension_numbers<[1], [0], [0], [1], [0, 0, 1, 1], [], []>} : vector<20x20xf32>, vector<20x8xf32>, vector<20x8xf32> -> vector<20x8xf32>
      %79 = arith.addf %71, %78 : vector<20x8xf32>
      %c1_i32_63 = arith.constant 1 : i32
      %80 = arith.addi %arg14, %c1_i32_63 : i32
      %81 = arith.index_cast %80 : i32 to index
      %c0_64 = arith.constant 0 : index
      %c0_65 = arith.constant 0 : index
      %82 = vector.load %arg13[%81, %c0_64, %c0_65] : memref<24x24x20xf32, #tpu.memory_space<vmem>>, vector<1x20x20xf32>
      %83 = vector.shape_cast %82 : vector<1x20x20xf32> to vector<20x20xf32>
      %c5 = arith.constant 5 : index
      %c0_66 = arith.constant 0 : index
      %c0_67 = arith.constant 0 : index
      %84 = vector.load %arg6[%c5, %c0_66, %c0_67] : memref<25x20x8xf32, #tpu.memory_space<vmem>>, vector<1x20x8xf32>
      %85 = vector.shape_cast %84 : vector<1x20x8xf32> to vector<20x8xf32>
      %cst_68 = arith.constant dense<0.000000e+00> : vector<20x8xf32>
      %86 = tpu.matmul %83, %85, %cst_68 {dimension_numbers = #tpu.dot_dimension_numbers<[1], [0], [0], [1], [0, 0, 1, 1], [], []>} : vector<20x20xf32>, vector<20x8xf32>, vector<20x8xf32> -> vector<20x8xf32>
      %87 = arith.addf %79, %86 : vector<20x8xf32>
      %c1_i32_69 = arith.constant 1 : i32
      %88 = arith.addi %arg14, %c1_i32_69 : i32
      %89 = arith.index_cast %88 : i32 to index
      %c1_70 = arith.constant 1 : index
      %c0_71 = arith.constant 0 : index
      %90 = vector.load %arg13[%89, %c1_70, %c0_71] : memref<24x24x20xf32, #tpu.memory_space<vmem>>, vector<1x20x20xf32>
      %91 = vector.shape_cast %90 : vector<1x20x20xf32> to vector<20x20xf32>
      %c6 = arith.constant 6 : index
      %c0_72 = arith.constant 0 : index
      %c0_73 = arith.constant 0 : index
      %92 = vector.load %arg6[%c6, %c0_72, %c0_73] : memref<25x20x8xf32, #tpu.memory_space<vmem>>, vector<1x20x8xf32>
      %93 = vector.shape_cast %92 : vector<1x20x8xf32> to vector<20x8xf32>
      %cst_74 = arith.constant dense<0.000000e+00> : vector<20x8xf32>
      %94 = tpu.matmul %91, %93, %cst_74 {dimension_numbers = #tpu.dot_dimension_numbers<[1], [0], [0], [1], [0, 0, 1, 1], [], []>} : vector<20x20xf32>, vector<20x8xf32>, vector<20x8xf32> -> vector<20x8xf32>
      %95 = arith.addf %87, %94 : vector<20x8xf32>
      %c1_i32_75 = arith.constant 1 : i32
      %96 = arith.addi %arg14, %c1_i32_75 : i32
      %97 = arith.index_cast %96 : i32 to index
      %c2_76 = arith.constant 2 : index
      %c0_77 = arith.constant 0 : index
      %98 = vector.load %arg13[%97, %c2_76, %c0_77] : memref<24x24x20xf32, #tpu.memory_space<vmem>>, vector<1x20x20xf32>
      %99 = vector.shape_cast %98 : vector<1x20x20xf32> to vector<20x20xf32>
      %c7 = arith.constant 7 : index
      %c0_78 = arith.constant 0 : index
      %c0_79 = arith.constant 0 : index
      %100 = vector.load %arg6[%c7, %c0_78, %c0_79] : memref<25x20x8xf32, #tpu.memory_space<vmem>>, vector<1x20x8xf32>
      %101 = vector.shape_cast %100 : vector<1x20x8xf32> to vector<20x8xf32>
      %cst_80 = arith.constant dense<0.000000e+00> : vector<20x8xf32>
      %102 = tpu.matmul %99, %101, %cst_80 {dimension_numbers = #tpu.dot_dimension_numbers<[1], [0], [0], [1], [0, 0, 1, 1], [], []>} : vector<20x20xf32>, vector<20x8xf32>, vector<20x8xf32> -> vector<20x8xf32>
      %103 = arith.addf %95, %102 : vector<20x8xf32>
      %c1_i32_81 = arith.constant 1 : i32
      %104 = arith.addi %arg14, %c1_i32_81 : i32
      %105 = arith.index_cast %104 : i32 to index
      %c3_82 = arith.constant 3 : index
      %c0_83 = arith.constant 0 : index
      %106 = vector.load %arg13[%105, %c3_82, %c0_83] : memref<24x24x20xf32, #tpu.memory_space<vmem>>, vector<1x20x20xf32>
      %107 = vector.shape_cast %106 : vector<1x20x20xf32> to vector<20x20xf32>
      %c8 = arith.constant 8 : index
      %c0_84 = arith.constant 0 : index
      %c0_85 = arith.constant 0 : index
      %108 = vector.load %arg6[%c8, %c0_84, %c0_85] : memref<25x20x8xf32, #tpu.memory_space<vmem>>, vector<1x20x8xf32>
      %109 = vector.shape_cast %108 : vector<1x20x8xf32> to vector<20x8xf32>
      %cst_86 = arith.constant dense<0.000000e+00> : vector<20x8xf32>
      %110 = tpu.matmul %107, %109, %cst_86 {dimension_numbers = #tpu.dot_dimension_numbers<[1], [0], [0], [1], [0, 0, 1, 1], [], []>} : vector<20x20xf32>, vector<20x8xf32>, vector<20x8xf32> -> vector<20x8xf32>
      %111 = arith.addf %103, %110 : vector<20x8xf32>
      %c1_i32_87 = arith.constant 1 : i32
      %112 = arith.addi %arg14, %c1_i32_87 : i32
      %113 = arith.index_cast %112 : i32 to index
      %c4_88 = arith.constant 4 : index
      %c0_89 = arith.constant 0 : index
      %114 = vector.load %arg13[%113, %c4_88, %c0_89] : memref<24x24x20xf32, #tpu.memory_space<vmem>>, vector<1x20x20xf32>
      %115 = vector.shape_cast %114 : vector<1x20x20xf32> to vector<20x20xf32>
      %c9 = arith.constant 9 : index
      %c0_90 = arith.constant 0 : index
      %c0_91 = arith.constant 0 : index
      %116 = vector.load %arg6[%c9, %c0_90, %c0_91] : memref<25x20x8xf32, #tpu.memory_space<vmem>>, vector<1x20x8xf32>
      %117 = vector.shape_cast %116 : vector<1x20x8xf32> to vector<20x8xf32>
      %cst_92 = arith.constant dense<0.000000e+00> : vector<20x8xf32>
      %118 = tpu.matmul %115, %117, %cst_92 {dimension_numbers = #tpu.dot_dimension_numbers<[1], [0], [0], [1], [0, 0, 1, 1], [], []>} : vector<20x20xf32>, vector<20x8xf32>, vector<20x8xf32> -> vector<20x8xf32>
      %119 = arith.addf %111, %118 : vector<20x8xf32>
      %c2_i32_93 = arith.constant 2 : i32
      %120 = arith.addi %arg14, %c2_i32_93 : i32
      %121 = arith.index_cast %120 : i32 to index
      %c0_94 = arith.constant 0 : index
      %c0_95 = arith.constant 0 : index
      %122 = vector.load %arg13[%121, %c0_94, %c0_95] : memref<24x24x20xf32, #tpu.memory_space<vmem>>, vector<1x20x20xf32>
      %123 = vector.shape_cast %122 : vector<1x20x20xf32> to vector<20x20xf32>
      %c10 = arith.constant 10 : index
      %c0_96 = arith.constant 0 : index
      %c0_97 = arith.constant 0 : index
      %124 = vector.load %arg6[%c10, %c0_96, %c0_97] : memref<25x20x8xf32, #tpu.memory_space<vmem>>, vector<1x20x8xf32>
      %125 = vector.shape_cast %124 : vector<1x20x8xf32> to vector<20x8xf32>
      %cst_98 = arith.constant dense<0.000000e+00> : vector<20x8xf32>
      %126 = tpu.matmul %123, %125, %cst_98 {dimension_numbers = #tpu.dot_dimension_numbers<[1], [0], [0], [1], [0, 0, 1, 1], [], []>} : vector<20x20xf32>, vector<20x8xf32>, vector<20x8xf32> -> vector<20x8xf32>
      %127 = arith.addf %119, %126 : vector<20x8xf32>
      %c2_i32_99 = arith.constant 2 : i32
      %128 = arith.addi %arg14, %c2_i32_99 : i32
      %129 = arith.index_cast %128 : i32 to index
      %c1_100 = arith.constant 1 : index
      %c0_101 = arith.constant 0 : index
      %130 = vector.load %arg13[%129, %c1_100, %c0_101] : memref<24x24x20xf32, #tpu.memory_space<vmem>>, vector<1x20x20xf32>
      %131 = vector.shape_cast %130 : vector<1x20x20xf32> to vector<20x20xf32>
      %c11 = arith.constant 11 : index
      %c0_102 = arith.constant 0 : index
      %c0_103 = arith.constant 0 : index
      %132 = vector.load %arg6[%c11, %c0_102, %c0_103] : memref<25x20x8xf32, #tpu.memory_space<vmem>>, vector<1x20x8xf32>
      %133 = vector.shape_cast %132 : vector<1x20x8xf32> to vector<20x8xf32>
      %cst_104 = arith.constant dense<0.000000e+00> : vector<20x8xf32>
      %134 = tpu.matmul %131, %133, %cst_104 {dimension_numbers = #tpu.dot_dimension_numbers<[1], [0], [0], [1], [0, 0, 1, 1], [], []>} : vector<20x20xf32>, vector<20x8xf32>, vector<20x8xf32> -> vector<20x8xf32>
      %135 = arith.addf %127, %134 : vector<20x8xf32>
      %c2_i32_105 = arith.constant 2 : i32
      %136 = arith.addi %arg14, %c2_i32_105 : i32
      %137 = arith.index_cast %136 : i32 to index
      %c2_106 = arith.constant 2 : index
      %c0_107 = arith.constant 0 : index
      %138 = vector.load %arg13[%137, %c2_106, %c0_107] : memref<24x24x20xf32, #tpu.memory_space<vmem>>, vector<1x20x20xf32>
      %139 = vector.shape_cast %138 : vector<1x20x20xf32> to vector<20x20xf32>
      %c12 = arith.constant 12 : index
      %c0_108 = arith.constant 0 : index
      %c0_109 = arith.constant 0 : index
      %140 = vector.load %arg6[%c12, %c0_108, %c0_109] : memref<25x20x8xf32, #tpu.memory_space<vmem>>, vector<1x20x8xf32>
      %141 = vector.shape_cast %140 : vector<1x20x8xf32> to vector<20x8xf32>
      %cst_110 = arith.constant dense<0.000000e+00> : vector<20x8xf32>
      %142 = tpu.matmul %139, %141, %cst_110 {dimension_numbers = #tpu.dot_dimension_numbers<[1], [0], [0], [1], [0, 0, 1, 1], [], []>} : vector<20x20xf32>, vector<20x8xf32>, vector<20x8xf32> -> vector<20x8xf32>
      %143 = arith.addf %135, %142 : vector<20x8xf32>
      %c2_i32_111 = arith.constant 2 : i32
      %144 = arith.addi %arg14, %c2_i32_111 : i32
      %145 = arith.index_cast %144 : i32 to index
      %c3_112 = arith.constant 3 : index
      %c0_113 = arith.constant 0 : index
      %146 = vector.load %arg13[%145, %c3_112, %c0_113] : memref<24x24x20xf32, #tpu.memory_space<vmem>>, vector<1x20x20xf32>
      %147 = vector.shape_cast %146 : vector<1x20x20xf32> to vector<20x20xf32>
      %c13 = arith.constant 13 : index
      %c0_114 = arith.constant 0 : index
      %c0_115 = arith.constant 0 : index
      %148 = vector.load %arg6[%c13, %c0_114, %c0_115] : memref<25x20x8xf32, #tpu.memory_space<vmem>>, vector<1x20x8xf32>
      %149 = vector.shape_cast %148 : vector<1x20x8xf32> to vector<20x8xf32>
      %cst_116 = arith.constant dense<0.000000e+00> : vector<20x8xf32>
      %150 = tpu.matmul %147, %149, %cst_116 {dimension_numbers = #tpu.dot_dimension_numbers<[1], [0], [0], [1], [0, 0, 1, 1], [], []>} : vector<20x20xf32>, vector<20x8xf32>, vector<20x8xf32> -> vector<20x8xf32>
      %151 = arith.addf %143, %150 : vector<20x8xf32>
      %c2_i32_117 = arith.constant 2 : i32
      %152 = arith.addi %arg14, %c2_i32_117 : i32
      %153 = arith.index_cast %152 : i32 to index
      %c4_118 = arith.constant 4 : index
      %c0_119 = arith.constant 0 : index
      %154 = vector.load %arg13[%153, %c4_118, %c0_119] : memref<24x24x20xf32, #tpu.memory_space<vmem>>, vector<1x20x20xf32>
      %155 = vector.shape_cast %154 : vector<1x20x20xf32> to vector<20x20xf32>
      %c14 = arith.constant 14 : index
      %c0_120 = arith.constant 0 : index
      %c0_121 = arith.constant 0 : index
      %156 = vector.load %arg6[%c14, %c0_120, %c0_121] : memref<25x20x8xf32, #tpu.memory_space<vmem>>, vector<1x20x8xf32>
      %157 = vector.shape_cast %156 : vector<1x20x8xf32> to vector<20x8xf32>
      %cst_122 = arith.constant dense<0.000000e+00> : vector<20x8xf32>
      %158 = tpu.matmul %155, %157, %cst_122 {dimension_numbers = #tpu.dot_dimension_numbers<[1], [0], [0], [1], [0, 0, 1, 1], [], []>} : vector<20x20xf32>, vector<20x8xf32>, vector<20x8xf32> -> vector<20x8xf32>
      %159 = arith.addf %151, %158 : vector<20x8xf32>
      %c3_i32 = arith.constant 3 : i32
      %160 = arith.addi %arg14, %c3_i32 : i32
      %161 = arith.index_cast %160 : i32 to index
      %c0_123 = arith.constant 0 : index
      %c0_124 = arith.constant 0 : index
      %162 = vector.load %arg13[%161, %c0_123, %c0_124] : memref<24x24x20xf32, #tpu.memory_space<vmem>>, vector<1x20x20xf32>
      %163 = vector.shape_cast %162 : vector<1x20x20xf32> to vector<20x20xf32>
      %c15 = arith.constant 15 : index
      %c0_125 = arith.constant 0 : index
      %c0_126 = arith.constant 0 : index
      %164 = vector.load %arg6[%c15, %c0_125, %c0_126] : memref<25x20x8xf32, #tpu.memory_space<vmem>>, vector<1x20x8xf32>
      %165 = vector.shape_cast %164 : vector<1x20x8xf32> to vector<20x8xf32>
      %cst_127 = arith.constant dense<0.000000e+00> : vector<20x8xf32>
      %166 = tpu.matmul %163, %165, %cst_127 {dimension_numbers = #tpu.dot_dimension_numbers<[1], [0], [0], [1], [0, 0, 1, 1], [], []>} : vector<20x20xf32>, vector<20x8xf32>, vector<20x8xf32> -> vector<20x8xf32>
      %167 = arith.addf %159, %166 : vector<20x8xf32>
      %c3_i32_128 = arith.constant 3 : i32
      %168 = arith.addi %arg14, %c3_i32_128 : i32
      %169 = arith.index_cast %168 : i32 to index
      %c1_129 = arith.constant 1 : index
      %c0_130 = arith.constant 0 : index
      %170 = vector.load %arg13[%169, %c1_129, %c0_130] : memref<24x24x20xf32, #tpu.memory_space<vmem>>, vector<1x20x20xf32>
      %171 = vector.shape_cast %170 : vector<1x20x20xf32> to vector<20x20xf32>
      %c16 = arith.constant 16 : index
      %c0_131 = arith.constant 0 : index
      %c0_132 = arith.constant 0 : index
      %172 = vector.load %arg6[%c16, %c0_131, %c0_132] : memref<25x20x8xf32, #tpu.memory_space<vmem>>, vector<1x20x8xf32>
      %173 = vector.shape_cast %172 : vector<1x20x8xf32> to vector<20x8xf32>
      %cst_133 = arith.constant dense<0.000000e+00> : vector<20x8xf32>
      %174 = tpu.matmul %171, %173, %cst_133 {dimension_numbers = #tpu.dot_dimension_numbers<[1], [0], [0], [1], [0, 0, 1, 1], [], []>} : vector<20x20xf32>, vector<20x8xf32>, vector<20x8xf32> -> vector<20x8xf32>
      %175 = arith.addf %167, %174 : vector<20x8xf32>
      %c3_i32_134 = arith.constant 3 : i32
      %176 = arith.addi %arg14, %c3_i32_134 : i32
      %177 = arith.index_cast %176 : i32 to index
      %c2_135 = arith.constant 2 : index
      %c0_136 = arith.constant 0 : index
      %178 = vector.load %arg13[%177, %c2_135, %c0_136] : memref<24x24x20xf32, #tpu.memory_space<vmem>>, vector<1x20x20xf32>
      %179 = vector.shape_cast %178 : vector<1x20x20xf32> to vector<20x20xf32>
      %c17 = arith.constant 17 : index
      %c0_137 = arith.constant 0 : index
      %c0_138 = arith.constant 0 : index
      %180 = vector.load %arg6[%c17, %c0_137, %c0_138] : memref<25x20x8xf32, #tpu.memory_space<vmem>>, vector<1x20x8xf32>
      %181 = vector.shape_cast %180 : vector<1x20x8xf32> to vector<20x8xf32>
      %cst_139 = arith.constant dense<0.000000e+00> : vector<20x8xf32>
      %182 = tpu.matmul %179, %181, %cst_139 {dimension_numbers = #tpu.dot_dimension_numbers<[1], [0], [0], [1], [0, 0, 1, 1], [], []>} : vector<20x20xf32>, vector<20x8xf32>, vector<20x8xf32> -> vector<20x8xf32>
      %183 = arith.addf %175, %182 : vector<20x8xf32>
      %c3_i32_140 = arith.constant 3 : i32
      %184 = arith.addi %arg14, %c3_i32_140 : i32
      %185 = arith.index_cast %184 : i32 to index
      %c3_141 = arith.constant 3 : index
      %c0_142 = arith.constant 0 : index
      %186 = vector.load %arg13[%185, %c3_141, %c0_142] : memref<24x24x20xf32, #tpu.memory_space<vmem>>, vector<1x20x20xf32>
      %187 = vector.shape_cast %186 : vector<1x20x20xf32> to vector<20x20xf32>
      %c18 = arith.constant 18 : index
      %c0_143 = arith.constant 0 : index
      %c0_144 = arith.constant 0 : index
      %188 = vector.load %arg6[%c18, %c0_143, %c0_144] : memref<25x20x8xf32, #tpu.memory_space<vmem>>, vector<1x20x8xf32>
      %189 = vector.shape_cast %188 : vector<1x20x8xf32> to vector<20x8xf32>
      %cst_145 = arith.constant dense<0.000000e+00> : vector<20x8xf32>
      %190 = tpu.matmul %187, %189, %cst_145 {dimension_numbers = #tpu.dot_dimension_numbers<[1], [0], [0], [1], [0, 0, 1, 1], [], []>} : vector<20x20xf32>, vector<20x8xf32>, vector<20x8xf32> -> vector<20x8xf32>
      %191 = arith.addf %183, %190 : vector<20x8xf32>
      %c3_i32_146 = arith.constant 3 : i32
      %192 = arith.addi %arg14, %c3_i32_146 : i32
      %193 = arith.index_cast %192 : i32 to index
      %c4_147 = arith.constant 4 : index
      %c0_148 = arith.constant 0 : index
      %194 = vector.load %arg13[%193, %c4_147, %c0_148] : memref<24x24x20xf32, #tpu.memory_space<vmem>>, vector<1x20x20xf32>
      %195 = vector.shape_cast %194 : vector<1x20x20xf32> to vector<20x20xf32>
      %c19 = arith.constant 19 : index
      %c0_149 = arith.constant 0 : index
      %c0_150 = arith.constant 0 : index
      %196 = vector.load %arg6[%c19, %c0_149, %c0_150] : memref<25x20x8xf32, #tpu.memory_space<vmem>>, vector<1x20x8xf32>
      %197 = vector.shape_cast %196 : vector<1x20x8xf32> to vector<20x8xf32>
      %cst_151 = arith.constant dense<0.000000e+00> : vector<20x8xf32>
      %198 = tpu.matmul %195, %197, %cst_151 {dimension_numbers = #tpu.dot_dimension_numbers<[1], [0], [0], [1], [0, 0, 1, 1], [], []>} : vector<20x20xf32>, vector<20x8xf32>, vector<20x8xf32> -> vector<20x8xf32>
      %199 = arith.addf %191, %198 : vector<20x8xf32>
      %c4_i32_152 = arith.constant 4 : i32
      %200 = arith.addi %arg14, %c4_i32_152 : i32
      %201 = arith.index_cast %200 : i32 to index
      %c0_153 = arith.constant 0 : index
      %c0_154 = arith.constant 0 : index
      %202 = vector.load %arg13[%201, %c0_153, %c0_154] : memref<24x24x20xf32, #tpu.memory_space<vmem>>, vector<1x20x20xf32>
      %203 = vector.shape_cast %202 : vector<1x20x20xf32> to vector<20x20xf32>
      %c20 = arith.constant 20 : index
      %c0_155 = arith.constant 0 : index
      %c0_156 = arith.constant 0 : index
      %204 = vector.load %arg6[%c20, %c0_155, %c0_156] : memref<25x20x8xf32, #tpu.memory_space<vmem>>, vector<1x20x8xf32>
      %205 = vector.shape_cast %204 : vector<1x20x8xf32> to vector<20x8xf32>
      %cst_157 = arith.constant dense<0.000000e+00> : vector<20x8xf32>
      %206 = tpu.matmul %203, %205, %cst_157 {dimension_numbers = #tpu.dot_dimension_numbers<[1], [0], [0], [1], [0, 0, 1, 1], [], []>} : vector<20x20xf32>, vector<20x8xf32>, vector<20x8xf32> -> vector<20x8xf32>
      %207 = arith.addf %199, %206 : vector<20x8xf32>
      %c4_i32_158 = arith.constant 4 : i32
      %208 = arith.addi %arg14, %c4_i32_158 : i32
      %209 = arith.index_cast %208 : i32 to index
      %c1_159 = arith.constant 1 : index
      %c0_160 = arith.constant 0 : index
      %210 = vector.load %arg13[%209, %c1_159, %c0_160] : memref<24x24x20xf32, #tpu.memory_space<vmem>>, vector<1x20x20xf32>
      %211 = vector.shape_cast %210 : vector<1x20x20xf32> to vector<20x20xf32>
      %c21 = arith.constant 21 : index
      %c0_161 = arith.constant 0 : index
      %c0_162 = arith.constant 0 : index
      %212 = vector.load %arg6[%c21, %c0_161, %c0_162] : memref<25x20x8xf32, #tpu.memory_space<vmem>>, vector<1x20x8xf32>
      %213 = vector.shape_cast %212 : vector<1x20x8xf32> to vector<20x8xf32>
      %cst_163 = arith.constant dense<0.000000e+00> : vector<20x8xf32>
      %214 = tpu.matmul %211, %213, %cst_163 {dimension_numbers = #tpu.dot_dimension_numbers<[1], [0], [0], [1], [0, 0, 1, 1], [], []>} : vector<20x20xf32>, vector<20x8xf32>, vector<20x8xf32> -> vector<20x8xf32>
      %215 = arith.addf %207, %214 : vector<20x8xf32>
      %c4_i32_164 = arith.constant 4 : i32
      %216 = arith.addi %arg14, %c4_i32_164 : i32
      %217 = arith.index_cast %216 : i32 to index
      %c2_165 = arith.constant 2 : index
      %c0_166 = arith.constant 0 : index
      %218 = vector.load %arg13[%217, %c2_165, %c0_166] : memref<24x24x20xf32, #tpu.memory_space<vmem>>, vector<1x20x20xf32>
      %219 = vector.shape_cast %218 : vector<1x20x20xf32> to vector<20x20xf32>
      %c22 = arith.constant 22 : index
      %c0_167 = arith.constant 0 : index
      %c0_168 = arith.constant 0 : index
      %220 = vector.load %arg6[%c22, %c0_167, %c0_168] : memref<25x20x8xf32, #tpu.memory_space<vmem>>, vector<1x20x8xf32>
      %221 = vector.shape_cast %220 : vector<1x20x8xf32> to vector<20x8xf32>
      %cst_169 = arith.constant dense<0.000000e+00> : vector<20x8xf32>
      %222 = tpu.matmul %219, %221, %cst_169 {dimension_numbers = #tpu.dot_dimension_numbers<[1], [0], [0], [1], [0, 0, 1, 1], [], []>} : vector<20x20xf32>, vector<20x8xf32>, vector<20x8xf32> -> vector<20x8xf32>
      %223 = arith.addf %215, %222 : vector<20x8xf32>
      %c4_i32_170 = arith.constant 4 : i32
      %224 = arith.addi %arg14, %c4_i32_170 : i32
      %225 = arith.index_cast %224 : i32 to index
      %c3_171 = arith.constant 3 : index
      %c0_172 = arith.constant 0 : index
      %226 = vector.load %arg13[%225, %c3_171, %c0_172] : memref<24x24x20xf32, #tpu.memory_space<vmem>>, vector<1x20x20xf32>
      %227 = vector.shape_cast %226 : vector<1x20x20xf32> to vector<20x20xf32>
      %c23 = arith.constant 23 : index
      %c0_173 = arith.constant 0 : index
      %c0_174 = arith.constant 0 : index
      %228 = vector.load %arg6[%c23, %c0_173, %c0_174] : memref<25x20x8xf32, #tpu.memory_space<vmem>>, vector<1x20x8xf32>
      %229 = vector.shape_cast %228 : vector<1x20x8xf32> to vector<20x8xf32>
      %cst_175 = arith.constant dense<0.000000e+00> : vector<20x8xf32>
      %230 = tpu.matmul %227, %229, %cst_175 {dimension_numbers = #tpu.dot_dimension_numbers<[1], [0], [0], [1], [0, 0, 1, 1], [], []>} : vector<20x20xf32>, vector<20x8xf32>, vector<20x8xf32> -> vector<20x8xf32>
      %231 = arith.addf %223, %230 : vector<20x8xf32>
      %c4_i32_176 = arith.constant 4 : i32
      %232 = arith.addi %arg14, %c4_i32_176 : i32
      %233 = arith.index_cast %232 : i32 to index
      %c4_177 = arith.constant 4 : index
      %c0_178 = arith.constant 0 : index
      %234 = vector.load %arg13[%233, %c4_177, %c0_178] : memref<24x24x20xf32, #tpu.memory_space<vmem>>, vector<1x20x20xf32>
      %235 = vector.shape_cast %234 : vector<1x20x20xf32> to vector<20x20xf32>
      %c24 = arith.constant 24 : index
      %c0_179 = arith.constant 0 : index
      %c0_180 = arith.constant 0 : index
      %236 = vector.load %arg6[%c24, %c0_179, %c0_180] : memref<25x20x8xf32, #tpu.memory_space<vmem>>, vector<1x20x8xf32>
      %237 = vector.shape_cast %236 : vector<1x20x8xf32> to vector<20x8xf32>
      %cst_181 = arith.constant dense<0.000000e+00> : vector<20x8xf32>
      %238 = tpu.matmul %235, %237, %cst_181 {dimension_numbers = #tpu.dot_dimension_numbers<[1], [0], [0], [1], [0, 0, 1, 1], [], []>} : vector<20x20xf32>, vector<20x8xf32>, vector<20x8xf32> -> vector<20x8xf32>
      %239 = arith.addf %231, %238 : vector<20x8xf32>
      %240 = vector.broadcast %37 : vector<1x8xf32> to vector<20x8xf32>
      %241 = arith.addf %239, %240 : vector<20x8xf32>
      %242 = arith.negf %241 : vector<20x8xf32>
      %243 = math.exp %242 : vector<20x8xf32>
      %cst_182 = arith.constant 1.000000e+00 : f32
      %244 = vector.broadcast %cst_182 : f32 to vector<20x8xf32>
      %245 = arith.addf %244, %243 : vector<20x8xf32>
      %246 = arith.divf %244, %245 : vector<20x8xf32>
      %247 = vector.extract_strided_slice %246 {offsets = [0, 0], sizes = [20, 1], strides = [1, 1]} : vector<20x8xf32> to vector<20x1xf32>
      %c0_183 = arith.constant 0 : index
      %248 = arith.index_cast %arg14 : i32 to index
      %c0_184 = arith.constant 0 : index
      %c0_185 = arith.constant 0 : index
      %249 = vector.load %arg8[%c0_183, %248, %c0_184, %c0_185] : memref<1x20x20x1xf32, #tpu.memory_space<vmem>>, vector<1x1x20x1xf32>
      %250 = vector.shape_cast %249 : vector<1x1x20x1xf32> to vector<20x1xf32>
      %251 = vector.shape_cast %247 : vector<20x1xf32> to vector<1x1x20x1xf32>
      tpu.vector_store %arg8[%c0_183, %248, %c0_184, %c0_185], %251 {strides = array<i32>} : memref<1x20x20x1xf32, #tpu.memory_space<vmem>>, vector<1x1x20x1xf32>,
    }
    %c20_i32_30 = arith.constant 20 : i32
    return
  }
  func.func @transform_0(%arg0: i32) -> (i32, i32, i32, i32) {
    %c0_i32 = arith.constant 0 : i32
    %c0_i32_0 = arith.constant 0 : i32
    %c0_i32_1 = arith.constant 0 : i32
    %c0_i32_2 = arith.constant 0 : i32
    return %arg0, %c0_i32, %c0_i32_0, %c0_i32_1 : i32, i32, i32, i32
  }
  func.func @transform_1(%arg0: i32) -> (i32, i32, i32) {
    %c0_i32 = arith.constant 0 : i32
    %c0_i32_0 = arith.constant 0 : i32
    %c0_i32_1 = arith.constant 0 : i32
    %c0_i32_2 = arith.constant 0 : i32
    return %c0_i32, %c0_i32_0, %c0_i32_1 : i32, i32, i32
  }
  func.func @transform_2(%arg0: i32) -> (i32, i32) {
    %c0_i32 = arith.constant 0 : i32
    %c0_i32_0 = arith.constant 0 : i32
    %c0_i32_1 = arith.constant 0 : i32
    return %c0_i32, %c0_i32_0 : i32, i32
  }
  func.func @transform_3(%arg0: i32) -> (i32, i32, i32) {
    %c0_i32 = arith.constant 0 : i32
    %c0_i32_0 = arith.constant 0 : i32
    %c0_i32_1 = arith.constant 0 : i32
    %c0_i32_2 = arith.constant 0 : i32
    return %c0_i32, %c0_i32_0, %c0_i32_1 : i32, i32, i32
  }
  func.func @transform_4(%arg0: i32) -> (i32, i32) {
    %c0_i32 = arith.constant 0 : i32
    %c0_i32_0 = arith.constant 0 : i32
    %c0_i32_1 = arith.constant 0 : i32
    return %c0_i32, %c0_i32_0 : i32, i32
  }
  func.func @transform_5(%arg0: i32) -> (i32, i32, i32) {
    %c0_i32 = arith.constant 0 : i32
    %c0_i32_0 = arith.constant 0 : i32
    %c0_i32_1 = arith.constant 0 : i32
    %c0_i32_2 = arith.constant 0 : i32
    return %c0_i32, %c0_i32_0, %c0_i32_1 : i32, i32, i32
  }
  func.func @transform_6(%arg0: i32) -> (i32, i32) {
    %c0_i32 = arith.constant 0 : i32
    %c0_i32_0 = arith.constant 0 : i32
    %c0_i32_1 = arith.constant 0 : i32
    return %c0_i32, %c0_i32_0 : i32, i32
  }
  func.func @transform_7(%arg0: i32) -> (i32, i32, i32, i32) {
    %c0_i32 = arith.constant 0 : i32
    %c0_i32_0 = arith.constant 0 : i32
    %c0_i32_1 = arith.constant 0 : i32
    %c0_i32_2 = arith.constant 0 : i32
    return %arg0, %c0_i32, %c0_i32_0, %c0_i32_1 : i32, i32, i32, i32
  }
}

</mosaic_0001>

<bundles_post_ra>
// kernel: rnet_forward.1
= control target key start
LH: loop header
LB: loop body
LE: loop exit
PB: predicated region body
PF: predicated region fallthrough
CT: control target
= control target key end

     0   :  { %s10616_s24 = smov 0   ;;  %s12899_s0 = inlined_call_operand.vmem [shape: f32[2,16,16,20], index: 0, kind: input, shape index: {}]   ;;  %s12900_s1 = inlined_call_operand.vmem [shape: f32[25,20,50], index: 1, kind: input, shape index: {}]   ;;  %s12901_s2 = inlined_call_operand.vmem [shape: f32[1,50], index: 2, kind: input, shape index: {}]   ;;  %s12902_s3 = inlined_call_operand.vmem [shape: f32[25,50,20], index: 3, kind: input, shape index: {}]   ;;  %s12903_s4 = inlined_call_operand.vmem [shape: f32[1,20], index: 4, kind: input, shape index: {}]   ;;  %s12904_s5 = inlined_call_operand.vmem [shape: f32[25,20,8], index: 5, kind: input, shape index: {}]   ;;  %s12905_s6 = inlined_call_operand.vmem [shape: f32[1,8], index: 6, kind: input, shape index: {}]   ;;  %s12906_s7 = inlined_call_operand.vmem [shape: f32[2,20,20,1], index: 7, kind: output, shape index: {}]  }
   0x1 LB: > { %s8185_s25 = sadd.s32 4294967295, %s10543_s24   ;;  %p8189_p0 = scmp.ge.s32.totalorder %s10543_s24, 1  ;;  %s10543_s24 = sphi %s10616_s24, %s17_s24  }
   0x2   : > { %p237_p1 = scmp.lt.s32.totalorder %s10543_s24, 3 }
   0x4   : > { %p238_p2 = pnand %p8189_p0, %p237_p1 }
   0x5   : > { %p10626_p3 = scmp.lt.s32.totalorder (!%p238_p2), %s8185_s25, 1  ;;  %s10877_s12 = smov (!%p238_p2), 0  }
   0x6   : > { %241 = sbr.rel (%p238_p2) target bundleno = 1781 (0x6f5), region = 48 }
   0xb   : > { %vm279_vm0 = vcmask 408576   ;;  %vm281_vm1 = vcmask 404480   ;;  %v378_v0 = vlaneseq  ;;  %v10565_v1 = vmov 0.0   ;;  %s12909_s25 = smov (!%p10626_p3, %s8185_s25), 1 }
   0xc   : > { %280 = vst.msk [vmem:[#allocation4] sm:$0xff] %vm279_vm0, %v10565_v1  ;;  %283 = vst.msk [vmem:[#allocation4 + $0x10] sm:$0xff] %vm279_vm0, %v10565_v1  ;;  %vm305_vm2 = vcmask 162816   ;;  %s8878_s27 = sshll.u32 %s12909_s25, 8  ;;  %s10445_s28 = smul.u32 480, %s12909_s25 }
   0xd   : > { %285 = vst.msk [vmem:[#allocation4 + $0x20] sm:$0xff] %vm279_vm0, %v10565_v1  ;;  %287 = vst.msk [vmem:[#allocation4 + $0x30] sm:$0xff] %vm279_vm0, %v10565_v1  ;;  %v10684_v2 = vand.u32 127, %v378_v0  ;;  %v10686_v3 = vshrl.u32 %v378_v0, 7  ;;  %s10840_s8 = scalar_lea.vmem %s12899_s0, %s8878_s27 }
   0xe   : > { %289 = vst.msk [vmem:[#allocation4 + $0x40] sm:$0xff] %vm279_vm0, %v10565_v1  ;;  %291 = vst.msk [vmem:[#allocation4 + $0x50] sm:$0xff] %vm279_vm0, %v10565_v1  ;;  %s10845_s11 = scalar_lea.vmem %s12906_s7, %s10445_s28 }
   0xf   : > { %293 = vst.msk [vmem:[#allocation4 + $0x60] sm:$0xff] %vm279_vm0, %v10565_v1  ;;  %295 = vst.msk [vmem:[#allocation4 + $0x70] sm:$0xff] %vm279_vm0, %v10565_v1  ;;  %v382_v4 = vmul.u32 2, %v10686_v3  ;;  %v390_v5 = vadd.s32 8, %v10686_v3  ;;  %v391_v6 = vmul.u32 2, %v10684_v2 }
  0x10   : > { %297 = vst.msk [vmem:[#allocation4 + $0x80] sm:$0xff] %vm279_vm0, %v10565_v1  ;;  %299 = vst.msk [vmem:[#allocation4 + $0x90] sm:$0xff] %vm279_vm0, %v10565_v1 }
  0x11   : > { %301 = vst.msk [vmem:[#allocation4 + $0xa0] sm:$0xff] %vm279_vm0, %v10565_v1  ;;  %303 = vst.msk [vmem:[#allocation4 + $0xb0] sm:$0xff] %vm279_vm0, %v10565_v1  ;;  %vm383_vm3 = vcmp.eq.s32.totalorder %v10684_v2, %v382_v4  ;;  %v386_v7 = vadd.s32 1, %v382_v4  ;;  %vm392_vm4 = vcmp.eq.s32.totalorder %v10686_v3, %v391_v6  ;;  %vm393_vm5 = vcmp.eq.s32.totalorder %v390_v5, %v391_v6 }
  0x12   : > { %282 = vst.msk [vmem:[#allocation4 + $0x8] sm:$0xf] %vm281_vm1, %v10565_v1  ;;  %284 = vst.msk [vmem:[#allocation4 + $0x18] sm:$0xf] %vm281_vm1, %v10565_v1  ;;  %v10850_v8 = vsel %vm383_vm3, 1.0, %v10565_v1  ;;  %v398_v9 = vadd.s32 1, %v391_v6 }
  0x13   : > { %286 = vst.msk [vmem:[#allocation4 + $0x28] sm:$0xf] %vm281_vm1, %v10565_v1  ;;  %288 = vst.msk [vmem:[#allocation4 + $0x38] sm:$0xf] %vm281_vm1, %v10565_v1  ;;  %vm387_vm6 = vcmp.eq.s32.totalorder %v10684_v2, %v386_v7  ;;  %v10854_v10 = vsel %vm392_vm4, 1.0, %v10565_v1  ;;  %v10857_v11 = vsel %vm393_vm5, 1.0, %v10565_v1 }
  0x14   : > { %290 = vst.msk [vmem:[#allocation4 + $0x48] sm:$0xf] %vm281_vm1, %v10565_v1  ;;  %292 = vst.msk [vmem:[#allocation4 + $0x58] sm:$0xf] %vm281_vm1, %v10565_v1  ;;  %v10860_v12 = vsel %vm387_vm6, 1.0, %v10565_v1  ;;  %vm399_vm7 = vcmp.eq.s32.totalorder %v10686_v3, %v398_v9  ;;  %vm400_vm8 = vcmp.eq.s32.totalorder %v390_v5, %v398_v9 }
  0x15   : > { %294 = vst.msk [vmem:[#allocation4 + $0x68] sm:$0xf] %vm281_vm1, %v10565_v1  ;;  %296 = vst.msk [vmem:[#allocation4 + $0x78] sm:$0xf] %vm281_vm1, %v10565_v1  ;;  %v10864_v13 = vsel %vm399_vm7, 1.0, %v10565_v1  ;;  %v10867_v14 = vsel %vm400_vm8, 1.0, %v10565_v1 }
  0x16   : > { %298 = vst.msk [vmem:[#allocation4 + $0x88] sm:$0xf] %vm281_vm1, %v10565_v1  ;;  %300 = vst.msk [vmem:[#allocation4 + $0x98] sm:$0xf] %vm281_vm1, %v10565_v1  ;;  %v10871_v15 = vadd.f32 %v10864_v13, %v10854_v10  ;;  %v10875_v16 = vadd.f32 %v10867_v14, %v10857_v11 }
  0x17   : > { %302 = vst.msk [vmem:[#allocation4 + $0xa8] sm:$0xf] %vm281_vm1, %v10565_v1  ;;  %304 = vst.msk [vmem:[#allocation4 + $0xb8] sm:$0xf] %vm281_vm1, %v10565_v1 }
  0x18   : > { %306 = vst.msk [vmem:[#allocation6] sm:$0xff] %vm305_vm2, %v10565_v1  ;;  %307 = vst.msk [vmem:[#allocation6 + $0x8] sm:$0xff] %vm305_vm2, %v10565_v1 }
  0x19   : > { %308 = vst.msk [vmem:[#allocation6 + $0x10] sm:$0xff] %vm305_vm2, %v10565_v1  ;;  %309 = vst.msk [vmem:[#allocation6 + $0x18] sm:$0xff] %vm305_vm2, %v10565_v1 }
  0x1a   : > { %310 = vst.msk [vmem:[#allocation6 + $0x20] sm:$0xff] %vm305_vm2, %v10565_v1  ;;  %311 = vst.msk [vmem:[#allocation6 + $0x28] sm:$0xff] %vm305_vm2, %v10565_v1 }
  0x1b   : > { %312 = vst.msk [vmem:[#allocation6 + $0x30] sm:$0xff] %vm305_vm2, %v10565_v1  ;;  %313 = vst.msk [vmem:[#allocation6 + $0x38] sm:$0xff] %vm305_vm2, %v10565_v1 }
  0x1c   : > { %314 = vst.msk [vmem:[#allocation6 + $0x40] sm:$0xff] %vm305_vm2, %v10565_v1  ;;  %315 = vst.msk [vmem:[#allocation6 + $0x48] sm:$0xff] %vm305_vm2, %v10565_v1 }
  0x1d   : > { %316 = vst.msk [vmem:[#allocation6 + $0x50] sm:$0xff] %vm305_vm2, %v10565_v1  ;;  %317 = vst.msk [vmem:[#allocation6 + $0x58] sm:$0xff] %vm305_vm2, %v10565_v1 }
  0x1e   : > { %318 = vst.msk [vmem:[#allocation6 + $0x60] sm:$0xff] %vm305_vm2, %v10565_v1  ;;  %319 = vst.msk [vmem:[#allocation6 + $0x68] sm:$0xff] %vm305_vm2, %v10565_v1 }
  0x1f   : > { %320 = vst.msk [vmem:[#allocation6 + $0x70] sm:$0xff] %vm305_vm2, %v10565_v1  ;;  %321 = vst.msk [vmem:[#allocation6 + $0x78] sm:$0xff] %vm305_vm2, %v10565_v1 }
  0x20   : > { %322 = vst.msk [vmem:[#allocation6 + $0x80] sm:$0xff] %vm305_vm2, %v10565_v1  ;;  %323 = vst.msk [vmem:[#allocation6 + $0x88] sm:$0xff] %vm305_vm2, %v10565_v1 }
  0x21   : > { %324 = vst.msk [vmem:[#allocation6 + $0x90] sm:$0xff] %vm305_vm2, %v10565_v1  ;;  %325 = vst.msk [vmem:[#allocation6 + $0x98] sm:$0xff] %vm305_vm2, %v10565_v1 }
  0x22   : > { %326 = vst.msk [vmem:[#allocation6 + $0xa0] sm:$0xff] %vm305_vm2, %v10565_v1  ;;  %327 = vst.msk [vmem:[#allocation6 + $0xa8] sm:$0xff] %vm305_vm2, %v10565_v1 }
  0x23   : > { %328 = vst.msk [vmem:[#allocation6 + $0xb0] sm:$0xff] %vm305_vm2, %v10565_v1  ;;  %329 = vst.msk [vmem:[#allocation6 + $0xb8] sm:$0xff] %vm305_vm2, %v10565_v1 }
  0x24   : > { %330 = vst.msk [vmem:[#allocation6 + $0xc0] sm:$0xff] %vm305_vm2, %v10565_v1  ;;  %331 = vst.msk [vmem:[#allocation6 + $0xc8] sm:$0xff] %vm305_vm2, %v10565_v1 }
  0x25   : > { %332 = vst.msk [vmem:[#allocation6 + $0xd0] sm:$0xff] %vm305_vm2, %v10565_v1  ;;  %333 = vst.msk [vmem:[#allocation6 + $0xd8] sm:$0xff] %vm305_vm2, %v10565_v1 }
  0x26   : > { %334 = vst.msk [vmem:[#allocation6 + $0xe0] sm:$0xff] %vm305_vm2, %v10565_v1  ;;  %335 = vst.msk [vmem:[#allocation6 + $0xe8] sm:$0xff] %vm305_vm2, %v10565_v1 }
  0x27   : > { %336 = vst.msk [vmem:[#allocation6 + $0xf0] sm:$0xff] %vm305_vm2, %v10565_v1  ;;  %337 = vst.msk [vmem:[#allocation6 + $0xf8] sm:$0xff] %vm305_vm2, %v10565_v1 }
  0x28   : > { %338 = vst.msk [vmem:[#allocation6 + $0x100] sm:$0xff] %vm305_vm2, %v10565_v1  ;;  %339 = vst.msk [vmem:[#allocation6 + $0x108] sm:$0xff] %vm305_vm2, %v10565_v1 }
  0x29   : > { %340 = vst.msk [vmem:[#allocation6 + $0x110] sm:$0xff] %vm305_vm2, %v10565_v1  ;;  %341 = vst.msk [vmem:[#allocation6 + $0x118] sm:$0xff] %vm305_vm2, %v10565_v1 }
  0x2a   : > { %342 = vst.msk [vmem:[#allocation6 + $0x120] sm:$0xff] %vm305_vm2, %v10565_v1  ;;  %343 = vst.msk [vmem:[#allocation6 + $0x128] sm:$0xff] %vm305_vm2, %v10565_v1 }
  0x2b   : > { %344 = vst.msk [vmem:[#allocation6 + $0x130] sm:$0xff] %vm305_vm2, %v10565_v1  ;;  %345 = vst.msk [vmem:[#allocation6 + $0x138] sm:$0xff] %vm305_vm2, %v10565_v1 }
  0x2c   : > { %346 = vst.msk [vmem:[#allocation6 + $0x140] sm:$0xff] %vm305_vm2, %v10565_v1  ;;  %347 = vst.msk [vmem:[#allocation6 + $0x148] sm:$0xff] %vm305_vm2, %v10565_v1 }
  0x2d   : > { %348 = vst.msk [vmem:[#allocation6 + $0x150] sm:$0xff] %vm305_vm2, %v10565_v1  ;;  %349 = vst.msk [vmem:[#allocation6 + $0x158] sm:$0xff] %vm305_vm2, %v10565_v1 }
  0x2e   : > { %350 = vst.msk [vmem:[#allocation6 + $0x160] sm:$0xff] %vm305_vm2, %v10565_v1  ;;  %351 = vst.msk [vmem:[#allocation6 + $0x168] sm:$0xff] %vm305_vm2, %v10565_v1 }
  0x2f   : > { %352 = vst.msk [vmem:[#allocation6 + $0x170] sm:$0xff] %vm305_vm2, %v10565_v1  ;;  %353 = vst.msk [vmem:[#allocation6 + $0x178] sm:$0xff] %vm305_vm2, %v10565_v1 }
  0x30   : > { %354 = vst.msk [vmem:[#allocation6 + $0x180] sm:$0xff] %vm305_vm2, %v10565_v1  ;;  %355 = vst.msk [vmem:[#allocation6 + $0x188] sm:$0xff] %vm305_vm2, %v10565_v1 }
  0x31   : > { %356 = vst.msk [vmem:[#allocation6 + $0x190] sm:$0xff] %vm305_vm2, %v10565_v1  ;;  %357 = vst.msk [vmem:[#allocation6 + $0x198] sm:$0xff] %vm305_vm2, %v10565_v1 }
  0x32   : > { %358 = vst.msk [vmem:[#allocation6 + $0x1a0] sm:$0xff] %vm305_vm2, %v10565_v1  ;;  %359 = vst.msk [vmem:[#allocation6 + $0x1a8] sm:$0xff] %vm305_vm2, %v10565_v1 }
  0x33   : > { %360 = vst.msk [vmem:[#allocation6 + $0x1b0] sm:$0xff] %vm305_vm2, %v10565_v1  ;;  %361 = vst.msk [vmem:[#allocation6 + $0x1b8] sm:$0xff] %vm305_vm2, %v10565_v1 }
  0x34   : > { %362 = vst.msk [vmem:[#allocation6 + $0x1c0] sm:$0xff] %vm305_vm2, %v10565_v1  ;;  %363 = vst.msk [vmem:[#allocation6 + $0x1c8] sm:$0xff] %vm305_vm2, %v10565_v1 }
  0x35   : > { %364 = vst.msk [vmem:[#allocation6 + $0x1d0] sm:$0xff] %vm305_vm2, %v10565_v1  ;;  %365 = vst.msk [vmem:[#allocation6 + $0x1d8] sm:$0xff] %vm305_vm2, %v10565_v1 }
  0x36   : > { %366 = vst.msk [vmem:[#allocation6 + $0x1e0] sm:$0xff] %vm305_vm2, %v10565_v1  ;;  %367 = vst.msk [vmem:[#allocation6 + $0x1e8] sm:$0xff] %vm305_vm2, %v10565_v1 }
  0x37   : > { %368 = vst.msk [vmem:[#allocation6 + $0x1f0] sm:$0xff] %vm305_vm2, %v10565_v1  ;;  %369 = vst.msk [vmem:[#allocation6 + $0x1f8] sm:$0xff] %vm305_vm2, %v10565_v1 }
  0x38   : > { %370 = vst.msk [vmem:[#allocation6 + $0x200] sm:$0xff] %vm305_vm2, %v10565_v1  ;;  %371 = vst.msk [vmem:[#allocation6 + $0x208] sm:$0xff] %vm305_vm2, %v10565_v1 }
  0x39   : > { %372 = vst.msk [vmem:[#allocation6 + $0x210] sm:$0xff] %vm305_vm2, %v10565_v1  ;;  %373 = vst.msk [vmem:[#allocation6 + $0x218] sm:$0xff] %vm305_vm2, %v10565_v1 }
  0x3a   : > { %374 = vst.msk [vmem:[#allocation6 + $0x220] sm:$0xff] %vm305_vm2, %v10565_v1  ;;  %375 = vst.msk [vmem:[#allocation6 + $0x228] sm:$0xff] %vm305_vm2, %v10565_v1 }
  0x3b   : > { %376 = vst.msk [vmem:[#allocation6 + $0x230] sm:$0xff] %vm305_vm2, %v10565_v1  ;;  %377 = vst.msk [vmem:[#allocation6 + $0x238] sm:$0xff] %vm305_vm2, %v10565_v1 }
  0x3c LB: >> { %v10566_v17 = vmov 0.0   ;;  %s8879_s13 = sshll.u32 %s10547_s12, 5  ;;  %vm10567_vm9 = vmmov 0   ;;  %vm423_vm10 = vcmask 130048   ;;  %vm734_vm11 = vcmask 64512   ;;  %s8209_s15 = sshll.u32 %s10547_s12, 3  ;;  %s10547_s12 = sphi %s10877_s12, %s412_s12  }
  0x3d   : >> { %9361 = vmatprep.subr.mxu0 %v10566_v17  ;;  %9368 = vmatprep.subr.mxu1 %v10566_v17  ;;  %s415_s14 = scalar_lea.vmem %s10840_s8, %s8879_s13  ;;  %s714_s16 = scalar_lea.vmem [#allocation2], %s8209_s15  ;;  %v10568_v33 = vmov 1.0   ;;  %vm10569_vm14 = vmmov 1  }
  0x3e   : >> { %9365 = vmatprep.mubr.msk.f32.mxu0 %vm10567_vm9, %v10566_v17  ;;  %9372 = vmatprep.mubr.msk.f32.mxu1 %vm10567_vm9, %v10566_v17  ;;  %v417_v18 = vld [vmem:[%s415_s14 + $0x8] sm:$0xff]  ;;  %v416_v19 = vld [vmem:[%s415_s14] sm:$0xff]  ;;  %v8204_v20 = vld [vmem:[%s415_s14 + $0x18] sm:$0xff]  ;;  %s897_s17 = scalar_lea.vmem [#allocation3], %s8879_s13  ;;  %s412_s12 = sadd.s32 1, %s10547_s12  }
  0x3f   : >> { %9362 = vmatpush3.msra.mxu0 %v417_v18  ;;  %9369 = vmatpush3.msra.mxu1 %v417_v18  ;;  %v8203_v21 = vld [vmem:[%s415_s14 + $0x10] sm:$0xff]  ;;  %p409_p4 = scmp.ge.s32.totalorder %s412_s12, 8  }
  0x40   : >> { %9363 = vmatprep.subr.mxu0 %v10566_v17  ;;  %9370 = vmatprep.subr.mxu1 %v10566_v17  ;;  %v10945_v48 = vld [vmem:[%s12901_s2] ss:$0 sm:$0xff] (%p409_p4)  ;;  %s10947_s20 = smov (%p409_p4), 0  }
  0x41   : >> { %9364 = vmatpush3.msra.mxu0 %v416_v19  ;;  %9371 = vmatpush3.msra.mxu1 %v416_v19 }
  0x42   : >> { %9366 = vmatmul.mubr.msk.f32.vlgmr.msra.gmra.mxu0 %vm423_vm10, %v10850_v8  ;;  %9373 = vmatmul.mubr.msk.f32.vlgmr.msra.gmra.mxu1 %vm423_vm10, %v10860_v12 }
  0x43   : >> { %9375 = vmatprep.subr.mxu0 %v10566_v17  ;;  %9382 = vmatprep.subr.mxu1 %v10566_v17 }
  0x44   : >> { %9376 = vmatpush3.msra.mxu0 %v8204_v20  ;;  %9383 = vmatpush3.msra.mxu1 %v8204_v20 }
  0x45   : >> { %9377 = vmatprep.subr.mxu0 %v10566_v17  ;;  %9384 = vmatprep.subr.mxu1 %v10566_v17 }
  0x46   : >> { %9378 = vmatpush3.msra.mxu0 %v8203_v21  ;;  %9379 = vmatprep.mubr.msk.f32.mxu0 %vm10567_vm9, %v10566_v17 }
  0x47   : >> { %9385 = vmatpush3.msra.mxu1 %v8203_v21  ;;  %9386 = vmatprep.mubr.msk.f32.mxu1 %vm10567_vm9, %v10566_v17 }
  0x48   : >> { %9380 = vmatmul.mubr.msk.f32.vlgmr.msra.gmra.mxu0 %vm423_vm10, %v10850_v8  ;;  %9387 = vmatmul.mubr.msk.f32.vlgmr.msra.gmra.mxu1 %vm423_vm10, %v10860_v12 }
  0x49   : >> { %9391 = vmatprep.mubr.msk.f32.mxu0 %vm734_vm11, %v10864_v13  ;;  %9396 = vmatprep.mubr.msk.f32.mxu1 %vm734_vm11, %v10854_v10 }
 0x102   : >> { %v493_v22 = vpop.f32.mrf.mxu0  ;;  %v566_v23 = vpop.f32.mrf.mxu1 }
 0x103   : >> { %v710_v28 = vmax.f32 %v493_v22, %v566_v23 }
 0x104   : >> { %v9367_v24 = vpop.f32.mrf.mxu0  ;;  %v9374_v25 = vpop.f32.mrf.mxu1 }
 0x108   : >> { %v636_v26 = vpop.f32.mrf.mxu0  ;;  %v706_v27 = vpop.f32.mrf.mxu1 }
 0x109   : >> { %v711_v29 = vmax.f32 %v636_v26, %v706_v27 }
 0x10a   : >> { %v9381_v30 = vpop.f32.mrf.mxu0  ;;  %v9388_v31 = vpop.f32.mrf.mxu1 }
 0x10b   : >> { %v712_v32 = vmax.f32 %v710_v28, %v711_v29 }
 0x10d   : >> { %715 = vst.msk [vmem:[%s714_s16] sm:$0xff] %vm305_vm2, %v712_v32  ;;  %vm716_vm12 = vcmp.eq.f32.partialorder %v493_v22, %v712_v32  ;;  %vm717_vm13 = vcmp.eq.f32.partialorder %v566_v23, %v712_v32  ;;  %vm720_vm5 = vcmp.eq.f32.partialorder %v636_v26, %v712_v32 }
 0x10e   : >> { %9394 = vmatprep.subr.msk.mxu1 %vm716_vm12, %v10568_v33  ;;  %vm718_vm15 = vmxor %vm716_vm12, %vm10569_vm14 }
 0x10f   : >> { %9395 = vmatpush3.msk.msra.mxu1 %vm716_vm12, %v10568_v33  ;;  %vm719_vm3 = vmand %vm717_vm13, %vm718_vm15 }
 0x110   : >> { %9389 = vmatprep.subr.msk.mxu0 %vm719_vm3, %v10568_v33  ;;  %vm721_vm4 = vmor %vm716_vm12, %vm719_vm3  ;;  %9397 = vmatmul.mubr.msk.f32.vlgmr.msra.gmra.mxu1 %vm734_vm11, %v10857_v11 }
 0x111   : >> { %9390 = vmatpush3.msk.msra.mxu0 %vm719_vm3, %v10568_v33  ;;  %vm722_vm6 = vmxor %vm721_vm4, %vm10569_vm14  ;;  %9406 = vmatprep.mubr.msk.f32.mxu1 %vm734_vm11, %v10854_v10 }
 0x112   : >> { %vm723_vm7 = vmand %vm720_vm5, %vm722_vm6  ;;  %9392 = vmatmul.mubr.msk.f32.vlgmr.msra.gmra.mxu0 %vm734_vm11, %v10867_v14 }
 0x113   : >> { %v8212_v34 = vsel %vm723_vm7, 1.0, %v10566_v17  ;;  %vm724_vm8 = vmor %vm721_vm4, %vm723_vm7  ;;  %9401 = vmatprep.mubr.msk.f32.mxu0 %vm734_vm11, %v10864_v13 }
 0x114   : >> { %9404 = vmatprep.subr.mxu1 %v8212_v34  ;;  %vm725_vm9 = vmxor %vm724_vm8, %vm10569_vm14 }
 0x115   : >> { %9405 = vmatpush3.msra.mxu1 %v8212_v34  ;;  %v8213_v35 = vsel %vm725_vm9, 1.0, %v10566_v17 }
 0x116   : >> { %9399 = vmatprep.subr.mxu0 %v8213_v35  ;;  %9407 = vmatmul.mubr.msk.f32.vlgmr.msra.gmra.mxu1 %vm734_vm11, %v10857_v11 }
 0x117   : >> { %9400 = vmatpush3.msra.mxu0 %v8213_v35 }
 0x118   : >> { %9402 = vmatmul.mubr.msk.f32.vlgmr.msra.gmra.mxu0 %vm734_vm11, %v10867_v14 }
 0x1d0   : >> { %v9398_v36 = vpop.f32.mrf.mxu1 }
 0x1d2   : >> { %v9393_v37 = vpop.f32.mrf.mxu0  ;;  %v888_v38 = vpop.f32.mrf.mxu1 }
 0x1d3   : >> { %v894_v39 = vadd.f32 %v9398_v36, %v9393_v37 }
 0x1d4   : >> { %v807_v40 = vpop.f32.mrf.mxu0 }
 0x1d5   : >> { %899 = vst.msk [vmem:[%s897_s17 + $0x8] sm:$0xff] %vm305_vm2, %v894_v39  ;;  %v889_v41 = vadd.f32 %v888_v38, %v807_v40 }
 0x1d6   : >> { %v9408_v42 = vpop.f32.mrf.mxu1 }
 0x1d7   : >> { %898 = vst.msk [vmem:[%s897_s17] sm:$0xff] %vm305_vm2, %v889_v41 }
 0x1d8   : >> { %v9403_v43 = vpop.f32.mrf.mxu0  ;;  %v1041_v46 = vpop.f32.mrf.mxu1 }
 0x1d9   : >> { %v1047_v44 = vadd.f32 %v9408_v42, %v9403_v43  ;;  %411 = sbr.rel (!%p409_p4) target bundleno = 60 (0x3c), region = 213 }
 0x1da   : >> { %v966_v45 = vpop.f32.mrf.mxu0 }
 0x1db   : >> { %8227 = vst.msk [vmem:[%s897_s17 + $0x18] sm:$0xff] %vm305_vm2, %v1047_v44  ;;  %v1042_v47 = vadd.f32 %v1041_v46, %v966_v45 }
 0x1dd   : >> { %8226 = vst.msk [vmem:[%s897_s17 + $0x10] sm:$0xff] %vm305_vm2, %v1042_v47 }
 0x1de LB: >> { %v8231_v49 = vld [vmem:[%s12900_s1 + $0x28] sm:$0xf]  ;;  %vm1074_vm10 = vcmask 1043456   ;;  %v1065_v50 = vld [vmem:[%s12900_s1 + $0x10] sm:$0xf]  ;;  %v10570_v51 = vmov 0.0   ;;  %s10551_s20 = sphi %s10947_s20, %s1059_s20  }
 0x1df   : >> { %9409 = vmatprep.subr.mxu0 %v10570_v51  ;;  %9418 = vmatprep.subr.mxu1 %v10570_v51  ;;  %v8230_v52 = vld [vmem:[%s12900_s1 + $0x20] sm:$0xff]  ;;  %v1064_v53 = vld [vmem:[%s12900_s1 + $0x8] sm:$0xff]  ;;  %s8228_s30 = sshll.u32 %s10551_s20, 3  ;;  %v8229_v54 = vld [vmem:[%s12900_s1 + $0x18] sm:$0xff]  ;;  %vm10571_vm12 = vmmov 0  }
 0x1e0   : >> { %9410 = vmatpush3.msk.msra.mxu0 %vm1074_vm10, %v8231_v49  ;;  %9419 = vmatpush3.msk.msra.mxu1 %vm1074_vm10, %v1065_v50  ;;  %s10974_s10 = scalar_lea.vmem [#allocation2], %s8228_s30  ;;  %v1063_v56 = vld [vmem:[%s12900_s1] sm:$0xff]  ;;  %v8237_v59 = vld [vmem:[%s12900_s1 + $0x38] sm:$0xff]  ;;  %v8236_v61 = vld [vmem:[%s12900_s1 + $0x30] sm:$0xff] }
 0x1e1   : >> { %9411 = vmatprep.subr.mxu0 %v10570_v51  ;;  %9420 = vmatprep.subr.mxu1 %v10570_v51  ;;  %v1066_v55 = vld [vmem:[%s10974_s10 + $0x1] sm:$0xf]  ;;  %v8243_v60 = vld [vmem:[%s12900_s1 + $0x58] sm:$0xf]  ;;  %v8242_v62 = vld [vmem:[%s12900_s1 + $0x50] sm:$0xff] }
 0x1e2   : >> { %9412 = vmatpush3.msra.mxu0 %v8230_v52  ;;  %9421 = vmatpush3.msra.mxu1 %v1064_v53  ;;  %v1062_v57 = vld [vmem:[%s10974_s10] sm:$0xf]  ;;  %v8241_v0 = vld [vmem:[%s12900_s1 + $0x48] sm:$0xff]  ;;  %v8248_v1 = vld [vmem:[%s12900_s1 + $0x70] sm:$0xf] }
 0x1e3   : >> { %9413 = vmatprep.subr.mxu0 %v10570_v51  ;;  %9415 = vmatprep.mubr.msk.f32.mxu0 %vm10571_vm12, %v10570_v51  ;;  %v8238_v58 = vld [vmem:[%s12900_s1 + $0x40] sm:$0xf]  ;;  %v8247_v3 = vld [vmem:[%s12900_s1 + $0x68] sm:$0xff]  ;;  %v1388_v7 = vld [vmem:[%s10974_s10 + $0x4] sm:$0xf] }
 0x1e4   : >> { %9414 = vmatpush3.msra.mxu0 %v8229_v54  ;;  %9422 = vmatprep.subr.mxu1 %v10570_v51  ;;  %v1224_v63 = vld [vmem:[%s10974_s10 + $0x2] sm:$0xf]  ;;  %v8255_v4 = vld [vmem:[%s12900_s1 + $0x88] sm:$0xf]  ;;  %v8253_v8 = vld [vmem:[%s12900_s1 + $0x78] sm:$0xff] }
 0x1e5   : >> { %9416 = vmatmul.mubr.msk.f32.vlgmr.msra.gmra.mxu0 %vm305_vm2, %v1066_v55  ;;  %9423 = vmatpush3.msra.mxu1 %v1063_v56  ;;  %v1306_v2 = vld [vmem:[%s10974_s10 + $0x3] sm:$0xf]  ;;  %v8252_v10 = vld [vmem:[%s10974_s10 + $0x8] sm:$0xf]  ;;  %v8260_v11 = vld [vmem:[%s12900_s1 + $0x98] sm:$0xff] }
 0x1e6   : >> { %9424 = vmatprep.mubr.msk.f32.mxu1 %vm10571_vm12, %v10570_v51  ;;  %9427 = vmatprep.subr.mxu0 %v10570_v51  ;;  %v8246_v5 = vld [vmem:[%s12900_s1 + $0x60] sm:$0xff]  ;;  %v8267_v12 = vld [vmem:[%s12900_s1 + $0xb8] sm:$0xf]  ;;  %v8259_v13 = vld [vmem:[%s12900_s1 + $0x90] sm:$0xff] }
 0x1e7   : >> { %9425 = vmatmul.mubr.msk.f32.vlgmr.msra.gmra.mxu1 %vm305_vm2, %v1062_v57  ;;  %9428 = vmatpush3.msk.msra.mxu0 %vm1074_vm10, %v8238_v58  ;;  %v8254_v6 = vld [vmem:[%s12900_s1 + $0x80] sm:$0xff]  ;;  %v8266_v14 = vld [vmem:[%s12900_s1 + $0xb0] sm:$0xff]  ;;  %v8258_v17 = vld [vmem:[%s10974_s10 + $0x9] sm:$0xf] }
 0x1e8   : >> { %9429 = vmatprep.subr.mxu0 %v10570_v51  ;;  %9436 = vmatprep.subr.mxu1 %v10570_v51  ;;  %v8261_v9 = vld [vmem:[%s12900_s1 + $0xa0] sm:$0xf]  ;;  %v8265_v18 = vld [vmem:[%s12900_s1 + $0xa8] sm:$0xff]  ;;  %v8273_v19 = vld [vmem:[%s12900_s1 + $0xd0] sm:$0xf] }
 0x1e9   : >> { %9430 = vmatpush3.msra.mxu0 %v8237_v59  ;;  %9437 = vmatpush3.msk.msra.mxu1 %vm1074_vm10, %v8243_v60  ;;  %v8264_v20 = vld [vmem:[%s10974_s10 + $0xa] sm:$0xf]  ;;  %v8271_v23 = vld [vmem:[%s12900_s1 + $0xc0] sm:$0xff]  ;;  %v8277_v26 = vld [vmem:[%s12900_s1 + $0xd8] sm:$0xff] }
 0x1ea   : >> { %9431 = vmatprep.subr.mxu0 %v10570_v51  ;;  %9438 = vmatprep.subr.mxu1 %v10570_v51  ;;  %v8272_v21 = vld [vmem:[%s12900_s1 + $0xc8] sm:$0xff]  ;;  %v8278_v24 = vld [vmem:[%s12900_s1 + $0xe0] sm:$0xff]  ;;  %v8285_v29 = vld [vmem:[%s12900_s1 + $0xf8] sm:$0xff] }
 0x1eb   : >> { %9432 = vmatpush3.msra.mxu0 %v8236_v61  ;;  %9433 = vmatprep.mubr.msk.f32.mxu0 %vm10571_vm12, %v10570_v51  ;;  %v8279_v22 = vld [vmem:[%s12900_s1 + $0xe8] sm:$0xf]  ;;  %v8286_v27 = vld [vmem:[%s12900_s1 + $0x100] sm:$0xf]  ;;  %v8276_v28 = vld [vmem:[%s10974_s10 + $0xc] sm:$0xf] }
 0x1ec   : >> { %9439 = vmatpush3.msra.mxu1 %v8242_v62  ;;  %9434 = vmatmul.mubr.msk.f32.vlgmr.msra.gmra.mxu0 %vm305_vm2, %v1224_v63  ;;  %v8270_v25 = vld [vmem:[%s10974_s10 + $0xb] sm:$0xf]  ;;  %v8292_v30 = vld [vmem:[%s12900_s1 + $0x118] sm:$0xf]  ;;  %v8284_v31 = vld [vmem:[%s12900_s1 + $0xf0] sm:$0xff] }
 0x1ed   : >> { %9440 = vmatprep.subr.mxu1 %v10570_v51  ;;  %9445 = vmatprep.subr.mxu0 %v10570_v51  ;;  %v8291_v32 = vld [vmem:[%s12900_s1 + $0x110] sm:$0xff]  ;;  %v8290_v34 = vld [vmem:[%s12900_s1 + $0x108] sm:$0xff]  ;;  %v8296_v39 = vld [vmem:[%s12900_s1 + $0x120] sm:$0xff] }
 0x1ee   : >> { %9441 = vmatpush3.msra.mxu1 %v8241_v0  ;;  %9442 = vmatprep.mubr.msk.f32.mxu1 %vm10571_vm12, %v10570_v51  ;;  %v8283_v33 = vld [vmem:[%s10974_s10 + $0x10] sm:$0xf]  ;;  %v8297_v37 = vld [vmem:[%s12900_s1 + $0x128] sm:$0xff]  ;;  %v8303_v40 = vld [vmem:[%s12900_s1 + $0x140] sm:$0xff] }
 0x1ef   : >> { %9446 = vmatpush3.msk.msra.mxu0 %vm1074_vm10, %v8248_v1  ;;  %9443 = vmatmul.mubr.msk.f32.vlgmr.msra.gmra.mxu1 %vm305_vm2, %v1306_v2  ;;  %v8298_v35 = vld [vmem:[%s12900_s1 + $0x130] sm:$0xf]  ;;  %v8304_v38 = vld [vmem:[%s12900_s1 + $0x148] sm:$0xf]  ;;  %v8302_v42 = vld [vmem:[%s12900_s1 + $0x138] sm:$0xff] }
 0x1f0   : >> { %9447 = vmatprep.subr.mxu0 %v10570_v51  ;;  %9454 = vmatprep.subr.mxu1 %v10570_v51  ;;  %v8289_v36 = vld [vmem:[%s10974_s10 + $0x11] sm:$0xf]  ;;  %v8310_v43 = vld [vmem:[%s12900_s1 + $0x160] sm:$0xf]  ;;  %v8309_v45 = vld [vmem:[%s12900_s1 + $0x158] sm:$0xff] }
 0x1f1   : >> { %9448 = vmatpush3.msra.mxu0 %v8247_v3  ;;  %9455 = vmatpush3.msk.msra.mxu1 %vm1074_vm10, %v8255_v4  ;;  %v8295_v41 = vld [vmem:[%s10974_s10 + $0x12] sm:$0xf]  ;;  %v8317_v46 = vld [vmem:[%s12900_s1 + $0x178] sm:$0xf]  ;;  %v8315_v52 = vld [vmem:[%s12900_s1 + $0x168] sm:$0xff] }
 0x1f2   : >> { %9449 = vmatprep.subr.mxu0 %v10570_v51  ;;  %9456 = vmatprep.subr.mxu1 %v10570_v51  ;;  %v8301_v44 = vld [vmem:[%s10974_s10 + $0x13] sm:$0xf]  ;;  %v8314_v54 = vld [vmem:[%s10974_s10 + $0x18] sm:$0xf]  ;;  %v8322_v55 = vld [vmem:[%s12900_s1 + $0x188] sm:$0xff] }
 0x1f3   : >> { %9450 = vmatpush3.msra.mxu0 %v8246_v5  ;;  %9451 = vmatprep.mubr.msk.f32.mxu0 %vm10571_vm12, %v10570_v51  ;;  %v8308_v47 = vld [vmem:[%s12900_s1 + $0x150] sm:$0xff]  ;;  %v8329_v56 = vld [vmem:[%s12900_s1 + $0x1a8] sm:$0xf]  ;;  %v8321_v57 = vld [vmem:[%s12900_s1 + $0x180] sm:$0xff] }
 0x1f4   : >> { %9457 = vmatpush3.msra.mxu1 %v8254_v6  ;;  %9452 = vmatmul.mubr.msk.f32.vlgmr.msra.gmra.mxu0 %vm305_vm2, %v1388_v7  ;;  %v8316_v49 = vld [vmem:[%s12900_s1 + $0x170] sm:$0xff]  ;;  %v8328_v58 = vld [vmem:[%s12900_s1 + $0x1a0] sm:$0xff]  ;;  %v8320_v59 = vld [vmem:[%s10974_s10 + $0x19] sm:$0xf] }
 0x1f5   : >> { %9458 = vmatprep.subr.mxu1 %v10570_v51  ;;  %9463 = vmatprep.subr.mxu0 %v10570_v51  ;;  %v8307_v50 = vld [vmem:[%s10974_s10 + $0x14] sm:$0xf]  ;;  %v8323_v53 = vld [vmem:[%s12900_s1 + $0x190] sm:$0xf]  ;;  %v8327_v60 = vld [vmem:[%s12900_s1 + $0x198] sm:$0xff] }
 0x1f6   : >> { %9459 = vmatpush3.msra.mxu1 %v8253_v8  ;;  %9460 = vmatprep.mubr.msk.f32.mxu1 %vm10571_vm12, %v10570_v51  ;;  %v8335_v61 = vld [vmem:[%s12900_s1 + $0x1c0] sm:$0xf]  ;;  %v8326_v62 = vld [vmem:[%s10974_s10 + $0x1a] sm:$0xf]  ;;  %v8333_v1 = vld [vmem:[%s12900_s1 + $0x1b0] sm:$0xff] }
 0x1f7   : >> { %9464 = vmatpush3.msk.msra.mxu0 %vm1074_vm10, %v8261_v9  ;;  %9461 = vmatmul.mubr.msk.f32.vlgmr.msra.gmra.mxu1 %vm305_vm2, %v8252_v10  ;;  %v8334_v63 = vld [vmem:[%s12900_s1 + $0x1b8] sm:$0xff]  ;;  %v8340_v2 = vld [vmem:[%s12900_s1 + $0x1d0] sm:$0xff]  ;;  %v8339_v4 = vld [vmem:[%s12900_s1 + $0x1c8] sm:$0xff] }
 0x1f8   : >> { %9465 = vmatprep.subr.mxu0 %v10570_v51  ;;  %9472 = vmatprep.subr.mxu1 %v10570_v51  ;;  %v8341_v0 = vld [vmem:[%s12900_s1 + $0x1d8] sm:$0xf]  ;;  %v8348_v5 = vld [vmem:[%s12900_s1 + $0x1f0] sm:$0xf]  ;;  %v8338_v6 = vld [vmem:[%s10974_s10 + $0x1c] sm:$0xf] }
 0x1f9   : >> { %9466 = vmatpush3.msra.mxu0 %v8260_v11  ;;  %9473 = vmatpush3.msk.msra.mxu1 %vm1074_vm10, %v8267_v12  ;;  %v8332_v3 = vld [vmem:[%s10974_s10 + $0x1b] sm:$0xf]  ;;  %v8347_v7 = vld [vmem:[%s12900_s1 + $0x1e8] sm:$0xff]  ;;  %v8346_v9 = vld [vmem:[%s12900_s1 + $0x1e0] sm:$0xff] }
 0x1fa   : >> { %9467 = vmatprep.subr.mxu0 %v10570_v51  ;;  %9474 = vmatprep.subr.mxu1 %v10570_v51  ;;  %v8354_v8 = vld [vmem:[%s12900_s1 + $0x208] sm:$0xf]  ;;  %v8353_v10 = vld [vmem:[%s12900_s1 + $0x200] sm:$0xff]  ;;  %v8352_v12 = vld [vmem:[%s12900_s1 + $0x1f8] sm:$0xff] }
 0x1fb   : >> { %9468 = vmatpush3.msra.mxu0 %v8259_v13  ;;  %9469 = vmatprep.mubr.msk.f32.mxu0 %vm10571_vm12, %v10570_v51  ;;  %v8345_v11 = vld [vmem:[%s10974_s10 + $0x20] sm:$0xf] }
 0x1fc   : >> { %9475 = vmatpush3.msra.mxu1 %v8266_v14  ;;  %9470 = vmatmul.mubr.msk.f32.vlgmr.msra.gmra.mxu0 %vm305_vm2, %v8258_v17  ;;  %v8360_v13 = vld [vmem:[%s12900_s1 + $0x220] sm:$0xf]  ;;  %v8359_v17 = vld [vmem:[%s12900_s1 + $0x218] sm:$0xff] }
 0x1fd   : >> { %9476 = vmatprep.subr.mxu1 %v10570_v51  ;;  %9481 = vmatprep.subr.mxu0 %v10570_v51  ;;  %v8351_v14 = vld [vmem:[%s10974_s10 + $0x21] sm:$0xf] }
 0x1fe   : >> { %9477 = vmatpush3.msra.mxu1 %v8265_v18  ;;  %9478 = vmatprep.mubr.msk.f32.mxu1 %vm10571_vm12, %v10570_v51  ;;  %v8366_v18 = vld [vmem:[%s12900_s1 + $0x238] sm:$0xf] }
 0x1ff   : >> { %9482 = vmatpush3.msk.msra.mxu0 %vm1074_vm10, %v8273_v19  ;;  %9479 = vmatmul.mubr.msk.f32.vlgmr.msra.gmra.mxu1 %vm305_vm2, %v8264_v20  ;;  %v8358_v19 = vld [vmem:[%s12900_s1 + $0x210] sm:$0xff] }
 0x200   : >> { %9483 = vmatprep.subr.mxu0 %v10570_v51  ;;  %9490 = vmatprep.subr.mxu1 %v10570_v51  ;;  %v8365_v20 = vld [vmem:[%s12900_s1 + $0x230] sm:$0xff] }
 0x201   : >> { %9484 = vmatpush3.msra.mxu0 %v8272_v21  ;;  %9491 = vmatpush3.msk.msra.mxu1 %vm1074_vm10, %v8279_v22  ;;  %v8357_v21 = vld [vmem:[%s10974_s10 + $0x22] sm:$0xf]  ;;  %v8364_v22 = vld [vmem:[%s12900_s1 + $0x228] sm:$0xff] }
 0x202   : >> { %9485 = vmatprep.subr.mxu0 %v10570_v51  ;;  %9492 = vmatprep.subr.mxu1 %v10570_v51 }
 0x203   : >> { %9486 = vmatpush3.msra.mxu0 %v8271_v23  ;;  %9487 = vmatprep.mubr.msk.f32.mxu0 %vm10571_vm12, %v10570_v51  ;;  %v8372_v23 = vld [vmem:[%s12900_s1 + $0x250] sm:$0xf] }
 0x204   : >> { %9493 = vmatpush3.msra.mxu1 %v8278_v24  ;;  %9488 = vmatmul.mubr.msk.f32.vlgmr.msra.gmra.mxu0 %vm305_vm2, %v8270_v25  ;;  %v8363_v24 = vld [vmem:[%s10974_s10 + $0x23] sm:$0xf]  ;;  %v8371_v25 = vld [vmem:[%s12900_s1 + $0x248] sm:$0xff] }
 0x205   : >> { %9494 = vmatprep.subr.mxu1 %v10570_v51  ;;  %9499 = vmatprep.subr.mxu0 %v10570_v51 }
 0x206   : >> { %9495 = vmatpush3.msra.mxu1 %v8277_v26  ;;  %9496 = vmatprep.mubr.msk.f32.mxu1 %vm10571_vm12, %v10570_v51  ;;  %v8370_v26 = vld [vmem:[%s12900_s1 + $0x240] sm:$0xff] }
 0x207   : >> { %9500 = vmatpush3.msk.msra.mxu0 %vm1074_vm10, %v8286_v27  ;;  %9497 = vmatmul.mubr.msk.f32.vlgmr.msra.gmra.mxu1 %vm305_vm2, %v8276_v28  ;;  %v8369_v27 = vld [vmem:[%s10974_s10 + $0x24] sm:$0xf]  ;;  %s8376_s10 = sshll.u32 %s10551_s20, 4  ;;  %s1059_s20 = sadd.s32 1, %s10551_s20  }
 0x208   : >> { %9501 = vmatprep.subr.mxu0 %v10570_v51  ;;  %9508 = vmatprep.subr.mxu1 %v10570_v51  ;;  %s8086_s19 = scalar_lea.vmem [#allocation4], %s8376_s10  ;;  %p1056_p5 = scmp.ge.s32.totalorder %s1059_s20, 4  }
 0x209   : >> { %9502 = vmatpush3.msra.mxu0 %v8285_v29  ;;  %9509 = vmatpush3.msk.msra.mxu1 %vm1074_vm10, %v8292_v30  ;;  %s11391_s23 = smov (%p1056_p5), 0  }
 0x20a   : >> { %9503 = vmatprep.subr.mxu0 %v10570_v51  ;;  %9510 = vmatprep.subr.mxu1 %v10570_v51 }
 0x20b   : >> { %9504 = vmatpush3.msra.mxu0 %v8284_v31  ;;  %9505 = vmatprep.mubr.msk.f32.mxu0 %vm10571_vm12, %v10570_v51 }
 0x20c   : >> { %9511 = vmatpush3.msra.mxu1 %v8291_v32  ;;  %9506 = vmatmul.mubr.msk.f32.vlgmr.msra.gmra.mxu0 %vm305_vm2, %v8283_v33 }
 0x20d   : >> { %9512 = vmatprep.subr.mxu1 %v10570_v51  ;;  %9517 = vmatprep.subr.mxu0 %v10570_v51 }
 0x20e   : >> { %9513 = vmatpush3.msra.mxu1 %v8290_v34  ;;  %9514 = vmatprep.mubr.msk.f32.mxu1 %vm10571_vm12, %v10570_v51 }
 0x20f   : >> { %9518 = vmatpush3.msk.msra.mxu0 %vm1074_vm10, %v8298_v35  ;;  %9515 = vmatmul.mubr.msk.f32.vlgmr.msra.gmra.mxu1 %vm305_vm2, %v8289_v36 }
 0x210   : >> { %9519 = vmatprep.subr.mxu0 %v10570_v51  ;;  %9526 = vmatprep.subr.mxu1 %v10570_v51 }
 0x211   : >> { %9520 = vmatpush3.msra.mxu0 %v8297_v37  ;;  %9527 = vmatpush3.msk.msra.mxu1 %vm1074_vm10, %v8304_v38 }
 0x212   : >> { %9521 = vmatprep.subr.mxu0 %v10570_v51  ;;  %9528 = vmatprep.subr.mxu1 %v10570_v51 }
 0x213   : >> { %9522 = vmatpush3.msra.mxu0 %v8296_v39  ;;  %9523 = vmatprep.mubr.msk.f32.mxu0 %vm10571_vm12, %v10570_v51 }
 0x214   : >> { %9529 = vmatpush3.msra.mxu1 %v8303_v40  ;;  %9524 = vmatmul.mubr.msk.f32.vlgmr.msra.gmra.mxu0 %vm305_vm2, %v8295_v41 }
 0x215   : >> { %9530 = vmatprep.subr.mxu1 %v10570_v51  ;;  %9535 = vmatprep.subr.mxu0 %v10570_v51 }
 0x216   : >> { %9531 = vmatpush3.msra.mxu1 %v8302_v42  ;;  %9532 = vmatprep.mubr.msk.f32.mxu1 %vm10571_vm12, %v10570_v51 }
 0x217   : >> { %9536 = vmatpush3.msk.msra.mxu0 %vm1074_vm10, %v8310_v43  ;;  %9533 = vmatmul.mubr.msk.f32.vlgmr.msra.gmra.mxu1 %vm305_vm2, %v8301_v44 }
 0x218   : >> { %9537 = vmatprep.subr.mxu0 %v10570_v51  ;;  %9544 = vmatprep.subr.mxu1 %v10570_v51 }
 0x219   : >> { %9538 = vmatpush3.msra.mxu0 %v8309_v45  ;;  %9545 = vmatpush3.msk.msra.mxu1 %vm1074_vm10, %v8317_v46 }
 0x21a   : >> { %9539 = vmatprep.subr.mxu0 %v10570_v51  ;;  %9546 = vmatprep.subr.mxu1 %v10570_v51 }
 0x21b   : >> { %9540 = vmatpush3.msra.mxu0 %v8308_v47  ;;  %9541 = vmatprep.mubr.msk.f32.mxu0 %vm10571_vm12, %v10570_v51 }
 0x21c   : >> { %9547 = vmatpush3.msra.mxu1 %v8316_v49  ;;  %9542 = vmatmul.mubr.msk.f32.vlgmr.msra.gmra.mxu0 %vm305_vm2, %v8307_v50 }
 0x21d   : >> { %9548 = vmatprep.subr.mxu1 %v10570_v51  ;;  %9553 = vmatprep.subr.mxu0 %v10570_v51 }
 0x21e   : >> { %9549 = vmatpush3.msra.mxu1 %v8315_v52  ;;  %9550 = vmatprep.mubr.msk.f32.mxu1 %vm10571_vm12, %v10570_v51 }
 0x21f   : >> { %9554 = vmatpush3.msk.msra.mxu0 %vm1074_vm10, %v8323_v53  ;;  %9551 = vmatmul.mubr.msk.f32.vlgmr.msra.gmra.mxu1 %vm305_vm2, %v8314_v54 }
 0x220   : >> { %9555 = vmatprep.subr.mxu0 %v10570_v51  ;;  %9562 = vmatprep.subr.mxu1 %v10570_v51 }
 0x221   : >> { %9556 = vmatpush3.msra.mxu0 %v8322_v55  ;;  %9563 = vmatpush3.msk.msra.mxu1 %vm1074_vm10, %v8329_v56 }
 0x222   : >> { %9557 = vmatprep.subr.mxu0 %v10570_v51  ;;  %9564 = vmatprep.subr.mxu1 %v10570_v51 }
 0x223   : >> { %9558 = vmatpush3.msra.mxu0 %v8321_v57  ;;  %9559 = vmatprep.mubr.msk.f32.mxu0 %vm10571_vm12, %v10570_v51 }
 0x224   : >> { %9565 = vmatpush3.msra.mxu1 %v8328_v58  ;;  %9560 = vmatmul.mubr.msk.f32.vlgmr.msra.gmra.mxu0 %vm305_vm2, %v8320_v59 }
 0x225   : >> { %9566 = vmatprep.subr.mxu1 %v10570_v51  ;;  %9571 = vmatprep.subr.mxu0 %v10570_v51 }
 0x226   : >> { %9567 = vmatpush3.msra.mxu1 %v8327_v60  ;;  %9568 = vmatprep.mubr.msk.f32.mxu1 %vm10571_vm12, %v10570_v51 }
 0x227   : >> { %9572 = vmatpush3.msk.msra.mxu0 %vm1074_vm10, %v8335_v61  ;;  %9569 = vmatmul.mubr.msk.f32.vlgmr.msra.gmra.mxu1 %vm305_vm2, %v8326_v62 }
 0x228   : >> { %9573 = vmatprep.subr.mxu0 %v10570_v51  ;;  %9580 = vmatprep.subr.mxu1 %v10570_v51 }
 0x229   : >> { %9574 = vmatpush3.msra.mxu0 %v8334_v63  ;;  %9581 = vmatpush3.msk.msra.mxu1 %vm1074_vm10, %v8341_v0 }
 0x22a   : >> { %9575 = vmatprep.subr.mxu0 %v10570_v51  ;;  %9582 = vmatprep.subr.mxu1 %v10570_v51 }
 0x22b   : >> { %9576 = vmatpush3.msra.mxu0 %v8333_v1  ;;  %9577 = vmatprep.mubr.msk.f32.mxu0 %vm10571_vm12, %v10570_v51 }
 0x22c   : >> { %9583 = vmatpush3.msra.mxu1 %v8340_v2  ;;  %9578 = vmatmul.mubr.msk.f32.vlgmr.msra.gmra.mxu0 %vm305_vm2, %v8332_v3 }
 0x22d   : >> { %9584 = vmatprep.subr.mxu1 %v10570_v51  ;;  %9589 = vmatprep.subr.mxu0 %v10570_v51 }
 0x22e   : >> { %9585 = vmatpush3.msra.mxu1 %v8339_v4  ;;  %9586 = vmatprep.mubr.msk.f32.mxu1 %vm10571_vm12, %v10570_v51 }
 0x22f   : >> { %9590 = vmatpush3.msk.msra.mxu0 %vm1074_vm10, %v8348_v5  ;;  %9587 = vmatmul.mubr.msk.f32.vlgmr.msra.gmra.mxu1 %vm305_vm2, %v8338_v6 }
 0x230   : >> { %9591 = vmatprep.subr.mxu0 %v10570_v51  ;;  %9598 = vmatprep.subr.mxu1 %v10570_v51 }
 0x231   : >> { %9592 = vmatpush3.msra.mxu0 %v8347_v7  ;;  %9599 = vmatpush3.msk.msra.mxu1 %vm1074_vm10, %v8354_v8 }
 0x232   : >> { %9593 = vmatprep.subr.mxu0 %v10570_v51  ;;  %9600 = vmatprep.subr.mxu1 %v10570_v51 }
 0x233   : >> { %9594 = vmatpush3.msra.mxu0 %v8346_v9  ;;  %9595 = vmatprep.mubr.msk.f32.mxu0 %vm10571_vm12, %v10570_v51 }
 0x234   : >> { %9601 = vmatpush3.msra.mxu1 %v8353_v10  ;;  %9596 = vmatmul.mubr.msk.f32.vlgmr.msra.gmra.mxu0 %vm305_vm2, %v8345_v11 }
 0x235   : >> { %9602 = vmatprep.subr.mxu1 %v10570_v51  ;;  %9607 = vmatprep.subr.mxu0 %v10570_v51 }
 0x236   : >> { %9603 = vmatpush3.msra.mxu1 %v8352_v12  ;;  %9604 = vmatprep.mubr.msk.f32.mxu1 %vm10571_vm12, %v10570_v51 }
 0x237   : >> { %9608 = vmatpush3.msk.msra.mxu0 %vm1074_vm10, %v8360_v13  ;;  %9605 = vmatmul.mubr.msk.f32.vlgmr.msra.gmra.mxu1 %vm305_vm2, %v8351_v14 }
 0x238   : >> { %9609 = vmatprep.subr.mxu0 %v10570_v51  ;;  %9616 = vmatprep.subr.mxu1 %v10570_v51 }
 0x239   : >> { %9610 = vmatpush3.msra.mxu0 %v8359_v17  ;;  %9617 = vmatpush3.msk.msra.mxu1 %vm1074_vm10, %v8366_v18 }
 0x23a   : >> { %9611 = vmatprep.subr.mxu0 %v10570_v51  ;;  %9618 = vmatprep.subr.mxu1 %v10570_v51 }
 0x23b   : >> { %9612 = vmatpush3.msra.mxu0 %v8358_v19  ;;  %9613 = vmatprep.mubr.msk.f32.mxu0 %vm10571_vm12, %v10570_v51 }
 0x23c   : >> { %9619 = vmatpush3.msra.mxu1 %v8365_v20  ;;  %9614 = vmatmul.mubr.msk.f32.vlgmr.msra.gmra.mxu0 %vm305_vm2, %v8357_v21 }
 0x23d   : >> { %9620 = vmatprep.subr.mxu1 %v10570_v51  ;;  %9625 = vmatprep.subr.mxu0 %v10570_v51 }
 0x23e   : >> { %9621 = vmatpush3.msra.mxu1 %v8364_v22  ;;  %9622 = vmatprep.mubr.msk.f32.mxu1 %vm10571_vm12, %v10570_v51 }
 0x23f   : >> { %9626 = vmatpush3.msk.msra.mxu0 %vm1074_vm10, %v8372_v23  ;;  %9623 = vmatmul.mubr.msk.f32.vlgmr.msra.gmra.mxu1 %vm305_vm2, %v8363_v24 }
 0x240   : >> { %9627 = vmatprep.subr.mxu0 %v10570_v51  ;;  %9631 = vmatprep.mubr.msk.f32.mxu0 %vm10571_vm12, %v10570_v51 }
 0x241   : >> { %9628 = vmatpush3.msra.mxu0 %v8371_v25 }
 0x242   : >> { %9629 = vmatprep.subr.mxu0 %v10570_v51 }
 0x243   : >> { %9630 = vmatpush3.msra.mxu0 %v8370_v26 }
 0x244   : >> { %9632 = vmatmul.mubr.msk.f32.vlgmr.msra.gmra.mxu0 %vm305_vm2, %v8369_v27 }
 0x2a5   : >> { %v1144_v28 = vpop.f32.mrf.mxu0 }
 0x2a7   : >> { %v1220_v29 = vpop.f32.mrf.mxu1  ;;  %v9417_v30 = vpop.f32.mrf.mxu0 }
 0x2a8   : >> { %v1221_v43 = vadd.f32 %v1220_v29, %v1144_v28 }
 0x2a9   : >> { %v9426_v31 = vpop.f32.mrf.mxu1 }
 0x2ac   : >> { %v1301_v32 = vpop.f32.mrf.mxu0 }
 0x2ad   : >> { %v1305_v44 = vadd.f32 %v1301_v32, %v1221_v43  ;;  %v11389_v43 = vld [vmem:[%s12903_s4] ss:$0 sm:$0xff] (%p1056_p5) }
 0x2ae   : >> { %v9435_v33 = vpop.f32.mrf.mxu0 }
 0x2af   : >> { %v1383_v34 = vpop.f32.mrf.mxu1 }
 0x2b0   : >> { %v1387_v47 = vadd.f32 %v1383_v34, %v1305_v44 }
 0x2b1   : >> { %v9444_v35 = vpop.f32.mrf.mxu1 }
 0x2b4   : >> { %v1465_v36 = vpop.f32.mrf.mxu0 }
 0x2b5   : >> { %v1469_v50 = vadd.f32 %v1465_v36, %v1387_v47 }
 0x2b6   : >> { %v9453_v37 = vpop.f32.mrf.mxu0 }
 0x2b7   : >> { %v1550_v38 = vpop.f32.mrf.mxu1 }
 0x2b8   : >> { %v1554_v54 = vadd.f32 %v1550_v38, %v1469_v50 }
 0x2b9   : >> { %v9462_v39 = vpop.f32.mrf.mxu1 }
 0x2bc   : >> { %v1632_v40 = vpop.f32.mrf.mxu0 }
 0x2bd   : >> { %v1636_v56 = vadd.f32 %v1632_v40, %v1554_v54 }
 0x2be   : >> { %v9471_v41 = vpop.f32.mrf.mxu0 }
 0x2bf   : >> { %v1714_v42 = vpop.f32.mrf.mxu1 }
 0x2c0   : >> { %v1718_v59 = vadd.f32 %v1714_v42, %v1636_v56 }
 0x2c1   : >> { %v9480_v51 = vpop.f32.mrf.mxu1 }
 0x2c4   : >> { %v1796_v45 = vpop.f32.mrf.mxu0 }
 0x2c5   : >> { %v1800_v61 = vadd.f32 %v1796_v45, %v1718_v59 }
 0x2c6   : >> { %v9489_v46 = vpop.f32.mrf.mxu0 }
 0x2c7   : >> { %v1878_v49 = vpop.f32.mrf.mxu1 }
 0x2c8   : >> { %v1882_v0 = vadd.f32 %v1878_v49, %v1800_v61 }
 0x2c9   : >> { %v9498_v52 = vpop.f32.mrf.mxu1 }
 0x2cc   : >> { %v1963_v53 = vpop.f32.mrf.mxu0 }
 0x2cd   : >> { %v1967_v2 = vadd.f32 %v1963_v53, %v1882_v0 }
 0x2ce   : >> { %v9507_v55 = vpop.f32.mrf.mxu0 }
 0x2cf   : >> { %v2045_v57 = vpop.f32.mrf.mxu1 }
 0x2d0   : >> { %v2049_v5 = vadd.f32 %v2045_v57, %v1967_v2 }
 0x2d1   : >> { %v9516_v58 = vpop.f32.mrf.mxu1 }
 0x2d4   : >> { %v2127_v60 = vpop.f32.mrf.mxu0 }
 0x2d5   : >> { %v2131_v7 = vadd.f32 %v2127_v60, %v2049_v5 }
 0x2d6   : >> { %v9525_v62 = vpop.f32.mrf.mxu0 }
 0x2d7   : >> { %v2209_v63 = vpop.f32.mrf.mxu1 }
 0x2d8   : >> { %v2213_v10 = vadd.f32 %v2209_v63, %v2131_v7 }
 0x2d9   : >> { %v9534_v1 = vpop.f32.mrf.mxu1 }
 0x2dc   : >> { %v2291_v3 = vpop.f32.mrf.mxu0 }
 0x2dd   : >> { %v2295_v12 = vadd.f32 %v2291_v3, %v2213_v10 }
 0x2de   : >> { %v9543_v4 = vpop.f32.mrf.mxu0 }
 0x2df   : >> { %v2376_v6 = vpop.f32.mrf.mxu1 }
 0x2e0   : >> { %v2380_v17 = vadd.f32 %v2376_v6, %v2295_v12 }
 0x2e1   : >> { %v9552_v8 = vpop.f32.mrf.mxu1 }
 0x2e4   : >> { %v2458_v9 = vpop.f32.mrf.mxu0 }
 0x2e5   : >> { %v2462_v19 = vadd.f32 %v2458_v9, %v2380_v17 }
 0x2e6   : >> { %v9561_v11 = vpop.f32.mrf.mxu0 }
 0x2e7   : >> { %v2540_v13 = vpop.f32.mrf.mxu1 }
 0x2e8   : >> { %v2544_v22 = vadd.f32 %v2540_v13, %v2462_v19 }
 0x2e9   : >> { %v9570_v14 = vpop.f32.mrf.mxu1 }
 0x2ec   : >> { %v2622_v18 = vpop.f32.mrf.mxu0 }
 0x2ed   : >> { %v2626_v24 = vadd.f32 %v2622_v18, %v2544_v22 }
 0x2ee   : >> { %v9579_v20 = vpop.f32.mrf.mxu0 }
 0x2ef   : >> { %v2704_v21 = vpop.f32.mrf.mxu1 }
 0x2f0   : >> { %v2708_v27 = vadd.f32 %v2704_v21, %v2626_v24 }
 0x2f1   : >> { %v9588_v23 = vpop.f32.mrf.mxu1 }
 0x2f4   : >> { %v2789_v25 = vpop.f32.mrf.mxu0 }
 0x2f5   : >> { %v2793_v29 = vadd.f32 %v2789_v25, %v2708_v27 }
 0x2f6   : >> { %v9597_v26 = vpop.f32.mrf.mxu0 }
 0x2f7   : >> { %v2871_v28 = vpop.f32.mrf.mxu1 }
 0x2f8   : >> { %v2875_v32 = vadd.f32 %v2871_v28, %v2793_v29 }
 0x2f9   : >> { %v9606_v30 = vpop.f32.mrf.mxu1 }
 0x2fc   : >> { %v2953_v31 = vpop.f32.mrf.mxu0 }
 0x2fd   : >> { %v2957_v34 = vadd.f32 %v2953_v31, %v2875_v32 }
 0x2fe   : >> { %v9615_v33 = vpop.f32.mrf.mxu0 }
 0x2ff   : >> { %v3035_v35 = vpop.f32.mrf.mxu1 }
 0x300   : >> { %v3039_v37 = vadd.f32 %v3035_v35, %v2957_v34 }
 0x301   : >> { %v9624_v36 = vpop.f32.mrf.mxu1 }
 0x304   : >> { %v3117_v38 = vpop.f32.mrf.mxu0 }
 0x305   : >> { %v3121_v39 = vadd.f32 %v3117_v38, %v3039_v37 }
 0x306   : >> { %v9633_v40 = vpop.f32.mrf.mxu0 }
 0x307   : >> { %v3128_v41 = vadd.f32 %v10945_v48, %v3121_v39  ;;  %1058 = sbr.rel (!%p1056_p5) target bundleno = 478 (0x1de), region = 224 }
 0x309   : >> { %v3129_v42 = vmax.f32 %v3128_v41, 0.0 }
 0x30b   : >> { %8377 = vst.msk [vmem:[%s8086_s19 + $0x44] sm:$0xf] %vm281_vm1, %v3129_v42 }
 0x30c LB: >> { %v8385_v51 = vld [vmem:[%s12902_s3 + $0x68] sm:$0x3]  ;;  %vm3162_vm13 = vcmask 1041408   ;;  %v3149_v48 = vld [vmem:[%s12902_s3 + $0x30] sm:$0x3]  ;;  %v10572_v44 = vmov 0.0   ;;  %s10555_s23 = sphi %s11391_s23, %s3139_s23  }
 0x30d   : >> { %9634 = vmatprep.subr.mxu0 %v10572_v44  ;;  %9651 = vmatprep.subr.mxu1 %v10572_v44  ;;  %v8384_v45 = vld [vmem:[%s12902_s3 + $0x60] sm:$0xff]  ;;  %v3148_v46 = vld [vmem:[%s12902_s3 + $0x28] sm:$0xff]  ;;  %v8383_v47 = vld [vmem:[%s12902_s3 + $0x58] sm:$0xff]  ;;  %s8378_s10 = sshll.u32 %s10555_s23, 4  ;;  %vm10573_vm1 = vmmov 0  }
 0x30e   : >> { %9635 = vmatpush3.msk.msra.mxu0 %vm3162_vm13, %v8385_v51  ;;  %9652 = vmatpush3.msk.msra.mxu1 %vm3162_vm13, %v3149_v48  ;;  %v3147_v49 = vld [vmem:[%s12902_s3 + $0x20] sm:$0xff]  ;;  %v8382_v50 = vld [vmem:[%s12902_s3 + $0x50] sm:$0xff]  ;;  %v3146_v52 = vld [vmem:[%s12902_s3 + $0x18] sm:$0xff]  ;;  %s11450_s8 = scalar_lea.vmem [#allocation4], %s8378_s10 }
 0x30f   : >> { %9636 = vmatprep.subr.mxu0 %v10572_v44  ;;  %9653 = vmatprep.subr.mxu1 %v10572_v44  ;;  %v8381_v53 = vld [vmem:[%s12902_s3 + $0x48] sm:$0xff]  ;;  %v3145_v54 = vld [vmem:[%s12902_s3 + $0x10] sm:$0xff]  ;;  %v8380_v55 = vld [vmem:[%s12902_s3 + $0x40] sm:$0xff] }
 0x310   : >> { %9637 = vmatpush3.msra.mxu0 %v8384_v45  ;;  %9654 = vmatpush3.msra.mxu1 %v3148_v46  ;;  %v3144_v56 = vld [vmem:[%s12902_s3 + $0x8] sm:$0xff]  ;;  %v8379_v57 = vld [vmem:[%s12902_s3 + $0x38] sm:$0xff]  ;;  %v3143_v59 = vld [vmem:[%s12902_s3] sm:$0xff] }
 0x311   : >> { %9638 = vmatprep.subr.mxu0 %v10572_v44  ;;  %9655 = vmatprep.subr.mxu1 %v10572_v44  ;;  %v8396_v61 = vld [vmem:[%s12902_s3 + $0xa0] sm:$0x3]  ;;  %v8395_v62 = vld [vmem:[%s12902_s3 + $0x98] sm:$0xff]  ;;  %v8394_v0 = vld [vmem:[%s12902_s3 + $0x90] sm:$0xff] }
 0x312   : >> { %9639 = vmatpush3.msra.mxu0 %v8383_v47  ;;  %9656 = vmatpush3.msra.mxu1 %v3147_v49  ;;  %v3150_v58 = vld [vmem:[%s11450_s8 + $0x1] sm:$0xff]  ;;  %v8405_v63 = vld [vmem:[%s12902_s3 + $0xd8] sm:$0x3]  ;;  %v8404_v1 = vld [vmem:[%s12902_s3 + $0xd0] sm:$0xff] }
 0x313   : >> { %9640 = vmatprep.subr.mxu0 %v10572_v44  ;;  %9657 = vmatprep.subr.mxu1 %v10572_v44  ;;  %v3142_v60 = vld [vmem:[%s11450_s8] sm:$0xff]  ;;  %v8393_v2 = vld [vmem:[%s12902_s3 + $0x88] sm:$0xff]  ;;  %v8391_v6 = vld [vmem:[%s12902_s3 + $0x78] sm:$0xff] }
 0x314   : >> { %9641 = vmatpush3.msra.mxu0 %v8382_v50  ;;  %9658 = vmatpush3.msra.mxu1 %v3146_v52  ;;  %v8403_v3 = vld [vmem:[%s12902_s3 + $0xc8] sm:$0xff]  ;;  %v8392_v4 = vld [vmem:[%s12902_s3 + $0x80] sm:$0xff]  ;;  %v8401_v7 = vld [vmem:[%s12902_s3 + $0xb8] sm:$0xff] }
 0x315   : >> { %9642 = vmatprep.subr.mxu0 %v10572_v44  ;;  %9659 = vmatprep.subr.mxu1 %v10572_v44  ;;  %v8402_v5 = vld [vmem:[%s12902_s3 + $0xc0] sm:$0xff]  ;;  %v8390_v8 = vld [vmem:[%s12902_s3 + $0x70] sm:$0xff]  ;;  %v8399_v11 = vld [vmem:[%s12902_s3 + $0xa8] sm:$0xff] }
 0x316   : >> { %9643 = vmatpush3.msra.mxu0 %v8381_v53  ;;  %9660 = vmatpush3.msra.mxu1 %v3145_v54  ;;  %v8400_v9 = vld [vmem:[%s12902_s3 + $0xb0] sm:$0xff]  ;;  %v3312_v10 = vld [vmem:[%s11450_s8 + $0x2] sm:$0xff]  ;;  %v8411_v20 = vld [vmem:[%s12902_s3 + $0xf8] sm:$0xff] }
 0x317   : >> { %9644 = vmatprep.subr.mxu0 %v10572_v44  ;;  %9661 = vmatprep.subr.mxu1 %v10572_v44  ;;  %v8414_v12 = vld [vmem:[%s12902_s3 + $0x110] sm:$0x3]  ;;  %v3398_v13 = vld [vmem:[%s11450_s8 + $0x3] sm:$0xff]  ;;  %v8423_v21 = vld [vmem:[%s12902_s3 + $0x138] sm:$0xff] }
 0x318   : >> { %9645 = vmatpush3.msra.mxu0 %v8380_v55  ;;  %9662 = vmatpush3.msra.mxu1 %v3144_v56  ;;  %v8413_v14 = vld [vmem:[%s12902_s3 + $0x108] sm:$0xff]  ;;  %v8412_v18 = vld [vmem:[%s12902_s3 + $0x100] sm:$0xff]  ;;  %v8410_v22 = vld [vmem:[%s12902_s3 + $0xf0] sm:$0xff] }
 0x319   : >> { %9646 = vmatprep.subr.mxu0 %v10572_v44  ;;  %9648 = vmatprep.mubr.msk.f32.mxu0 %vm10573_vm1, %v10572_v44  ;;  %v8425_v17 = vld [vmem:[%s12902_s3 + $0x148] sm:$0x3]  ;;  %v8424_v19 = vld [vmem:[%s12902_s3 + $0x140] sm:$0xff]  ;;  %v8422_v23 = vld [vmem:[%s12902_s3 + $0x130] sm:$0xff] }
 0x31a   : >> { %9647 = vmatpush3.msra.mxu0 %v8379_v57  ;;  %9663 = vmatprep.subr.mxu1 %v10572_v44  ;;  %v8409_v24 = vld [vmem:[%s12902_s3 + $0xe8] sm:$0xff]  ;;  %v8408_v26 = vld [vmem:[%s12902_s3 + $0xe0] sm:$0xff]  ;;  %v8419_v29 = vld [vmem:[%s12902_s3 + $0x118] sm:$0xff] }
 0x31b   : >> { %9649 = vmatmul.mubr.msk.f32.vlgmr.msra.gmra.mxu0 %vm279_vm0, %v3150_v58  ;;  %9664 = vmatpush3.msra.mxu1 %v3143_v59  ;;  %v8421_v25 = vld [vmem:[%s12902_s3 + $0x128] sm:$0xff]  ;;  %v8420_v27 = vld [vmem:[%s12902_s3 + $0x120] sm:$0xff]  ;;  %v8418_v31 = vld [vmem:[%s11450_s8 + $0x10] sm:$0xff] }
 0x31c   : >> { %9665 = vmatprep.mubr.msk.f32.mxu1 %vm10573_vm1, %v10572_v44  ;;  %9668 = vmatprep.subr.mxu0 %v10572_v44  ;;  %v3484_v28 = vld [vmem:[%s11450_s8 + $0x4] sm:$0xff]  ;;  %v8435_v30 = vld [vmem:[%s12902_s3 + $0x180] sm:$0x3]  ;;  %v8434_v32 = vld [vmem:[%s12902_s3 + $0x178] sm:$0xff] }
 0x31d   : >> { %9666 = vmatmul.mubr.msk.f32.vlgmr.msra.gmra.mxu1 %vm279_vm0, %v3142_v60  ;;  %9669 = vmatpush3.msk.msra.mxu0 %vm3162_vm13, %v8396_v61  ;;  %v8445_v33 = vld [vmem:[%s12902_s3 + $0x1b8] sm:$0x3]  ;;  %v8433_v34 = vld [vmem:[%s12902_s3 + $0x170] sm:$0xff]  ;;  %v8432_v36 = vld [vmem:[%s12902_s3 + $0x168] sm:$0xff] }
 0x31e   : >> { %9670 = vmatprep.subr.mxu0 %v10572_v44  ;;  %9685 = vmatprep.subr.mxu1 %v10572_v44  ;;  %v8444_v35 = vld [vmem:[%s12902_s3 + $0x1b0] sm:$0xff]  ;;  %v8443_v37 = vld [vmem:[%s12902_s3 + $0x1a8] sm:$0xff]  ;;  %v8431_v38 = vld [vmem:[%s12902_s3 + $0x160] sm:$0xff] }
 0x31f   : >> { %9671 = vmatpush3.msra.mxu0 %v8395_v62  ;;  %9686 = vmatpush3.msk.msra.mxu1 %vm3162_vm13, %v8405_v63  ;;  %v8442_v39 = vld [vmem:[%s12902_s3 + $0x1a0] sm:$0xff]  ;;  %v8430_v40 = vld [vmem:[%s12902_s3 + $0x158] sm:$0xff]  ;;  %v8429_v42 = vld [vmem:[%s12902_s3 + $0x150] sm:$0xff] }
 0x320   : >> { %9672 = vmatprep.subr.mxu0 %v10572_v44  ;;  %9687 = vmatprep.subr.mxu1 %v10572_v44  ;;  %v8441_v41 = vld [vmem:[%s12902_s3 + $0x198] sm:$0xff]  ;;  %v8440_v51 = vld [vmem:[%s12902_s3 + $0x190] sm:$0xff]  ;;  %v8439_v45 = vld [vmem:[%s12902_s3 + $0x188] sm:$0xff] }
 0x321   : >> { %9673 = vmatpush3.msra.mxu0 %v8394_v0  ;;  %9688 = vmatpush3.msra.mxu1 %v8404_v1  ;;  %v8428_v48 = vld [vmem:[%s11450_s8 + $0x11] sm:$0xff]  ;;  %v8454_v49 = vld [vmem:[%s12902_s3 + $0x1e8] sm:$0xff]  ;;  %v8453_v52 = vld [vmem:[%s12902_s3 + $0x1e0] sm:$0xff] }
 0x322   : >> { %9674 = vmatprep.subr.mxu0 %v10572_v44  ;;  %9689 = vmatprep.subr.mxu1 %v10572_v44  ;;  %v8455_v46 = vld [vmem:[%s12902_s3 + $0x1f0] sm:$0x3]  ;;  %v8438_v47 = vld [vmem:[%s11450_s8 + $0x12] sm:$0xff]  ;;  %v8465_v50 = vld [vmem:[%s12902_s3 + $0x228] sm:$0x3] }
 0x323   : >> { %9675 = vmatpush3.msra.mxu0 %v8393_v2  ;;  %9690 = vmatpush3.msra.mxu1 %v8403_v3  ;;  %v8464_v53 = vld [vmem:[%s12902_s3 + $0x220] sm:$0xff]  ;;  %v8452_v54 = vld [vmem:[%s12902_s3 + $0x1d8] sm:$0xff]  ;;  %v8451_v56 = vld [vmem:[%s12902_s3 + $0x1d0] sm:$0xff] }
 0x324   : >> { %9676 = vmatprep.subr.mxu0 %v10572_v44  ;;  %9691 = vmatprep.subr.mxu1 %v10572_v44  ;;  %v8463_v55 = vld [vmem:[%s12902_s3 + $0x218] sm:$0xff]  ;;  %v8462_v57 = vld [vmem:[%s12902_s3 + $0x210] sm:$0xff]  ;;  %v8450_v58 = vld [vmem:[%s12902_s3 + $0x1c8] sm:$0xff] }
 0x325   : >> { %9677 = vmatpush3.msra.mxu0 %v8392_v4  ;;  %9692 = vmatpush3.msra.mxu1 %v8402_v5  ;;  %v8461_v59 = vld [vmem:[%s12902_s3 + $0x208] sm:$0xff]  ;;  %v8449_v60 = vld [vmem:[%s12902_s3 + $0x1c0] sm:$0xff]  ;;  %v8448_v62 = vld [vmem:[%s11450_s8 + $0x13] sm:$0xff] }
 0x326   : >> { %9678 = vmatprep.subr.mxu0 %v10572_v44  ;;  %9693 = vmatprep.subr.mxu1 %v10572_v44  ;;  %v8460_v61 = vld [vmem:[%s12902_s3 + $0x200] sm:$0xff]  ;;  %v8459_v63 = vld [vmem:[%s12902_s3 + $0x1f8] sm:$0xff]  ;;  %v8474_v4 = vld [vmem:[%s12902_s3 + $0x250] sm:$0xff] }
 0x327   : >> { %9679 = vmatpush3.msra.mxu0 %v8391_v6  ;;  %9694 = vmatpush3.msra.mxu1 %v8401_v7  ;;  %v8476_v0 = vld [vmem:[%s12902_s3 + $0x260] sm:$0x3]  ;;  %v8458_v1 = vld [vmem:[%s11450_s8 + $0x14] sm:$0xff]  ;;  %v8473_v6 = vld [vmem:[%s12902_s3 + $0x248] sm:$0xff] }
 0x328   : >> { %9680 = vmatprep.subr.mxu0 %v10572_v44  ;;  %9695 = vmatprep.subr.mxu1 %v10572_v44  ;;  %v8475_v2 = vld [vmem:[%s12902_s3 + $0x258] sm:$0xff]  ;;  %v8485_v5 = vld [vmem:[%s12902_s3 + $0x290] sm:$0xff]  ;;  %v8484_v7 = vld [vmem:[%s12902_s3 + $0x288] sm:$0xff] }
 0x329   : >> { %9681 = vmatpush3.msra.mxu0 %v8390_v8  ;;  %9682 = vmatprep.mubr.msk.f32.mxu0 %vm10573_vm1, %v10572_v44  ;;  %v8486_v3 = vld [vmem:[%s12902_s3 + $0x298] sm:$0x3]  ;;  %v8472_v8 = vld [vmem:[%s12902_s3 + $0x240] sm:$0xff] }
 0x32a   : >> { %9696 = vmatpush3.msra.mxu1 %v8400_v9  ;;  %9683 = vmatmul.mubr.msk.f32.vlgmr.msra.gmra.mxu0 %vm279_vm0, %v3312_v10  ;;  %v8483_v9 = vld [vmem:[%s12902_s3 + $0x280] sm:$0xff]  ;;  %v8471_v10 = vld [vmem:[%s12902_s3 + $0x238] sm:$0xff] }
 0x32b   : >> { %9697 = vmatprep.subr.mxu1 %v10572_v44  ;;  %9702 = vmatprep.subr.mxu0 %v10572_v44 }
 0x32c   : >> { %9698 = vmatpush3.msra.mxu1 %v8399_v11  ;;  %9699 = vmatprep.mubr.msk.f32.mxu1 %vm10573_vm1, %v10572_v44  ;;  %v8482_v11 = vld [vmem:[%s12902_s3 + $0x278] sm:$0xff] }
 0x32d   : >> { %9703 = vmatpush3.msk.msra.mxu0 %vm3162_vm13, %v8414_v12  ;;  %9700 = vmatmul.mubr.msk.f32.vlgmr.msra.gmra.mxu1 %vm279_vm0, %v3398_v13  ;;  %v8470_v12 = vld [vmem:[%s12902_s3 + $0x230] sm:$0xff] }
 0x32e   : >> { %9704 = vmatprep.subr.mxu0 %v10572_v44  ;;  %9719 = vmatprep.subr.mxu1 %v10572_v44  ;;  %v8481_v13 = vld [vmem:[%s12902_s3 + $0x270] sm:$0xff] }
 0x32f   : >> { %9705 = vmatpush3.msra.mxu0 %v8413_v14  ;;  %9720 = vmatpush3.msk.msra.mxu1 %vm3162_vm13, %v8425_v17  ;;  %v8469_v14 = vld [vmem:[%s11450_s8 + $0x20] sm:$0xff]  ;;  %v8480_v17 = vld [vmem:[%s12902_s3 + $0x268] sm:$0xff] }
 0x330   : >> { %9706 = vmatprep.subr.mxu0 %v10572_v44  ;;  %9721 = vmatprep.subr.mxu1 %v10572_v44 }
 0x331   : >> { %9707 = vmatpush3.msra.mxu0 %v8412_v18  ;;  %9722 = vmatpush3.msra.mxu1 %v8424_v19  ;;  %v8496_v18 = vld [vmem:[%s12902_s3 + $0x2d0] sm:$0x3]  ;;  %v8479_v19 = vld [vmem:[%s11450_s8 + $0x21] sm:$0xff] }
 0x332   : >> { %9708 = vmatprep.subr.mxu0 %v10572_v44  ;;  %9723 = vmatprep.subr.mxu1 %v10572_v44 }
 0x333   : >> { %9709 = vmatpush3.msra.mxu0 %v8411_v20  ;;  %9724 = vmatpush3.msra.mxu1 %v8423_v21  ;;  %v8495_v20 = vld [vmem:[%s12902_s3 + $0x2c8] sm:$0xff] }
 0x334   : >> { %9710 = vmatprep.subr.mxu0 %v10572_v44  ;;  %9725 = vmatprep.subr.mxu1 %v10572_v44  ;;  %v8506_v21 = vld [vmem:[%s12902_s3 + $0x308] sm:$0x3] }
 0x335   : >> { %9711 = vmatpush3.msra.mxu0 %v8410_v22  ;;  %9726 = vmatpush3.msra.mxu1 %v8422_v23  ;;  %v8494_v22 = vld [vmem:[%s12902_s3 + $0x2c0] sm:$0xff] }
 0x336   : >> { %9712 = vmatprep.subr.mxu0 %v10572_v44  ;;  %9727 = vmatprep.subr.mxu1 %v10572_v44  ;;  %v8505_v23 = vld [vmem:[%s12902_s3 + $0x300] sm:$0xff] }
 0x337   : >> { %9713 = vmatpush3.msra.mxu0 %v8409_v24  ;;  %9728 = vmatpush3.msra.mxu1 %v8421_v25  ;;  %v8493_v24 = vld [vmem:[%s12902_s3 + $0x2b8] sm:$0xff] }
 0x338   : >> { %9714 = vmatprep.subr.mxu0 %v10572_v44  ;;  %9729 = vmatprep.subr.mxu1 %v10572_v44  ;;  %v8504_v25 = vld [vmem:[%s12902_s3 + $0x2f8] sm:$0xff] }
 0x339   : >> { %9715 = vmatpush3.msra.mxu0 %v8408_v26  ;;  %9716 = vmatprep.mubr.msk.f32.mxu0 %vm10573_vm1, %v10572_v44  ;;  %v8492_v26 = vld [vmem:[%s12902_s3 + $0x2b0] sm:$0xff] }
 0x33a   : >> { %9730 = vmatpush3.msra.mxu1 %v8420_v27  ;;  %9717 = vmatmul.mubr.msk.f32.vlgmr.msra.gmra.mxu0 %vm279_vm0, %v3484_v28  ;;  %v8503_v27 = vld [vmem:[%s12902_s3 + $0x2f0] sm:$0xff]  ;;  %v8491_v28 = vld [vmem:[%s12902_s3 + $0x2a8] sm:$0xff] }
 0x33b   : >> { %9731 = vmatprep.subr.mxu1 %v10572_v44  ;;  %9736 = vmatprep.subr.mxu0 %v10572_v44 }
 0x33c   : >> { %9732 = vmatpush3.msra.mxu1 %v8419_v29  ;;  %9733 = vmatprep.mubr.msk.f32.mxu1 %vm10573_vm1, %v10572_v44  ;;  %v8502_v29 = vld [vmem:[%s12902_s3 + $0x2e8] sm:$0xff] }
 0x33d   : >> { %9737 = vmatpush3.msk.msra.mxu0 %vm3162_vm13, %v8435_v30  ;;  %9734 = vmatmul.mubr.msk.f32.vlgmr.msra.gmra.mxu1 %vm279_vm0, %v8418_v31  ;;  %v8490_v30 = vld [vmem:[%s12902_s3 + $0x2a0] sm:$0xff] }
 0x33e   : >> { %9738 = vmatprep.subr.mxu0 %v10572_v44  ;;  %9753 = vmatprep.subr.mxu1 %v10572_v44  ;;  %v8501_v31 = vld [vmem:[%s12902_s3 + $0x2e0] sm:$0xff] }
 0x33f   : >> { %9739 = vmatpush3.msra.mxu0 %v8434_v32  ;;  %9754 = vmatpush3.msk.msra.mxu1 %vm3162_vm13, %v8445_v33  ;;  %v8489_v32 = vld [vmem:[%s11450_s8 + $0x22] sm:$0xff]  ;;  %v8500_v33 = vld [vmem:[%s12902_s3 + $0x2d8] sm:$0xff] }
 0x340   : >> { %9740 = vmatprep.subr.mxu0 %v10572_v44  ;;  %9755 = vmatprep.subr.mxu1 %v10572_v44 }
 0x341   : >> { %9741 = vmatpush3.msra.mxu0 %v8433_v34  ;;  %9756 = vmatpush3.msra.mxu1 %v8444_v35  ;;  %v8516_v34 = vld [vmem:[%s12902_s3 + $0x340] sm:$0x3]  ;;  %v8499_v35 = vld [vmem:[%s11450_s8 + $0x23] sm:$0xff] }
 0x342   : >> { %9742 = vmatprep.subr.mxu0 %v10572_v44  ;;  %9757 = vmatprep.subr.mxu1 %v10572_v44 }
 0x343   : >> { %9743 = vmatpush3.msra.mxu0 %v8432_v36  ;;  %9758 = vmatpush3.msra.mxu1 %v8443_v37  ;;  %v8515_v36 = vld [vmem:[%s12902_s3 + $0x338] sm:$0xff] }
 0x344   : >> { %9744 = vmatprep.subr.mxu0 %v10572_v44  ;;  %9759 = vmatprep.subr.mxu1 %v10572_v44  ;;  %v8527_v37 = vld [vmem:[%s12902_s3 + $0x378] sm:$0x3] }
 0x345   : >> { %9745 = vmatpush3.msra.mxu0 %v8431_v38  ;;  %9760 = vmatpush3.msra.mxu1 %v8442_v39  ;;  %v8514_v38 = vld [vmem:[%s12902_s3 + $0x330] sm:$0xff] }
 0x346   : >> { %9746 = vmatprep.subr.mxu0 %v10572_v44  ;;  %9761 = vmatprep.subr.mxu1 %v10572_v44  ;;  %v8526_v39 = vld [vmem:[%s12902_s3 + $0x370] sm:$0xff] }
 0x347   : >> { %9747 = vmatpush3.msra.mxu0 %v8430_v40  ;;  %9762 = vmatpush3.msra.mxu1 %v8441_v41  ;;  %v8513_v40 = vld [vmem:[%s12902_s3 + $0x328] sm:$0xff] }
 0x348   : >> { %9748 = vmatprep.subr.mxu0 %v10572_v44  ;;  %9763 = vmatprep.subr.mxu1 %v10572_v44  ;;  %v8525_v41 = vld [vmem:[%s12902_s3 + $0x368] sm:$0xff] }
 0x349   : >> { %9749 = vmatpush3.msra.mxu0 %v8429_v42  ;;  %9750 = vmatprep.mubr.msk.f32.mxu0 %vm10573_vm1, %v10572_v44  ;;  %v8512_v42 = vld [vmem:[%s12902_s3 + $0x320] sm:$0xff] }
 0x34a   : >> { %9764 = vmatpush3.msra.mxu1 %v8440_v51  ;;  %9751 = vmatmul.mubr.msk.f32.vlgmr.msra.gmra.mxu0 %vm279_vm0, %v8428_v48  ;;  %v8524_v51 = vld [vmem:[%s12902_s3 + $0x360] sm:$0xff]  ;;  %v8511_v48 = vld [vmem:[%s12902_s3 + $0x318] sm:$0xff] }
 0x34b   : >> { %9765 = vmatprep.subr.mxu1 %v10572_v44  ;;  %9770 = vmatprep.subr.mxu0 %v10572_v44 }
 0x34c   : >> { %9766 = vmatpush3.msra.mxu1 %v8439_v45  ;;  %9767 = vmatprep.mubr.msk.f32.mxu1 %vm10573_vm1, %v10572_v44  ;;  %v8523_v45 = vld [vmem:[%s12902_s3 + $0x358] sm:$0xff] }
 0x34d   : >> { %9771 = vmatpush3.msk.msra.mxu0 %vm3162_vm13, %v8455_v46  ;;  %9768 = vmatmul.mubr.msk.f32.vlgmr.msra.gmra.mxu1 %vm279_vm0, %v8438_v47  ;;  %v8510_v46 = vld [vmem:[%s12902_s3 + $0x310] sm:$0xff] }
 0x34e   : >> { %9772 = vmatprep.subr.mxu0 %v10572_v44  ;;  %9787 = vmatprep.subr.mxu1 %v10572_v44  ;;  %v8522_v47 = vld [vmem:[%s12902_s3 + $0x350] sm:$0xff] }
 0x34f   : >> { %9773 = vmatpush3.msra.mxu0 %v8454_v49  ;;  %9788 = vmatpush3.msk.msra.mxu1 %vm3162_vm13, %v8465_v50  ;;  %v8509_v49 = vld [vmem:[%s11450_s8 + $0x24] sm:$0xff] }
 0x350   : >> { %9774 = vmatprep.subr.mxu0 %v10572_v44  ;;  %9789 = vmatprep.subr.mxu1 %v10572_v44  ;;  %v8521_v50 = vld [vmem:[%s12902_s3 + $0x348] sm:$0xff] }
 0x351   : >> { %9775 = vmatpush3.msra.mxu0 %v8453_v52  ;;  %9790 = vmatpush3.msra.mxu1 %v8464_v53  ;;  %v8537_v52 = vld [vmem:[%s12902_s3 + $0x3b0] sm:$0x3] }
 0x352   : >> { %9776 = vmatprep.subr.mxu0 %v10572_v44  ;;  %9791 = vmatprep.subr.mxu1 %v10572_v44  ;;  %v8520_v53 = vld [vmem:[%s11450_s8 + $0x30] sm:$0xff] }
 0x353   : >> { %9777 = vmatpush3.msra.mxu0 %v8452_v54  ;;  %9792 = vmatpush3.msra.mxu1 %v8463_v55  ;;  %v8536_v54 = vld [vmem:[%s12902_s3 + $0x3a8] sm:$0xff] }
 0x354   : >> { %9778 = vmatprep.subr.mxu0 %v10572_v44  ;;  %9793 = vmatprep.subr.mxu1 %v10572_v44  ;;  %v8547_v55 = vld [vmem:[%s12902_s3 + $0x3e8] sm:$0x3] }
 0x355   : >> { %9779 = vmatpush3.msra.mxu0 %v8451_v56  ;;  %9794 = vmatpush3.msra.mxu1 %v8462_v57  ;;  %v8535_v56 = vld [vmem:[%s12902_s3 + $0x3a0] sm:$0xff] }
 0x356   : >> { %9780 = vmatprep.subr.mxu0 %v10572_v44  ;;  %9795 = vmatprep.subr.mxu1 %v10572_v44  ;;  %v8546_v57 = vld [vmem:[%s12902_s3 + $0x3e0] sm:$0xff] }
 0x357   : >> { %9781 = vmatpush3.msra.mxu0 %v8450_v58  ;;  %9796 = vmatpush3.msra.mxu1 %v8461_v59  ;;  %v8534_v58 = vld [vmem:[%s12902_s3 + $0x398] sm:$0xff] }
 0x358   : >> { %9782 = vmatprep.subr.mxu0 %v10572_v44  ;;  %9797 = vmatprep.subr.mxu1 %v10572_v44  ;;  %v8545_v59 = vld [vmem:[%s12902_s3 + $0x3d8] sm:$0xff] }
 0x359   : >> { %9783 = vmatpush3.msra.mxu0 %v8449_v60  ;;  %9784 = vmatprep.mubr.msk.f32.mxu0 %vm10573_vm1, %v10572_v44  ;;  %v8533_v60 = vld [vmem:[%s12902_s3 + $0x390] sm:$0xff] }
 0x35a   : >> { %9798 = vmatpush3.msra.mxu1 %v8460_v61  ;;  %9785 = vmatmul.mubr.msk.f32.vlgmr.msra.gmra.mxu0 %vm279_vm0, %v8448_v62  ;;  %v8544_v61 = vld [vmem:[%s12902_s3 + $0x3d0] sm:$0xff]  ;;  %v8532_v62 = vld [vmem:[%s12902_s3 + $0x388] sm:$0xff] }
 0x35b   : >> { %9799 = vmatprep.subr.mxu1 %v10572_v44  ;;  %9804 = vmatprep.subr.mxu0 %v10572_v44 }
 0x35c   : >> { %9800 = vmatpush3.msra.mxu1 %v8459_v63  ;;  %9801 = vmatprep.mubr.msk.f32.mxu1 %vm10573_vm1, %v10572_v44  ;;  %v8543_v63 = vld [vmem:[%s12902_s3 + $0x3c8] sm:$0xff] }
 0x35d   : >> { %9805 = vmatpush3.msk.msra.mxu0 %vm3162_vm13, %v8476_v0  ;;  %9802 = vmatmul.mubr.msk.f32.vlgmr.msra.gmra.mxu1 %vm279_vm0, %v8458_v1  ;;  %v8531_v0 = vld [vmem:[%s12902_s3 + $0x380] sm:$0xff] }
 0x35e   : >> { %9806 = vmatprep.subr.mxu0 %v10572_v44  ;;  %9821 = vmatprep.subr.mxu1 %v10572_v44  ;;  %v8542_v1 = vld [vmem:[%s12902_s3 + $0x3c0] sm:$0xff] }
 0x35f   : >> { %9807 = vmatpush3.msra.mxu0 %v8475_v2  ;;  %9822 = vmatpush3.msk.msra.mxu1 %vm3162_vm13, %v8486_v3  ;;  %v8530_v2 = vld [vmem:[%s11450_s8 + $0x31] sm:$0xff] }
 0x360   : >> { %9808 = vmatprep.subr.mxu0 %v10572_v44  ;;  %9823 = vmatprep.subr.mxu1 %v10572_v44  ;;  %v8541_v3 = vld [vmem:[%s12902_s3 + $0x3b8] sm:$0xff] }
 0x361   : >> { %9809 = vmatpush3.msra.mxu0 %v8474_v4  ;;  %9824 = vmatpush3.msra.mxu1 %v8485_v5  ;;  %v8557_v4 = vld [vmem:[%s12902_s3 + $0x420] sm:$0x3]  ;;  %v8540_v5 = vld [vmem:[%s11450_s8 + $0x32] sm:$0xff] }
 0x362   : >> { %9810 = vmatprep.subr.mxu0 %v10572_v44  ;;  %9825 = vmatprep.subr.mxu1 %v10572_v44 }
 0x363   : >> { %9811 = vmatpush3.msra.mxu0 %v8473_v6  ;;  %9826 = vmatpush3.msra.mxu1 %v8484_v7  ;;  %v8556_v6 = vld [vmem:[%s12902_s3 + $0x418] sm:$0xff] }
 0x364   : >> { %9812 = vmatprep.subr.mxu0 %v10572_v44  ;;  %9827 = vmatprep.subr.mxu1 %v10572_v44  ;;  %v8567_v7 = vld [vmem:[%s12902_s3 + $0x458] sm:$0x3] }
 0x365   : >> { %9813 = vmatpush3.msra.mxu0 %v8472_v8  ;;  %9828 = vmatpush3.msra.mxu1 %v8483_v9  ;;  %v8555_v8 = vld [vmem:[%s12902_s3 + $0x410] sm:$0xff] }
 0x366   : >> { %9814 = vmatprep.subr.mxu0 %v10572_v44  ;;  %9829 = vmatprep.subr.mxu1 %v10572_v44  ;;  %v8566_v9 = vld [vmem:[%s12902_s3 + $0x450] sm:$0xff] }
 0x367   : >> { %9815 = vmatpush3.msra.mxu0 %v8471_v10  ;;  %9830 = vmatpush3.msra.mxu1 %v8482_v11  ;;  %v8554_v10 = vld [vmem:[%s12902_s3 + $0x408] sm:$0xff] }
 0x368   : >> { %9816 = vmatprep.subr.mxu0 %v10572_v44  ;;  %9831 = vmatprep.subr.mxu1 %v10572_v44  ;;  %v8565_v11 = vld [vmem:[%s12902_s3 + $0x448] sm:$0xff] }
 0x369   : >> { %9817 = vmatpush3.msra.mxu0 %v8470_v12  ;;  %9818 = vmatprep.mubr.msk.f32.mxu0 %vm10573_vm1, %v10572_v44  ;;  %v8553_v12 = vld [vmem:[%s12902_s3 + $0x400] sm:$0xff] }
 0x36a   : >> { %9832 = vmatpush3.msra.mxu1 %v8481_v13  ;;  %9819 = vmatmul.mubr.msk.f32.vlgmr.msra.gmra.mxu0 %vm279_vm0, %v8469_v14  ;;  %v8564_v13 = vld [vmem:[%s12902_s3 + $0x440] sm:$0xff]  ;;  %v8552_v14 = vld [vmem:[%s12902_s3 + $0x3f8] sm:$0xff] }
 0x36b   : >> { %9833 = vmatprep.subr.mxu1 %v10572_v44  ;;  %9838 = vmatprep.subr.mxu0 %v10572_v44 }
 0x36c   : >> { %9834 = vmatpush3.msra.mxu1 %v8480_v17  ;;  %9835 = vmatprep.mubr.msk.f32.mxu1 %vm10573_vm1, %v10572_v44  ;;  %v8563_v17 = vld [vmem:[%s12902_s3 + $0x438] sm:$0xff] }
 0x36d   : >> { %9839 = vmatpush3.msk.msra.mxu0 %vm3162_vm13, %v8496_v18  ;;  %9836 = vmatmul.mubr.msk.f32.vlgmr.msra.gmra.mxu1 %vm279_vm0, %v8479_v19  ;;  %v8551_v18 = vld [vmem:[%s12902_s3 + $0x3f0] sm:$0xff] }
 0x36e   : >> { %9840 = vmatprep.subr.mxu0 %v10572_v44  ;;  %9855 = vmatprep.subr.mxu1 %v10572_v44  ;;  %v8562_v19 = vld [vmem:[%s12902_s3 + $0x430] sm:$0xff] }
 0x36f   : >> { %9841 = vmatpush3.msra.mxu0 %v8495_v20  ;;  %9856 = vmatpush3.msk.msra.mxu1 %vm3162_vm13, %v8506_v21  ;;  %v8550_v20 = vld [vmem:[%s11450_s8 + $0x33] sm:$0xff]  ;;  %v8561_v21 = vld [vmem:[%s12902_s3 + $0x428] sm:$0xff] }
 0x370   : >> { %9842 = vmatprep.subr.mxu0 %v10572_v44  ;;  %9857 = vmatprep.subr.mxu1 %v10572_v44 }
 0x371   : >> { %9843 = vmatpush3.msra.mxu0 %v8494_v22  ;;  %9858 = vmatpush3.msra.mxu1 %v8505_v23  ;;  %v8578_v22 = vld [vmem:[%s12902_s3 + $0x490] sm:$0x3]  ;;  %v8560_v23 = vld [vmem:[%s11450_s8 + $0x34] sm:$0xff] }
 0x372   : >> { %9844 = vmatprep.subr.mxu0 %v10572_v44  ;;  %9859 = vmatprep.subr.mxu1 %v10572_v44 }
 0x373   : >> { %9845 = vmatpush3.msra.mxu0 %v8493_v24  ;;  %9860 = vmatpush3.msra.mxu1 %v8504_v25  ;;  %v8577_v24 = vld [vmem:[%s12902_s3 + $0x488] sm:$0xff] }
 0x374   : >> { %9846 = vmatprep.subr.mxu0 %v10572_v44  ;;  %9861 = vmatprep.subr.mxu1 %v10572_v44  ;;  %v8588_v25 = vld [vmem:[%s12902_s3 + $0x4c8] sm:$0x3] }
 0x375   : >> { %9847 = vmatpush3.msra.mxu0 %v8492_v26  ;;  %9862 = vmatpush3.msra.mxu1 %v8503_v27  ;;  %v8576_v26 = vld [vmem:[%s12902_s3 + $0x480] sm:$0xff] }
 0x376   : >> { %9848 = vmatprep.subr.mxu0 %v10572_v44  ;;  %9863 = vmatprep.subr.mxu1 %v10572_v44  ;;  %v8587_v27 = vld [vmem:[%s12902_s3 + $0x4c0] sm:$0xff] }
 0x377   : >> { %9849 = vmatpush3.msra.mxu0 %v8491_v28  ;;  %9864 = vmatpush3.msra.mxu1 %v8502_v29  ;;  %v8575_v28 = vld [vmem:[%s12902_s3 + $0x478] sm:$0xff] }
 0x378   : >> { %9850 = vmatprep.subr.mxu0 %v10572_v44  ;;  %9865 = vmatprep.subr.mxu1 %v10572_v44  ;;  %v8586_v29 = vld [vmem:[%s12902_s3 + $0x4b8] sm:$0xff] }
 0x379   : >> { %9851 = vmatpush3.msra.mxu0 %v8490_v30  ;;  %9852 = vmatprep.mubr.msk.f32.mxu0 %vm10573_vm1, %v10572_v44  ;;  %v8574_v30 = vld [vmem:[%s12902_s3 + $0x470] sm:$0xff] }
 0x37a   : >> { %9866 = vmatpush3.msra.mxu1 %v8501_v31  ;;  %9853 = vmatmul.mubr.msk.f32.vlgmr.msra.gmra.mxu0 %vm279_vm0, %v8489_v32  ;;  %v8585_v31 = vld [vmem:[%s12902_s3 + $0x4b0] sm:$0xff]  ;;  %v8573_v32 = vld [vmem:[%s12902_s3 + $0x468] sm:$0xff] }
 0x37b   : >> { %9867 = vmatprep.subr.mxu1 %v10572_v44  ;;  %9872 = vmatprep.subr.mxu0 %v10572_v44 }
 0x37c   : >> { %9868 = vmatpush3.msra.mxu1 %v8500_v33  ;;  %9869 = vmatprep.mubr.msk.f32.mxu1 %vm10573_vm1, %v10572_v44  ;;  %v8584_v33 = vld [vmem:[%s12902_s3 + $0x4a8] sm:$0xff] }
 0x37d   : >> { %9873 = vmatpush3.msk.msra.mxu0 %vm3162_vm13, %v8516_v34  ;;  %9870 = vmatmul.mubr.msk.f32.vlgmr.msra.gmra.mxu1 %vm279_vm0, %v8499_v35  ;;  %v8572_v34 = vld [vmem:[%s12902_s3 + $0x460] sm:$0xff] }
 0x37e   : >> { %9874 = vmatprep.subr.mxu0 %v10572_v44  ;;  %9889 = vmatprep.subr.mxu1 %v10572_v44  ;;  %v8583_v35 = vld [vmem:[%s12902_s3 + $0x4a0] sm:$0xff] }
 0x37f   : >> { %9875 = vmatpush3.msra.mxu0 %v8515_v36  ;;  %9890 = vmatpush3.msk.msra.mxu1 %vm3162_vm13, %v8527_v37  ;;  %v8571_v36 = vld [vmem:[%s11450_s8 + $0x40] sm:$0xff]  ;;  %v8582_v37 = vld [vmem:[%s12902_s3 + $0x498] sm:$0xff] }
 0x380   : >> { %9876 = vmatprep.subr.mxu0 %v10572_v44  ;;  %9891 = vmatprep.subr.mxu1 %v10572_v44 }
 0x381   : >> { %9877 = vmatpush3.msra.mxu0 %v8514_v38  ;;  %9892 = vmatpush3.msra.mxu1 %v8526_v39  ;;  %v8598_v38 = vld [vmem:[%s12902_s3 + $0x500] sm:$0x3] }
 0x382   : >> { %9878 = vmatprep.subr.mxu0 %v10572_v44  ;;  %9893 = vmatprep.subr.mxu1 %v10572_v44  ;;  %v8581_v39 = vld [vmem:[%s11450_s8 + $0x41] sm:$0xff] }
 0x383   : >> { %9879 = vmatpush3.msra.mxu0 %v8513_v40  ;;  %9894 = vmatpush3.msra.mxu1 %v8525_v41  ;;  %v8597_v40 = vld [vmem:[%s12902_s3 + $0x4f8] sm:$0xff] }
 0x384   : >> { %9880 = vmatprep.subr.mxu0 %v10572_v44  ;;  %9895 = vmatprep.subr.mxu1 %v10572_v44  ;;  %v8608_v41 = vld [vmem:[%s12902_s3 + $0x538] sm:$0x3] }
 0x385   : >> { %9881 = vmatpush3.msra.mxu0 %v8512_v42  ;;  %9896 = vmatpush3.msra.mxu1 %v8524_v51  ;;  %v8596_v42 = vld [vmem:[%s12902_s3 + $0x4f0] sm:$0xff] }
 0x386   : >> { %9882 = vmatprep.subr.mxu0 %v10572_v44  ;;  %9897 = vmatprep.subr.mxu1 %v10572_v44  ;;  %v8607_v51 = vld [vmem:[%s12902_s3 + $0x530] sm:$0xff] }
 0x387   : >> { %9883 = vmatpush3.msra.mxu0 %v8511_v48  ;;  %9898 = vmatpush3.msra.mxu1 %v8523_v45  ;;  %v8595_v48 = vld [vmem:[%s12902_s3 + $0x4e8] sm:$0xff] }
 0x388   : >> { %9884 = vmatprep.subr.mxu0 %v10572_v44  ;;  %9899 = vmatprep.subr.mxu1 %v10572_v44  ;;  %v8606_v45 = vld [vmem:[%s12902_s3 + $0x528] sm:$0xff] }
 0x389   : >> { %9885 = vmatpush3.msra.mxu0 %v8510_v46  ;;  %9886 = vmatprep.mubr.msk.f32.mxu0 %vm10573_vm1, %v10572_v44  ;;  %v8594_v46 = vld [vmem:[%s12902_s3 + $0x4e0] sm:$0xff] }
 0x38a   : >> { %9900 = vmatpush3.msra.mxu1 %v8522_v47  ;;  %9887 = vmatmul.mubr.msk.f32.vlgmr.msra.gmra.mxu0 %vm279_vm0, %v8509_v49  ;;  %v8605_v47 = vld [vmem:[%s12902_s3 + $0x520] sm:$0xff]  ;;  %v8593_v49 = vld [vmem:[%s12902_s3 + $0x4d8] sm:$0xff] }
 0x38b   : >> { %9901 = vmatprep.subr.mxu1 %v10572_v44  ;;  %9906 = vmatprep.subr.mxu0 %v10572_v44 }
 0x38c   : >> { %9902 = vmatpush3.msra.mxu1 %v8521_v50  ;;  %9903 = vmatprep.mubr.msk.f32.mxu1 %vm10573_vm1, %v10572_v44  ;;  %v8604_v50 = vld [vmem:[%s12902_s3 + $0x518] sm:$0xff] }
 0x38d   : >> { %9907 = vmatpush3.msk.msra.mxu0 %vm3162_vm13, %v8537_v52  ;;  %9904 = vmatmul.mubr.msk.f32.vlgmr.msra.gmra.mxu1 %vm279_vm0, %v8520_v53  ;;  %v8592_v52 = vld [vmem:[%s12902_s3 + $0x4d0] sm:$0xff] }
 0x38e   : >> { %9908 = vmatprep.subr.mxu0 %v10572_v44  ;;  %9923 = vmatprep.subr.mxu1 %v10572_v44  ;;  %v8603_v53 = vld [vmem:[%s12902_s3 + $0x510] sm:$0xff] }
 0x38f   : >> { %9909 = vmatpush3.msra.mxu0 %v8536_v54  ;;  %9924 = vmatpush3.msk.msra.mxu1 %vm3162_vm13, %v8547_v55  ;;  %v8591_v54 = vld [vmem:[%s11450_s8 + $0x42] sm:$0xff] }
 0x390   : >> { %9910 = vmatprep.subr.mxu0 %v10572_v44  ;;  %9925 = vmatprep.subr.mxu1 %v10572_v44  ;;  %v8602_v55 = vld [vmem:[%s12902_s3 + $0x508] sm:$0xff] }
 0x391   : >> { %9911 = vmatpush3.msra.mxu0 %v8535_v56  ;;  %9926 = vmatpush3.msra.mxu1 %v8546_v57  ;;  %v8618_v56 = vld [vmem:[%s12902_s3 + $0x570] sm:$0x3]  ;;  %v8601_v57 = vld [vmem:[%s11450_s8 + $0x43] sm:$0xff] }
 0x392   : >> { %9912 = vmatprep.subr.mxu0 %v10572_v44  ;;  %9927 = vmatprep.subr.mxu1 %v10572_v44 }
 0x393   : >> { %9913 = vmatpush3.msra.mxu0 %v8534_v58  ;;  %9928 = vmatpush3.msra.mxu1 %v8545_v59  ;;  %v8617_v58 = vld [vmem:[%s12902_s3 + $0x568] sm:$0xff]  ;;  %v8616_v59 = vld [vmem:[%s12902_s3 + $0x560] sm:$0xff] }
 0x394   : >> { %9914 = vmatprep.subr.mxu0 %v10572_v44  ;;  %9929 = vmatprep.subr.mxu1 %v10572_v44 }
 0x395   : >> { %9915 = vmatpush3.msra.mxu0 %v8533_v60  ;;  %9930 = vmatpush3.msra.mxu1 %v8544_v61  ;;  %v8615_v60 = vld [vmem:[%s12902_s3 + $0x558] sm:$0xff]  ;;  %v8614_v61 = vld [vmem:[%s12902_s3 + $0x550] sm:$0xff] }
 0x396   : >> { %9916 = vmatprep.subr.mxu0 %v10572_v44  ;;  %9931 = vmatprep.subr.mxu1 %v10572_v44 }
 0x397   : >> { %9917 = vmatpush3.msra.mxu0 %v8532_v62  ;;  %9932 = vmatpush3.msra.mxu1 %v8543_v63  ;;  %v8613_v62 = vld [vmem:[%s12902_s3 + $0x548] sm:$0xff]  ;;  %v8612_v63 = vld [vmem:[%s12902_s3 + $0x540] sm:$0xff] }
 0x398   : >> { %9918 = vmatprep.subr.mxu0 %v10572_v44  ;;  %9933 = vmatprep.subr.mxu1 %v10572_v44 }
 0x399   : >> { %9919 = vmatpush3.msra.mxu0 %v8531_v0  ;;  %9920 = vmatprep.mubr.msk.f32.mxu0 %vm10573_vm1, %v10572_v44  ;;  %v8611_v0 = vld [vmem:[%s11450_s8 + $0x44] sm:$0xff]  ;;  %s8622_s8 = sshll.u32 %s10555_s23, 3  ;;  %s3139_s23 = sadd.s32 1, %s10555_s23  }
 0x39a   : >> { %9934 = vmatpush3.msra.mxu1 %v8542_v1  ;;  %9921 = vmatmul.mubr.msk.f32.vlgmr.msra.gmra.mxu0 %vm279_vm0, %v8530_v2  ;;  %s5311_s12 = scalar_lea.vmem [#allocation5], %s8622_s8  ;;  %p3136_p6 = scmp.ge.s32.totalorder %s3139_s23, 8  }
 0x39b   : >> { %9935 = vmatprep.subr.mxu1 %v10572_v44  ;;  %9940 = vmatprep.subr.mxu0 %v10572_v44  ;;  %s12230_s13 = smov (%p3136_p6), 0  }
 0x39c   : >> { %9936 = vmatpush3.msra.mxu1 %v8541_v3  ;;  %9937 = vmatprep.mubr.msk.f32.mxu1 %vm10573_vm1, %v10572_v44 }
 0x39d   : >> { %9941 = vmatpush3.msk.msra.mxu0 %vm3162_vm13, %v8557_v4  ;;  %9938 = vmatmul.mubr.msk.f32.vlgmr.msra.gmra.mxu1 %vm279_vm0, %v8540_v5 }
 0x39e   : >> { %9942 = vmatprep.subr.mxu0 %v10572_v44  ;;  %9957 = vmatprep.subr.mxu1 %v10572_v44 }
 0x39f   : >> { %9943 = vmatpush3.msra.mxu0 %v8556_v6  ;;  %9958 = vmatpush3.msk.msra.mxu1 %vm3162_vm13, %v8567_v7 }
 0x3a0   : >> { %9944 = vmatprep.subr.mxu0 %v10572_v44  ;;  %9959 = vmatprep.subr.mxu1 %v10572_v44 }
 0x3a1   : >> { %9945 = vmatpush3.msra.mxu0 %v8555_v8  ;;  %9960 = vmatpush3.msra.mxu1 %v8566_v9 }
 0x3a2   : >> { %9946 = vmatprep.subr.mxu0 %v10572_v44  ;;  %9961 = vmatprep.subr.mxu1 %v10572_v44 }
 0x3a3   : >> { %9947 = vmatpush3.msra.mxu0 %v8554_v10  ;;  %9962 = vmatpush3.msra.mxu1 %v8565_v11 }
 0x3a4   : >> { %9948 = vmatprep.subr.mxu0 %v10572_v44  ;;  %9963 = vmatprep.subr.mxu1 %v10572_v44 }
 0x3a5   : >> { %9949 = vmatpush3.msra.mxu0 %v8553_v12  ;;  %9964 = vmatpush3.msra.mxu1 %v8564_v13 }
 0x3a6   : >> { %9950 = vmatprep.subr.mxu0 %v10572_v44  ;;  %9965 = vmatprep.subr.mxu1 %v10572_v44 }
 0x3a7   : >> { %9951 = vmatpush3.msra.mxu0 %v8552_v14  ;;  %9966 = vmatpush3.msra.mxu1 %v8563_v17 }
 0x3a8   : >> { %9952 = vmatprep.subr.mxu0 %v10572_v44  ;;  %9967 = vmatprep.subr.mxu1 %v10572_v44 }
 0x3a9   : >> { %9953 = vmatpush3.msra.mxu0 %v8551_v18  ;;  %9954 = vmatprep.mubr.msk.f32.mxu0 %vm10573_vm1, %v10572_v44 }
 0x3aa   : >> { %9968 = vmatpush3.msra.mxu1 %v8562_v19  ;;  %9955 = vmatmul.mubr.msk.f32.vlgmr.msra.gmra.mxu0 %vm279_vm0, %v8550_v20 }
 0x3ab   : >> { %9969 = vmatprep.subr.mxu1 %v10572_v44  ;;  %9974 = vmatprep.subr.mxu0 %v10572_v44 }
 0x3ac   : >> { %9970 = vmatpush3.msra.mxu1 %v8561_v21  ;;  %9971 = vmatprep.mubr.msk.f32.mxu1 %vm10573_vm1, %v10572_v44 }
 0x3ad   : >> { %9975 = vmatpush3.msk.msra.mxu0 %vm3162_vm13, %v8578_v22  ;;  %9972 = vmatmul.mubr.msk.f32.vlgmr.msra.gmra.mxu1 %vm279_vm0, %v8560_v23 }
 0x3ae   : >> { %9976 = vmatprep.subr.mxu0 %v10572_v44  ;;  %9991 = vmatprep.subr.mxu1 %v10572_v44 }
 0x3af   : >> { %9977 = vmatpush3.msra.mxu0 %v8577_v24  ;;  %9992 = vmatpush3.msk.msra.mxu1 %vm3162_vm13, %v8588_v25 }
 0x3b0   : >> { %9978 = vmatprep.subr.mxu0 %v10572_v44  ;;  %9993 = vmatprep.subr.mxu1 %v10572_v44 }
 0x3b1   : >> { %9979 = vmatpush3.msra.mxu0 %v8576_v26  ;;  %9994 = vmatpush3.msra.mxu1 %v8587_v27 }
 0x3b2   : >> { %9980 = vmatprep.subr.mxu0 %v10572_v44  ;;  %9995 = vmatprep.subr.mxu1 %v10572_v44 }
 0x3b3   : >> { %9981 = vmatpush3.msra.mxu0 %v8575_v28  ;;  %9996 = vmatpush3.msra.mxu1 %v8586_v29 }
 0x3b4   : >> { %9982 = vmatprep.subr.mxu0 %v10572_v44  ;;  %9997 = vmatprep.subr.mxu1 %v10572_v44 }
 0x3b5   : >> { %9983 = vmatpush3.msra.mxu0 %v8574_v30  ;;  %9998 = vmatpush3.msra.mxu1 %v8585_v31 }
 0x3b6   : >> { %9984 = vmatprep.subr.mxu0 %v10572_v44  ;;  %9999 = vmatprep.subr.mxu1 %v10572_v44 }
 0x3b7   : >> { %9985 = vmatpush3.msra.mxu0 %v8573_v32  ;;  %10000 = vmatpush3.msra.mxu1 %v8584_v33 }
 0x3b8   : >> { %9986 = vmatprep.subr.mxu0 %v10572_v44  ;;  %10001 = vmatprep.subr.mxu1 %v10572_v44 }
 0x3b9   : >> { %9987 = vmatpush3.msra.mxu0 %v8572_v34  ;;  %9988 = vmatprep.mubr.msk.f32.mxu0 %vm10573_vm1, %v10572_v44 }
 0x3ba   : >> { %10002 = vmatpush3.msra.mxu1 %v8583_v35  ;;  %9989 = vmatmul.mubr.msk.f32.vlgmr.msra.gmra.mxu0 %vm279_vm0, %v8571_v36 }
 0x3bb   : >> { %10003 = vmatprep.subr.mxu1 %v10572_v44  ;;  %10008 = vmatprep.subr.mxu0 %v10572_v44 }
 0x3bc   : >> { %10004 = vmatpush3.msra.mxu1 %v8582_v37  ;;  %10005 = vmatprep.mubr.msk.f32.mxu1 %vm10573_vm1, %v10572_v44 }
 0x3bd   : >> { %10009 = vmatpush3.msk.msra.mxu0 %vm3162_vm13, %v8598_v38  ;;  %10006 = vmatmul.mubr.msk.f32.vlgmr.msra.gmra.mxu1 %vm279_vm0, %v8581_v39 }
 0x3be   : >> { %10010 = vmatprep.subr.mxu0 %v10572_v44  ;;  %10025 = vmatprep.subr.mxu1 %v10572_v44 }
 0x3bf   : >> { %10011 = vmatpush3.msra.mxu0 %v8597_v40  ;;  %10026 = vmatpush3.msk.msra.mxu1 %vm3162_vm13, %v8608_v41 }
 0x3c0   : >> { %10012 = vmatprep.subr.mxu0 %v10572_v44  ;;  %10027 = vmatprep.subr.mxu1 %v10572_v44 }
 0x3c1   : >> { %10013 = vmatpush3.msra.mxu0 %v8596_v42  ;;  %10028 = vmatpush3.msra.mxu1 %v8607_v51 }
 0x3c2   : >> { %10014 = vmatprep.subr.mxu0 %v10572_v44  ;;  %10029 = vmatprep.subr.mxu1 %v10572_v44 }
 0x3c3   : >> { %10015 = vmatpush3.msra.mxu0 %v8595_v48  ;;  %10030 = vmatpush3.msra.mxu1 %v8606_v45 }
 0x3c4   : >> { %10016 = vmatprep.subr.mxu0 %v10572_v44  ;;  %10031 = vmatprep.subr.mxu1 %v10572_v44 }
 0x3c5   : >> { %10017 = vmatpush3.msra.mxu0 %v8594_v46  ;;  %10032 = vmatpush3.msra.mxu1 %v8605_v47 }
 0x3c6   : >> { %10018 = vmatprep.subr.mxu0 %v10572_v44  ;;  %10033 = vmatprep.subr.mxu1 %v10572_v44 }
 0x3c7   : >> { %10019 = vmatpush3.msra.mxu0 %v8593_v49  ;;  %10034 = vmatpush3.msra.mxu1 %v8604_v50 }
 0x3c8   : >> { %10020 = vmatprep.subr.mxu0 %v10572_v44  ;;  %10035 = vmatprep.subr.mxu1 %v10572_v44 }
 0x3c9   : >> { %10021 = vmatpush3.msra.mxu0 %v8592_v52  ;;  %10022 = vmatprep.mubr.msk.f32.mxu0 %vm10573_vm1, %v10572_v44 }
 0x3ca   : >> { %10036 = vmatpush3.msra.mxu1 %v8603_v53  ;;  %10023 = vmatmul.mubr.msk.f32.vlgmr.msra.gmra.mxu0 %vm279_vm0, %v8591_v54 }
 0x3cb   : >> { %10037 = vmatprep.subr.mxu1 %v10572_v44  ;;  %10042 = vmatprep.subr.mxu0 %v10572_v44 }
 0x3cc   : >> { %10038 = vmatpush3.msra.mxu1 %v8602_v55  ;;  %10039 = vmatprep.mubr.msk.f32.mxu1 %vm10573_vm1, %v10572_v44 }
 0x3cd   : >> { %10043 = vmatpush3.msk.msra.mxu0 %vm3162_vm13, %v8618_v56  ;;  %10040 = vmatmul.mubr.msk.f32.vlgmr.msra.gmra.mxu1 %vm279_vm0, %v8601_v57 }
 0x3ce   : >> { %10044 = vmatprep.subr.mxu0 %v10572_v44  ;;  %10056 = vmatprep.mubr.msk.f32.mxu0 %vm10573_vm1, %v10572_v44 }
 0x3cf   : >> { %10045 = vmatpush3.msra.mxu0 %v8617_v58 }
 0x3d0   : >> { %10046 = vmatprep.subr.mxu0 %v10572_v44 }
 0x3d1   : >> { %10047 = vmatpush3.msra.mxu0 %v8616_v59 }
 0x3d2   : >> { %10048 = vmatprep.subr.mxu0 %v10572_v44 }
 0x3d3   : >> { %10049 = vmatpush3.msra.mxu0 %v8615_v60 }
 0x3d4   : >> { %10050 = vmatprep.subr.mxu0 %v10572_v44 }
 0x3d5   : >> { %10051 = vmatpush3.msra.mxu0 %v8614_v61 }
 0x3d6   : >> { %10052 = vmatprep.subr.mxu0 %v10572_v44 }
 0x3d7   : >> { %10053 = vmatpush3.msra.mxu0 %v8613_v62 }
 0x3d8   : >> { %10054 = vmatprep.subr.mxu0 %v10572_v44 }
 0x3d9   : >> { %10055 = vmatpush3.msra.mxu0 %v8612_v63 }
 0x3da   : >> { %10057 = vmatmul.mubr.msk.f32.vlgmr.msra.gmra.mxu0 %vm279_vm0, %v8611_v0 }
 0x3db   : >> { %v3232_v1 = vpop.f32.mrf.mxu0 }
 0x3dd   : >> { %v3308_v2 = vpop.f32.mrf.mxu1  ;;  %v9650_v3 = vpop.f32.mrf.mxu0 }
 0x3de   : >> { %v3309_v4 = vadd.f32 %v3308_v2, %v3232_v1 }
 0x3df   : >> { %v9667_v5 = vpop.f32.mrf.mxu1 }
 0x3ea   : >> { %v3393_v6 = vpop.f32.mrf.mxu0 }
 0x3eb   : >> { %v3397_v7 = vadd.f32 %v3393_v6, %v3309_v4 }
 0x3ec   : >> { %v9684_v8 = vpop.f32.mrf.mxu0 }
 0x3ed   : >> { %v3479_v9 = vpop.f32.mrf.mxu1 }
 0x3ee   : >> { %v3483_v10 = vadd.f32 %v3479_v9, %v3397_v7 }
 0x3ef   : >> { %v9701_v11 = vpop.f32.mrf.mxu1 }
 0x3fa   : >> { %v3565_v12 = vpop.f32.mrf.mxu0 }
 0x3fb   : >> { %v3569_v13 = vadd.f32 %v3565_v12, %v3483_v10 }
 0x3fc   : >> { %v9718_v14 = vpop.f32.mrf.mxu0 }
 0x3fd   : >> { %v3654_v17 = vpop.f32.mrf.mxu1 }
 0x3fe   : >> { %v3658_v18 = vadd.f32 %v3654_v17, %v3569_v13 }
 0x3ff   : >> { %v9735_v44 = vpop.f32.mrf.mxu1 }
 0x40a   : >> { %v3740_v19 = vpop.f32.mrf.mxu0 }
 0x40b   : >> { %v3744_v20 = vadd.f32 %v3740_v19, %v3658_v18 }
 0x40c   : >> { %v9752_v21 = vpop.f32.mrf.mxu0 }
 0x40d   : >> { %v3826_v22 = vpop.f32.mrf.mxu1 }
 0x40e   : >> { %v3830_v23 = vadd.f32 %v3826_v22, %v3744_v20 }
 0x40f   : >> { %v9769_v24 = vpop.f32.mrf.mxu1 }
 0x41a   : >> { %v3912_v25 = vpop.f32.mrf.mxu0 }
 0x41b   : >> { %v3916_v26 = vadd.f32 %v3912_v25, %v3830_v23 }
 0x41c   : >> { %v9786_v27 = vpop.f32.mrf.mxu0 }
 0x41d   : >> { %v3998_v28 = vpop.f32.mrf.mxu1 }
 0x41e   : >> { %v4002_v29 = vadd.f32 %v3998_v28, %v3916_v26 }
 0x41f   : >> { %v9803_v30 = vpop.f32.mrf.mxu1 }
 0x42a   : >> { %v4087_v31 = vpop.f32.mrf.mxu0 }
 0x42b   : >> { %v4091_v32 = vadd.f32 %v4087_v31, %v4002_v29 }
 0x42c   : >> { %v9820_v33 = vpop.f32.mrf.mxu0 }
 0x42d   : >> { %v4173_v34 = vpop.f32.mrf.mxu1 }
 0x42e   : >> { %v4177_v35 = vadd.f32 %v4173_v34, %v4091_v32 }
 0x42f   : >> { %v9837_v36 = vpop.f32.mrf.mxu1 }
 0x43a   : >> { %v4259_v37 = vpop.f32.mrf.mxu0 }
 0x43b   : >> { %v4263_v38 = vadd.f32 %v4259_v37, %v4177_v35 }
 0x43c   : >> { %v9854_v39 = vpop.f32.mrf.mxu0 }
 0x43d   : >> { %v4345_v40 = vpop.f32.mrf.mxu1 }
 0x43e   : >> { %v4349_v41 = vadd.f32 %v4345_v40, %v4263_v38 }
 0x43f   : >> { %v9871_v42 = vpop.f32.mrf.mxu1 }
 0x44a   : >> { %v4431_v51 = vpop.f32.mrf.mxu0 }
 0x44b   : >> { %v4435_v59 = vadd.f32 %v4431_v51, %v4349_v41 }
 0x44c   : >> { %v9888_v48 = vpop.f32.mrf.mxu0 }
 0x44d   : >> { %v4520_v45 = vpop.f32.mrf.mxu1 }
 0x44e   : >> { %v4524_v62 = vadd.f32 %v4520_v45, %v4435_v59 }
 0x44f   : >> { %v9905_v46 = vpop.f32.mrf.mxu1 }
 0x45a   : >> { %v4606_v47 = vpop.f32.mrf.mxu0 }
 0x45b   : >> { %v4610_v63 = vadd.f32 %v4606_v47, %v4524_v62 }
 0x45c   : >> { %v9922_v49 = vpop.f32.mrf.mxu0 }
 0x45d   : >> { %v4692_v50 = vpop.f32.mrf.mxu1 }
 0x45e   : >> { %v4696_v0 = vadd.f32 %v4692_v50, %v4610_v63 }
 0x45f   : >> { %v9939_v52 = vpop.f32.mrf.mxu1 }
 0x46a   : >> { %v4778_v53 = vpop.f32.mrf.mxu0 }
 0x46b   : >> { %v4782_v1 = vadd.f32 %v4778_v53, %v4696_v0 }
 0x46c   : >> { %v9956_v54 = vpop.f32.mrf.mxu0 }
 0x46d   : >> { %v4864_v55 = vpop.f32.mrf.mxu1 }
 0x46e   : >> { %v4868_v4 = vadd.f32 %v4864_v55, %v4782_v1 }
 0x46f   : >> { %v9973_v56 = vpop.f32.mrf.mxu1 }
 0x47a   : >> { %v4953_v57 = vpop.f32.mrf.mxu0 }
 0x47b   : >> { %v4957_v6 = vadd.f32 %v4953_v57, %v4868_v4 }
 0x47c   : >> { %v9990_v58 = vpop.f32.mrf.mxu0 }
 0x47d   : >> { %v5039_v60 = vpop.f32.mrf.mxu1 }
 0x47e   : >> { %v5043_v8 = vadd.f32 %v5039_v60, %v4957_v6 }
 0x47f   : >> { %v10007_v61 = vpop.f32.mrf.mxu1 }
 0x48a   : >> { %v5125_v2 = vpop.f32.mrf.mxu0 }
 0x48b   : >> { %v5129_v9 = vadd.f32 %v5125_v2, %v5043_v8 }
 0x48c   : >> { %v10024_v3 = vpop.f32.mrf.mxu0 }
 0x48d   : >> { %v5211_v5 = vpop.f32.mrf.mxu1 }
 0x48e   : >> { %v5215_v10 = vadd.f32 %v5211_v5, %v5129_v9 }
 0x48f   : >> { %v10041_v7 = vpop.f32.mrf.mxu1 }
 0x49a   : >> { %v5297_v11 = vpop.f32.mrf.mxu0 }
 0x49b   : >> { %v5301_v12 = vadd.f32 %v5297_v11, %v5215_v10 }
 0x49c   : >> { %v10058_v13 = vpop.f32.mrf.mxu0 }
 0x49d   : >> { %v5308_v14 = vadd.f32 %v11389_v43, %v5301_v12  ;;  %3138 = sbr.rel (!%p3136_p6) target bundleno = 780 (0x30c), region = 235 }
 0x49f   : >> { %v5309_v17 = vmax.f32 %v5308_v14, 0.0 }
 0x4a1   : >> { %5312 = vst.msk [vmem:[%s5311_s12] sm:$0xff] %vm305_vm2, %v5309_v17 }
 0x4a2 LB: >> { %10061 = vmatprep.mubr.msk.f32.mxu0 %vm734_vm11, %v10871_v15  ;;  %s8623_s14 = sshll.u32 %s10559_s13, 3  ;;  %s8882_s16 = sshll.u32 %s10559_s13, 5  ;;  %s10559_s13 = sphi %s12230_s13, %s5318_s13  }
 0x4a3   : >> { %s5320_s15 = scalar_lea.vmem [#allocation5], %s8623_s14  ;;  %s8629_s23 = smul.u32 48, %s10559_s13 }
 0x4a4   : >> { %s5406_s17 = scalar_lea.vmem [#allocation3], %s8882_s16  ;;  %s5318_s13 = sadd.s32 1, %s10559_s13  }
 0x4a5   : >> { %v5408_v43 = vld [vmem:[%s5406_s17 + $0x8] sm:$0xff]  ;;  %v8635_v44 = vld [vmem:[%s5406_s17 + $0x18] sm:$0xff]  ;;  %v5407_v20 = vld [vmem:[%s5406_s17] sm:$0xff]  ;;  %s8110_s18 = scalar_lea.vmem [#allocation6], %s8629_s23  ;;  %p5315_p7 = scmp.ge.s32.totalorder %s5318_s13, 8  }
 0x4a6   : >> { %v8634_v21 = vld [vmem:[%s5406_s17 + $0x10] sm:$0xff]  ;;  %v12246_v27 = vld [vmem:[%s12905_s6] ss:$0 sm:$0xff] (%p5315_p7)  ;;  %s12248_s21 = smov (%p5315_p7), 0  }
 0x4a8   : >> { %v5321_v18 = vld [vmem:[%s5320_s15] sm:$0xff] }
 0x4a9   : >> { %10059 = vmatprep.subr.mxu0 %v5321_v18 }
 0x4aa   : >> { %10060 = vmatpush3.msra.mxu0 %v5321_v18 }
 0x4ab   : >> { %10062 = vmatmul.mubr.msk.f32.vlgmr.msra.gmra.mxu0 %vm734_vm11, %v10875_v16 }
 0x56b   : >> { %v10063_v19 = vpop.f32.mrf.mxu0 }
 0x56c   : >> { %v5410_v22 = vmul.f32 %v10063_v19, %v5408_v43  ;;  %v5422_v23 = vmul.f32 %v10063_v19, %v8635_v44  ;;  %5317 = sbr.rel (!%p5315_p7) target bundleno = 1186 (0x4a2), region = 246 }
 0x56d   : >> { %v5395_v24 = vpop.f32.mrf.mxu0 }
 0x56e   : >> { %8631 = vst.msk [vmem:[%s8110_s18 + $0x6c] sm:$0xff] %vm305_vm2, %v5410_v22  ;;  %8639 = vst.msk [vmem:[%s8110_s18 + $0x84] sm:$0xff] %vm305_vm2, %v5422_v23  ;;  %v5409_v25 = vmul.f32 %v5407_v20, %v5395_v24  ;;  %v5421_v26 = vmul.f32 %v8634_v21, %v5395_v24 }
 0x570   : >> { %8630 = vst.msk [vmem:[%s8110_s18 + $0x64] sm:$0xff] %vm305_vm2, %v5409_v25  ;;  %8638 = vst.msk [vmem:[%s8110_s18 + $0x7c] sm:$0xff] %vm305_vm2, %v5421_v26 }
 0x571 LB: >> { %v8642_v28 = vld [vmem:[%s12904_s5 + $0x28] sm:$0xf]  ;;  %v10574_v29 = vmov 0.0   ;;  %v8641_v15 = vld [vmem:[%s12904_s5 + $0x20] sm:$0xff]  ;;  %s5435_s20 = smul.u32 24, %s10563_s21  ;;  %v8640_v16 = vld [vmem:[%s12904_s5 + $0x18] sm:$0xff]  ;;  %s10563_s21 = sphi %s12248_s21, %s5434_s21  }
 0x572   : >> { %10064 = vmatprep.subr.mxu0 %v10574_v29  ;;  %10439 = vmatprep.subr.mxu1 %v10574_v29  ;;  %vm10575_vm0 = vmmov 0   ;;  %v5442_v32 = vld [vmem:[%s12904_s5 + $0x10] sm:$0xf]  ;;  %v8653_v33 = vld [vmem:[%s12904_s5 + $0x40] sm:$0xf]  ;;  %v5441_v34 = vld [vmem:[%s12904_s5 + $0x8] sm:$0xff] }
 0x573   : >> { %10065 = vmatpush3.msk.msra.mxu0 %vm1074_vm10, %v8642_v28  ;;  %10442 = vmatpush3.msk.msra.mxu1 %vm1074_vm10, %v8642_v28  ;;  %s12273_s30 = scalar_lea.vmem [#allocation6], %s5435_s20  ;;  %v8652_v36 = vld [vmem:[%s12904_s5 + $0x38] sm:$0xff]  ;;  %v5440_v37 = vld [vmem:[%s12904_s5] sm:$0xff]  ;;  %v8651_v39 = vld [vmem:[%s12904_s5 + $0x30] sm:$0xff]  ;;  %vm8021_vm11 = vcmask 7168   ;;  %vm8024_vm14 = vcmask 3072  }
 0x574   : >> { %10066 = vmatprep.subr.mxu0 %v10574_v29  ;;  %10440 = vmatprep.subr.mxu1 %v10574_v29  ;;  %v8660_v40 = vld [vmem:[%s12904_s5 + $0x58] sm:$0xf]  ;;  %v8667_v42 = vld [vmem:[%s12904_s5 + $0x70] sm:$0xf]  ;;  %v8666_v46 = vld [vmem:[%s12904_s5 + $0x68] sm:$0xff]  ;;  %s5434_s21 = sadd.s32 1, %s10563_s21  }
 0x575   : >> { %10067 = vmatpush3.msra.mxu0 %v8641_v15  ;;  %10443 = vmatpush3.msra.mxu1 %v8641_v15  ;;  %v8659_v48 = vld [vmem:[%s12904_s5 + $0x50] sm:$0xff]  ;;  %v8658_v49 = vld [vmem:[%s12904_s5 + $0x48] sm:$0xff]  ;;  %v8665_v52 = vld [vmem:[%s12904_s5 + $0x60] sm:$0xff]  ;;  %p5431_p8 = scmp.ge.s32.totalorder %s5434_s21, 20  }
 0x576   : >> { %10068 = vmatprep.subr.mxu0 %v10574_v29  ;;  %10441 = vmatprep.subr.mxu1 %v10574_v29  ;;  %v8677_v54 = vld [vmem:[%s12904_s5 + $0x88] sm:$0xf]  ;;  %v8687_v56 = vld [vmem:[%s12904_s5 + $0xa0] sm:$0xf]  ;;  %v8686_v60 = vld [vmem:[%s12904_s5 + $0x98] sm:$0xff] }
 0x577   : >> { %v5443_v30 = vld [vmem:[%s12273_s30 + $0x1] sm:$0xff]  ;;  %v5445_v31 = vld [vmem:[%s12273_s30 + $0x11] sm:$0xf]  ;;  %10069 = vmatpush3.msra.mxu0 %v8640_v16  ;;  %10444 = vmatpush3.msra.mxu1 %v8640_v16  ;;  %v5444_v35 = vld [vmem:[%s12273_s30 + $0x9] sm:$0xff] }
 0x578   : >> { %10070 = vmatprep.mubr.msk.f32.mxu0 %vm10575_vm0, %v10574_v29  ;;  %10076 = vmatprep.mubr.msk.f32.mxu1 %vm10575_vm0, %v10574_v29  ;;  %v5437_v38 = vld [vmem:[%s12273_s30] sm:$0xff]  ;;  %v5438_v51 = vld [vmem:[%s12273_s30 + $0x8] sm:$0xff]  ;;  %v5439_v47 = vld [vmem:[%s12273_s30 + $0x10] sm:$0xf] }
 0x579   : >> { %10071 = vmatmul.mubr.msk.f32.vlgmr.msra.gmra.mxu0 %vm305_vm2, %v5443_v30  ;;  %10077 = vmatmul.mubr.msk.f32.vlgmr.msra.gmra.mxu1 %vm305_vm2, %v5445_v31  ;;  %v5635_v41 = vld [vmem:[%s12273_s30 + $0x2] sm:$0xff]  ;;  %v5636_v45 = vld [vmem:[%s12273_s30 + $0xa] sm:$0xff]  ;;  %v5637_v50 = vld [vmem:[%s12273_s30 + $0x12] sm:$0xf] }
 0x57a   : >> { %10079 = vmatprep.subr.mxu1 %v10574_v29  ;;  %10094 = vmatprep.subr.mxu0 %v10574_v29  ;;  %v5737_v53 = vld [vmem:[%s12273_s30 + $0x3] sm:$0xff]  ;;  %v5738_v57 = vld [vmem:[%s12273_s30 + $0xb] sm:$0xff]  ;;  %v5739_v61 = vld [vmem:[%s12273_s30 + $0x13] sm:$0xf] }
 0x57b   : >> { %10080 = vmatpush3.msk.msra.mxu1 %vm1074_vm10, %v5442_v32  ;;  %10095 = vmatpush3.msk.msra.mxu0 %vm1074_vm10, %v8653_v33  ;;  %v5839_v55 = vld [vmem:[%s12273_s30 + $0x4] sm:$0xff]  ;;  %v5840_v59 = vld [vmem:[%s12273_s30 + $0xc] sm:$0xff]  ;;  %v8675_v62 = vld [vmem:[%s12904_s5 + $0x78] sm:$0xff] }
 0x57c   : >> { %10081 = vmatprep.subr.mxu1 %v10574_v29  ;;  %10073 = vmatprep.mubr.msk.f32.mxu0 %vm10575_vm0, %v10574_v29  ;;  %v8676_v58 = vld [vmem:[%s12904_s5 + $0x80] sm:$0xff]  ;;  %v5841_v63 = vld [vmem:[%s12273_s30 + $0x14] sm:$0xf]  ;;  %v8672_v1 = vld [vmem:[%s12273_s30 + $0x18] sm:$0xff] }
 0x57d   : >> { %10082 = vmatpush3.msra.mxu1 %v5441_v34  ;;  %10096 = vmatprep.subr.mxu0 %v10574_v29  ;;  %v8685_v0 = vld [vmem:[%s12904_s5 + $0x90] sm:$0xff]  ;;  %v8697_v2 = vld [vmem:[%s12904_s5 + $0xb8] sm:$0xf]  ;;  %v8673_v5 = vld [vmem:[%s12273_s30 + $0x20] sm:$0xff] }
 0x57e   : >> { %10074 = vmatmul.mubr.msk.f32.gmra.mxu0 %vm305_vm2, %v5444_v35  ;;  %10083 = vmatprep.subr.mxu1 %v10574_v29  ;;  %v8682_v3 = vld [vmem:[%s12273_s30 + $0x19] sm:$0xff]  ;;  %v8707_v4 = vld [vmem:[%s12904_s5 + $0xd0] sm:$0xf]  ;;  %v8683_v7 = vld [vmem:[%s12273_s30 + $0x21] sm:$0xff] }
 0x57f   : >> { %10097 = vmatpush3.msra.mxu0 %v8652_v36  ;;  %10084 = vmatpush3.msra.mxu1 %v5440_v37  ;;  %v8696_v6 = vld [vmem:[%s12904_s5 + $0xb0] sm:$0xff]  ;;  %v8706_v8 = vld [vmem:[%s12904_s5 + $0xc8] sm:$0xff]  ;;  %v8705_v12 = vld [vmem:[%s12904_s5 + $0xc0] sm:$0xff] }
 0x580   : >> { %10085 = vmatprep.mubr.msk.f32.mxu1 %vm10575_vm0, %v10574_v29  ;;  %10098 = vmatprep.subr.mxu0 %v10574_v29  ;;  %v8674_v9 = vld [vmem:[%s12273_s30 + $0x28] sm:$0xf]  ;;  %v8692_v13 = vld [vmem:[%s12273_s30 + $0x1a] sm:$0xff]  ;;  %v8725_v24 = vld [vmem:[%s12904_s5 + $0xf0] sm:$0xff] }
 0x581   : >> { %10086 = vmatmul.mubr.msk.f32.vlgmr.msra.gmra.mxu1 %vm305_vm2, %v5437_v38  ;;  %10109 = vmatprep.subr.mxu1 %v10574_v29  ;;  %v8695_v10 = vld [vmem:[%s12904_s5 + $0xa8] sm:$0xff]  ;;  %v8702_v17 = vld [vmem:[%s12273_s30 + $0x1b] sm:$0xff]  ;;  %v8722_v28 = vld [vmem:[%s12273_s30 + $0x30] sm:$0xff] }
 0x582   : >> { %10099 = vmatpush3.msra.mxu0 %v8651_v39  ;;  %10100 = vmatprep.mubr.msk.f32.mxu0 %vm10575_vm0, %v10574_v29  ;;  %v8684_v11 = vld [vmem:[%s12273_s30 + $0x29] sm:$0xf]  ;;  %v8727_v18 = vld [vmem:[%s12904_s5 + $0x100] sm:$0xf]  ;;  %v8726_v20 = vld [vmem:[%s12904_s5 + $0xf8] sm:$0xff] }
 0x583   : >> { %10110 = vmatpush3.msk.msra.mxu1 %vm1074_vm10, %v8660_v40  ;;  %10101 = vmatmul.mubr.msk.f32.vlgmr.msra.gmra.mxu0 %vm305_vm2, %v5635_v41  ;;  %v8717_v14 = vld [vmem:[%s12904_s5 + $0xe8] sm:$0xf]  ;;  %v8716_v44 = vld [vmem:[%s12904_s5 + $0xe0] sm:$0xff]  ;;  %v8715_v22 = vld [vmem:[%s12904_s5 + $0xd8] sm:$0xff] }
 0x584   : >> { %10124 = vmatprep.subr.mxu0 %v10574_v29  ;;  %10088 = vmatprep.mubr.msk.f32.mxu1 %vm10575_vm0, %v10574_v29  ;;  %v8693_v43 = vld [vmem:[%s12273_s30 + $0x22] sm:$0xff]  ;;  %v8694_v21 = vld [vmem:[%s12273_s30 + $0x2a] sm:$0xf]  ;;  %v8737_v26 = vld [vmem:[%s12904_s5 + $0x118] sm:$0xf] }
 0x585   : >> { %10125 = vmatpush3.msk.msra.mxu0 %vm1074_vm10, %v8667_v42  ;;  %10089 = vmatmul.mubr.msk.f32.gmra.mxu1 %vm305_vm2, %v5438_v51  ;;  %v8703_v19 = vld [vmem:[%s12273_s30 + $0x23] sm:$0xff]  ;;  %v8704_v23 = vld [vmem:[%s12273_s30 + $0x2b] sm:$0xf]  ;;  %v8747_v15 = vld [vmem:[%s12904_s5 + $0x130] sm:$0xf] }
 0x586   : >> { %10111 = vmatprep.subr.mxu1 %v10574_v29  ;;  %10103 = vmatprep.mubr.msk.f32.mxu0 %vm10575_vm0, %v10574_v29  ;;  %v8712_v25 = vld [vmem:[%s12273_s30 + $0x1c] sm:$0xff]  ;;  %v8713_v16 = vld [vmem:[%s12273_s30 + $0x24] sm:$0xff]  ;;  %v8736_v30 = vld [vmem:[%s12904_s5 + $0x110] sm:$0xff] }
 0x587   : >> { %10112 = vmatpush3.msra.mxu1 %v8659_v48  ;;  %10104 = vmatmul.mubr.msk.f32.gmra.mxu0 %vm305_vm2, %v5636_v45  ;;  %v8723_v31 = vld [vmem:[%s12273_s30 + $0x38] sm:$0xff]  ;;  %v8746_v32 = vld [vmem:[%s12904_s5 + $0x128] sm:$0xff]  ;;  %v8724_v35 = vld [vmem:[%s12273_s30 + $0x40] sm:$0xf] }
 0x588   : >> { %10126 = vmatprep.subr.mxu0 %v10574_v29  ;;  %10091 = vmatprep.mubr.msk.f32.mxu1 %vm10575_vm0, %v10574_v29  ;;  %v8714_v33 = vld [vmem:[%s12273_s30 + $0x2c] sm:$0xf]  ;;  %v8745_v36 = vld [vmem:[%s12904_s5 + $0x120] sm:$0xff]  ;;  %v8732_v37 = vld [vmem:[%s12273_s30 + $0x31] sm:$0xff] }
 0x589   : >> { %10127 = vmatpush3.msra.mxu0 %v8666_v46  ;;  %10092 = vmatmul.mubr.msk.f32.gmra.mxu1 %vm305_vm2, %v5439_v47  ;;  %v8735_v34 = vld [vmem:[%s12904_s5 + $0x108] sm:$0xff]  ;;  %v8742_v39 = vld [vmem:[%s12273_s30 + $0x32] sm:$0xff]  ;;  %v8767_v40 = vld [vmem:[%s12904_s5 + $0x160] sm:$0xf] }
 0x58a   : >> { %10113 = vmatprep.subr.mxu1 %v10574_v29  ;;  %10106 = vmatprep.mubr.msk.f32.mxu0 %vm10575_vm0, %v10574_v29  ;;  %v8757_v38 = vld [vmem:[%s12904_s5 + $0x148] sm:$0xf]  ;;  %v8733_v41 = vld [vmem:[%s12273_s30 + $0x39] sm:$0xff]  ;;  %v8734_v45 = vld [vmem:[%s12273_s30 + $0x41] sm:$0xf] }
 0x58b   : >> { %10114 = vmatpush3.msra.mxu1 %v8658_v49  ;;  %10107 = vmatmul.mubr.msk.f32.gmra.mxu0 %vm305_vm2, %v5637_v50  ;;  %v8756_v42 = vld [vmem:[%s12904_s5 + $0x140] sm:$0xff]  ;;  %v8766_v48 = vld [vmem:[%s12904_s5 + $0x158] sm:$0xff]  ;;  %v8765_v49 = vld [vmem:[%s12904_s5 + $0x150] sm:$0xff] }
 0x58c   : >> { %10128 = vmatprep.subr.mxu0 %v10574_v29  ;;  %10115 = vmatprep.mubr.msk.f32.mxu1 %vm10575_vm0, %v10574_v29  ;;  %v8743_v51 = vld [vmem:[%s12273_s30 + $0x3a] sm:$0xff]  ;;  %v8744_v47 = vld [vmem:[%s12273_s30 + $0x42] sm:$0xf] }
 0x58d   : >> { %10129 = vmatpush3.msra.mxu0 %v8665_v52  ;;  %10116 = vmatmul.mubr.msk.f32.vlgmr.msra.gmra.mxu1 %vm305_vm2, %v5737_v53  ;;  %v8755_v46 = vld [vmem:[%s12904_s5 + $0x138] sm:$0xff] }
 0x58e   : >> { %10139 = vmatprep.subr.mxu1 %v10574_v29  ;;  %10130 = vmatprep.mubr.msk.f32.mxu0 %vm10575_vm0, %v10574_v29  ;;  %v8752_v50 = vld [vmem:[%s12273_s30 + $0x33] sm:$0xff] }
 0x58f   : >> { %10140 = vmatpush3.msk.msra.mxu1 %vm1074_vm10, %v8677_v54  ;;  %10131 = vmatmul.mubr.msk.f32.vlgmr.msra.gmra.mxu0 %vm305_vm2, %v5839_v55  ;;  %v8777_v52 = vld [vmem:[%s12904_s5 + $0x178] sm:$0xf]  ;;  %v8787_v54 = vld [vmem:[%s12904_s5 + $0x190] sm:$0xf] }
 0x590   : >> { %10154 = vmatprep.subr.mxu0 %v10574_v29  ;;  %10118 = vmatprep.mubr.msk.f32.mxu1 %vm10575_vm0, %v10574_v29  ;;  %v8762_v53 = vld [vmem:[%s12273_s30 + $0x34] sm:$0xff] }
 0x591   : >> { %10155 = vmatpush3.msk.msra.mxu0 %vm1074_vm10, %v8687_v56  ;;  %10119 = vmatmul.mubr.msk.f32.gmra.mxu1 %vm305_vm2, %v5738_v57  ;;  %v8753_v55 = vld [vmem:[%s12273_s30 + $0x3b] sm:$0xff]  ;;  %v8776_v56 = vld [vmem:[%s12904_s5 + $0x170] sm:$0xff] }
 0x592   : >> { %10141 = vmatprep.subr.mxu1 %v10574_v29  ;;  %10133 = vmatprep.mubr.msk.f32.mxu0 %vm10575_vm0, %v10574_v29  ;;  %v8763_v57 = vld [vmem:[%s12273_s30 + $0x3c] sm:$0xff] }
 0x593   : >> { %10142 = vmatpush3.msra.mxu1 %v8676_v58  ;;  %10134 = vmatmul.mubr.msk.f32.gmra.mxu0 %vm305_vm2, %v5840_v59  ;;  %v8786_v58 = vld [vmem:[%s12904_s5 + $0x188] sm:$0xff]  ;;  %v8754_v59 = vld [vmem:[%s12273_s30 + $0x43] sm:$0xf] }
 0x594   : >> { %10156 = vmatprep.subr.mxu0 %v10574_v29  ;;  %10121 = vmatprep.mubr.msk.f32.mxu1 %vm10575_vm0, %v10574_v29 }
 0x595   : >> { %10157 = vmatpush3.msra.mxu0 %v8686_v60  ;;  %10122 = vmatmul.mubr.msk.f32.gmra.mxu1 %vm305_vm2, %v5739_v61  ;;  %v8775_v60 = vld [vmem:[%s12904_s5 + $0x168] sm:$0xff]  ;;  %v8764_v61 = vld [vmem:[%s12273_s30 + $0x44] sm:$0xf] }
 0x596   : >> { %10143 = vmatprep.subr.mxu1 %v10574_v29  ;;  %10136 = vmatprep.mubr.msk.f32.mxu0 %vm10575_vm0, %v10574_v29 }
 0x597   : >> { %10144 = vmatpush3.msra.mxu1 %v8675_v62  ;;  %10137 = vmatmul.mubr.msk.f32.gmra.mxu0 %vm305_vm2, %v5841_v63  ;;  %v8785_v62 = vld [vmem:[%s12904_s5 + $0x180] sm:$0xff]  ;;  %v8772_v63 = vld [vmem:[%s12273_s30 + $0x48] sm:$0xff] }
 0x598   : >> { %10158 = vmatprep.subr.mxu0 %v10574_v29  ;;  %10145 = vmatprep.mubr.msk.f32.mxu1 %vm10575_vm0, %v10574_v29 }
 0x599   : >> { %10159 = vmatpush3.msra.mxu0 %v8685_v0  ;;  %10146 = vmatmul.mubr.msk.f32.vlgmr.msra.gmra.mxu1 %vm305_vm2, %v8672_v1  ;;  %v8797_v0 = vld [vmem:[%s12904_s5 + $0x1a8] sm:$0xf] }
 0x59a   : >> { %10169 = vmatprep.subr.mxu1 %v10574_v29  ;;  %10160 = vmatprep.mubr.msk.f32.mxu0 %vm10575_vm0, %v10574_v29  ;;  %v8782_v1 = vld [vmem:[%s12273_s30 + $0x49] sm:$0xff] }
 0x59b   : >> { %10170 = vmatpush3.msk.msra.mxu1 %vm1074_vm10, %v8697_v2  ;;  %10161 = vmatmul.mubr.msk.f32.vlgmr.msra.gmra.mxu0 %vm305_vm2, %v8682_v3  ;;  %v8807_v2 = vld [vmem:[%s12904_s5 + $0x1c0] sm:$0xf]  ;;  %v8773_v3 = vld [vmem:[%s12273_s30 + $0x50] sm:$0xff] }
 0x59c   : >> { %10184 = vmatprep.subr.mxu0 %v10574_v29  ;;  %10148 = vmatprep.mubr.msk.f32.mxu1 %vm10575_vm0, %v10574_v29 }
 0x59d   : >> { %10185 = vmatpush3.msk.msra.mxu0 %vm1074_vm10, %v8707_v4  ;;  %10149 = vmatmul.mubr.msk.f32.gmra.mxu1 %vm305_vm2, %v8673_v5  ;;  %v8796_v4 = vld [vmem:[%s12904_s5 + $0x1a0] sm:$0xff]  ;;  %v8783_v5 = vld [vmem:[%s12273_s30 + $0x51] sm:$0xff] }
 0x59e   : >> { %10171 = vmatprep.subr.mxu1 %v10574_v29  ;;  %10163 = vmatprep.mubr.msk.f32.mxu0 %vm10575_vm0, %v10574_v29 }
 0x59f   : >> { %10172 = vmatpush3.msra.mxu1 %v8696_v6  ;;  %10164 = vmatmul.mubr.msk.f32.gmra.mxu0 %vm305_vm2, %v8683_v7  ;;  %v8806_v6 = vld [vmem:[%s12904_s5 + $0x1b8] sm:$0xff] }
 0x5a0   : >> { %10186 = vmatprep.subr.mxu0 %v10574_v29  ;;  %10151 = vmatprep.mubr.msk.f32.mxu1 %vm10575_vm0, %v10574_v29  ;;  %v8774_v7 = vld [vmem:[%s12273_s30 + $0x58] sm:$0xf] }
 0x5a1   : >> { %10187 = vmatpush3.msra.mxu0 %v8706_v8  ;;  %10152 = vmatmul.mubr.msk.f32.gmra.mxu1 %vm305_vm2, %v8674_v9  ;;  %v8795_v8 = vld [vmem:[%s12904_s5 + $0x198] sm:$0xff] }
 0x5a2   : >> { %10173 = vmatprep.subr.mxu1 %v10574_v29  ;;  %10166 = vmatprep.mubr.msk.f32.mxu0 %vm10575_vm0, %v10574_v29  ;;  %v8784_v9 = vld [vmem:[%s12273_s30 + $0x59] sm:$0xf] }
 0x5a3   : >> { %10174 = vmatpush3.msra.mxu1 %v8695_v10  ;;  %10167 = vmatmul.mubr.msk.f32.gmra.mxu0 %vm305_vm2, %v8684_v11  ;;  %v8805_v10 = vld [vmem:[%s12904_s5 + $0x1b0] sm:$0xff] }
 0x5a4   : >> { %10188 = vmatprep.subr.mxu0 %v10574_v29  ;;  %10175 = vmatprep.mubr.msk.f32.mxu1 %vm10575_vm0, %v10574_v29  ;;  %v8792_v11 = vld [vmem:[%s12273_s30 + $0x4a] sm:$0xff] }
 0x5a5   : >> { %10189 = vmatpush3.msra.mxu0 %v8705_v12  ;;  %10176 = vmatmul.mubr.msk.f32.vlgmr.msra.gmra.mxu1 %vm305_vm2, %v8692_v13  ;;  %v8817_v12 = vld [vmem:[%s12904_s5 + $0x1d8] sm:$0xf]  ;;  %v8802_v13 = vld [vmem:[%s12273_s30 + $0x4b] sm:$0xff] }
 0x5a6   : >> { %10199 = vmatprep.subr.mxu1 %v10574_v29  ;;  %10190 = vmatprep.mubr.msk.f32.mxu0 %vm10575_vm0, %v10574_v29 }
 0x5a7   : >> { %10200 = vmatpush3.msk.msra.mxu1 %vm1074_vm10, %v8717_v14  ;;  %10191 = vmatmul.mubr.msk.f32.vlgmr.msra.gmra.mxu0 %vm305_vm2, %v8702_v17  ;;  %v8827_v14 = vld [vmem:[%s12904_s5 + $0x1f0] sm:$0xf] }
 0x5a8   : >> { %10214 = vmatprep.subr.mxu0 %v10574_v29  ;;  %10178 = vmatprep.mubr.msk.f32.mxu1 %vm10575_vm0, %v10574_v29  ;;  %v8793_v17 = vld [vmem:[%s12273_s30 + $0x52] sm:$0xff] }
 0x5a9   : >> { %10215 = vmatpush3.msk.msra.mxu0 %vm1074_vm10, %v8727_v18  ;;  %10179 = vmatmul.mubr.msk.f32.gmra.mxu1 %vm305_vm2, %v8693_v43  ;;  %v8816_v18 = vld [vmem:[%s12904_s5 + $0x1d0] sm:$0xff] }
 0x5aa   : >> { %10201 = vmatprep.subr.mxu1 %v10574_v29  ;;  %10193 = vmatprep.mubr.msk.f32.mxu0 %vm10575_vm0, %v10574_v29  ;;  %v8803_v43 = vld [vmem:[%s12273_s30 + $0x53] sm:$0xff] }
 0x5ab   : >> { %10202 = vmatpush3.msra.mxu1 %v8716_v44  ;;  %10194 = vmatmul.mubr.msk.f32.gmra.mxu0 %vm305_vm2, %v8703_v19  ;;  %v8826_v44 = vld [vmem:[%s12904_s5 + $0x1e8] sm:$0xff]  ;;  %v8794_v19 = vld [vmem:[%s12273_s30 + $0x5a] sm:$0xf] }
 0x5ac   : >> { %10216 = vmatprep.subr.mxu0 %v10574_v29  ;;  %10181 = vmatprep.mubr.msk.f32.mxu1 %vm10575_vm0, %v10574_v29 }
 0x5ad   : >> { %10217 = vmatpush3.msra.mxu0 %v8726_v20  ;;  %10182 = vmatmul.mubr.msk.f32.gmra.mxu1 %vm305_vm2, %v8694_v21  ;;  %v8815_v20 = vld [vmem:[%s12904_s5 + $0x1c8] sm:$0xff]  ;;  %v8804_v21 = vld [vmem:[%s12273_s30 + $0x5b] sm:$0xf] }
 0x5ae   : >> { %10203 = vmatprep.subr.mxu1 %v10574_v29  ;;  %10196 = vmatprep.mubr.msk.f32.mxu0 %vm10575_vm0, %v10574_v29 }
 0x5af   : >> { %10204 = vmatpush3.msra.mxu1 %v8715_v22  ;;  %10197 = vmatmul.mubr.msk.f32.gmra.mxu0 %vm305_vm2, %v8704_v23  ;;  %v8825_v22 = vld [vmem:[%s12904_s5 + $0x1e0] sm:$0xff]  ;;  %v8812_v23 = vld [vmem:[%s12273_s30 + $0x4c] sm:$0xff] }
 0x5b0   : >> { %10218 = vmatprep.subr.mxu0 %v10574_v29  ;;  %10205 = vmatprep.mubr.msk.f32.mxu1 %vm10575_vm0, %v10574_v29 }
 0x5b1   : >> { %10219 = vmatpush3.msra.mxu0 %v8725_v24  ;;  %10206 = vmatmul.mubr.msk.f32.vlgmr.msra.gmra.mxu1 %vm305_vm2, %v8712_v25  ;;  %v8837_v24 = vld [vmem:[%s12904_s5 + $0x208] sm:$0xf]  ;;  %v8822_v25 = vld [vmem:[%s12273_s30 + $0x60] sm:$0xff] }
 0x5b2   : >> { %10229 = vmatprep.subr.mxu1 %v10574_v29  ;;  %10220 = vmatprep.mubr.msk.f32.mxu0 %vm10575_vm0, %v10574_v29 }
 0x5b3   : >> { %10230 = vmatpush3.msk.msra.mxu1 %vm1074_vm10, %v8737_v26  ;;  %10221 = vmatmul.mubr.msk.f32.vlgmr.msra.gmra.mxu0 %vm305_vm2, %v8722_v28  ;;  %v8847_v26 = vld [vmem:[%s12904_s5 + $0x220] sm:$0xf]  ;;  %v8813_v28 = vld [vmem:[%s12273_s30 + $0x54] sm:$0xff] }
 0x5b4   : >> { %10244 = vmatprep.subr.mxu0 %v10574_v29  ;;  %10208 = vmatprep.mubr.msk.f32.mxu1 %vm10575_vm0, %v10574_v29 }
 0x5b5   : >> { %10245 = vmatpush3.msk.msra.mxu0 %vm1074_vm10, %v8747_v15  ;;  %10209 = vmatmul.mubr.msk.f32.gmra.mxu1 %vm305_vm2, %v8713_v16  ;;  %v8836_v15 = vld [vmem:[%s12904_s5 + $0x200] sm:$0xff]  ;;  %v8823_v16 = vld [vmem:[%s12273_s30 + $0x68] sm:$0xff] }
 0x5b6   : >> { %10231 = vmatprep.subr.mxu1 %v10574_v29  ;;  %10223 = vmatprep.mubr.msk.f32.mxu0 %vm10575_vm0, %v10574_v29 }
 0x5b7   : >> { %10232 = vmatpush3.msra.mxu1 %v8736_v30  ;;  %10224 = vmatmul.mubr.msk.f32.gmra.mxu0 %vm305_vm2, %v8723_v31  ;;  %v8846_v30 = vld [vmem:[%s12904_s5 + $0x218] sm:$0xff] }
 0x5b8   : >> { %10246 = vmatprep.subr.mxu0 %v10574_v29  ;;  %10211 = vmatprep.mubr.msk.f32.mxu1 %vm10575_vm0, %v10574_v29  ;;  %v8814_v31 = vld [vmem:[%s12273_s30 + $0x5c] sm:$0xf] }
 0x5b9   : >> { %10247 = vmatpush3.msra.mxu0 %v8746_v32  ;;  %10212 = vmatmul.mubr.msk.f32.gmra.mxu1 %vm305_vm2, %v8714_v33  ;;  %v8835_v32 = vld [vmem:[%s12904_s5 + $0x1f8] sm:$0xff]  ;;  %v8824_v33 = vld [vmem:[%s12273_s30 + $0x70] sm:$0xf] }
 0x5ba   : >> { %10233 = vmatprep.subr.mxu1 %v10574_v29  ;;  %10226 = vmatprep.mubr.msk.f32.mxu0 %vm10575_vm0, %v10574_v29 }
 0x5bb   : >> { %10234 = vmatpush3.msra.mxu1 %v8735_v34  ;;  %10227 = vmatmul.mubr.msk.f32.gmra.mxu0 %vm305_vm2, %v8724_v35  ;;  %v8845_v34 = vld [vmem:[%s12904_s5 + $0x210] sm:$0xff]  ;;  %v8832_v35 = vld [vmem:[%s12273_s30 + $0x61] sm:$0xff] }
 0x5bc   : >> { %10248 = vmatprep.subr.mxu0 %v10574_v29  ;;  %10235 = vmatprep.mubr.msk.f32.mxu1 %vm10575_vm0, %v10574_v29 }
 0x5bd   : >> { %10249 = vmatpush3.msra.mxu0 %v8745_v36  ;;  %10236 = vmatmul.mubr.msk.f32.vlgmr.msra.gmra.mxu1 %vm305_vm2, %v8732_v37  ;;  %v8857_v36 = vld [vmem:[%s12904_s5 + $0x238] sm:$0xf]  ;;  %v8842_v37 = vld [vmem:[%s12273_s30 + $0x62] sm:$0xff] }
 0x5be   : >> { %10259 = vmatprep.subr.mxu1 %v10574_v29  ;;  %10250 = vmatprep.mubr.msk.f32.mxu0 %vm10575_vm0, %v10574_v29 }
 0x5bf   : >> { %10260 = vmatpush3.msk.msra.mxu1 %vm1074_vm10, %v8757_v38  ;;  %10251 = vmatmul.mubr.msk.f32.vlgmr.msra.gmra.mxu0 %vm305_vm2, %v8742_v39  ;;  %v8867_v38 = vld [vmem:[%s12904_s5 + $0x250] sm:$0xf] }
 0x5c0   : >> { %10274 = vmatprep.subr.mxu0 %v10574_v29  ;;  %10238 = vmatprep.mubr.msk.f32.mxu1 %vm10575_vm0, %v10574_v29  ;;  %v8833_v39 = vld [vmem:[%s12273_s30 + $0x69] sm:$0xff] }
 0x5c1   : >> { %10275 = vmatpush3.msk.msra.mxu0 %vm1074_vm10, %v8767_v40  ;;  %10239 = vmatmul.mubr.msk.f32.gmra.mxu1 %vm305_vm2, %v8733_v41  ;;  %v8856_v40 = vld [vmem:[%s12904_s5 + $0x230] sm:$0xff] }
 0x5c2   : >> { %10261 = vmatprep.subr.mxu1 %v10574_v29  ;;  %10253 = vmatprep.mubr.msk.f32.mxu0 %vm10575_vm0, %v10574_v29  ;;  %v8843_v41 = vld [vmem:[%s12273_s30 + $0x6a] sm:$0xff] }
 0x5c3   : >> { %10262 = vmatpush3.msra.mxu1 %v8756_v42  ;;  %10254 = vmatmul.mubr.msk.f32.gmra.mxu0 %vm305_vm2, %v8743_v51  ;;  %v8866_v42 = vld [vmem:[%s12904_s5 + $0x248] sm:$0xff]  ;;  %v8834_v51 = vld [vmem:[%s12273_s30 + $0x71] sm:$0xf] }
 0x5c4   : >> { %10276 = vmatprep.subr.mxu0 %v10574_v29  ;;  %10241 = vmatprep.mubr.msk.f32.mxu1 %vm10575_vm0, %v10574_v29 }
 0x5c5   : >> { %10277 = vmatpush3.msra.mxu0 %v8766_v48  ;;  %10242 = vmatmul.mubr.msk.f32.gmra.mxu1 %vm305_vm2, %v8734_v45  ;;  %v8855_v48 = vld [vmem:[%s12904_s5 + $0x228] sm:$0xff]  ;;  %v8844_v45 = vld [vmem:[%s12273_s30 + $0x72] sm:$0xf] }
 0x5c6   : >> { %10263 = vmatprep.subr.mxu1 %v10574_v29  ;;  %10256 = vmatprep.mubr.msk.f32.mxu0 %vm10575_vm0, %v10574_v29 }
 0x5c7   : >> { %10264 = vmatpush3.msra.mxu1 %v8755_v46  ;;  %10257 = vmatmul.mubr.msk.f32.gmra.mxu0 %vm305_vm2, %v8744_v47  ;;  %v8865_v46 = vld [vmem:[%s12904_s5 + $0x240] sm:$0xff] }
 0x5c8   : >> { %10278 = vmatprep.subr.mxu0 %v10574_v29  ;;  %10265 = vmatprep.mubr.msk.f32.mxu1 %vm10575_vm0, %v10574_v29  ;;  %v8852_v47 = vld [vmem:[%s12273_s30 + $0x63] sm:$0xff] }
 0x5c9   : >> { %10279 = vmatpush3.msra.mxu0 %v8765_v49  ;;  %10266 = vmatmul.mubr.msk.f32.vlgmr.msra.gmra.mxu1 %vm305_vm2, %v8752_v50  ;;  %v8862_v49 = vld [vmem:[%s12273_s30 + $0x64] sm:$0xff] }
 0x5ca   : >> { %10289 = vmatprep.subr.mxu1 %v10574_v29  ;;  %10280 = vmatprep.mubr.msk.f32.mxu0 %vm10575_vm0, %v10574_v29  ;;  %v8853_v50 = vld [vmem:[%s12273_s30 + $0x6b] sm:$0xff] }
 0x5cb   : >> { %10290 = vmatpush3.msk.msra.mxu1 %vm1074_vm10, %v8777_v52  ;;  %10281 = vmatmul.mubr.msk.f32.vlgmr.msra.gmra.mxu0 %vm305_vm2, %v8762_v53  ;;  %v8863_v52 = vld [vmem:[%s12273_s30 + $0x6c] sm:$0xff] }
 0x5cc   : >> { %10304 = vmatprep.subr.mxu0 %v10574_v29  ;;  %10268 = vmatprep.mubr.msk.f32.mxu1 %vm10575_vm0, %v10574_v29  ;;  %v8854_v53 = vld [vmem:[%s12273_s30 + $0x73] sm:$0xf] }
 0x5cd   : >> { %10305 = vmatpush3.msk.msra.mxu0 %vm1074_vm10, %v8787_v54  ;;  %10269 = vmatmul.mubr.msk.f32.gmra.mxu1 %vm305_vm2, %v8753_v55  ;;  %v8864_v54 = vld [vmem:[%s12273_s30 + $0x74] sm:$0xf]  ;;  %s8020_s30 = scalar_lea.vmem %s10845_s11, %s5435_s20 }
 0x5ce   : >> { %10291 = vmatprep.subr.mxu1 %v10574_v29  ;;  %10283 = vmatprep.mubr.msk.f32.mxu0 %vm10575_vm0, %v10574_v29 }
 0x5cf   : >> { %10292 = vmatpush3.msra.mxu1 %v8776_v56  ;;  %10284 = vmatmul.mubr.msk.f32.gmra.mxu0 %vm305_vm2, %v8763_v57 }
 0x5d0   : >> { %10306 = vmatprep.subr.mxu0 %v10574_v29  ;;  %10271 = vmatprep.mubr.msk.f32.mxu1 %vm10575_vm0, %v10574_v29 }
 0x5d1   : >> { %10307 = vmatpush3.msra.mxu0 %v8786_v58  ;;  %10272 = vmatmul.mubr.msk.f32.gmra.mxu1 %vm305_vm2, %v8754_v59 }
 0x5d2   : >> { %10293 = vmatprep.subr.mxu1 %v10574_v29  ;;  %10286 = vmatprep.mubr.msk.f32.mxu0 %vm10575_vm0, %v10574_v29 }
 0x5d3   : >> { %10294 = vmatpush3.msra.mxu1 %v8775_v60  ;;  %10287 = vmatmul.mubr.msk.f32.gmra.mxu0 %vm305_vm2, %v8764_v61 }
 0x5d4   : >> { %10308 = vmatprep.subr.mxu0 %v10574_v29  ;;  %10295 = vmatprep.mubr.msk.f32.mxu1 %vm10575_vm0, %v10574_v29 }
 0x5d5   : >> { %10309 = vmatpush3.msra.mxu0 %v8785_v62  ;;  %10296 = vmatmul.mubr.msk.f32.vlgmr.msra.gmra.mxu1 %vm305_vm2, %v8772_v63 }
 0x5d6   : >> { %10319 = vmatprep.subr.mxu1 %v10574_v29  ;;  %10310 = vmatprep.mubr.msk.f32.mxu0 %vm10575_vm0, %v10574_v29 }
 0x5d7   : >> { %10320 = vmatpush3.msk.msra.mxu1 %vm1074_vm10, %v8797_v0  ;;  %10311 = vmatmul.mubr.msk.f32.vlgmr.msra.gmra.mxu0 %vm305_vm2, %v8782_v1 }
 0x5d8   : >> { %10334 = vmatprep.subr.mxu0 %v10574_v29  ;;  %10298 = vmatprep.mubr.msk.f32.mxu1 %vm10575_vm0, %v10574_v29 }
 0x5d9   : >> { %10335 = vmatpush3.msk.msra.mxu0 %vm1074_vm10, %v8807_v2  ;;  %10299 = vmatmul.mubr.msk.f32.gmra.mxu1 %vm305_vm2, %v8773_v3 }
 0x5da   : >> { %10321 = vmatprep.subr.mxu1 %v10574_v29  ;;  %10313 = vmatprep.mubr.msk.f32.mxu0 %vm10575_vm0, %v10574_v29 }
 0x5db   : >> { %10322 = vmatpush3.msra.mxu1 %v8796_v4  ;;  %10314 = vmatmul.mubr.msk.f32.gmra.mxu0 %vm305_vm2, %v8783_v5 }
 0x5dc   : >> { %10336 = vmatprep.subr.mxu0 %v10574_v29  ;;  %10301 = vmatprep.mubr.msk.f32.mxu1 %vm10575_vm0, %v10574_v29 }
 0x5dd   : >> { %10337 = vmatpush3.msra.mxu0 %v8806_v6  ;;  %10302 = vmatmul.mubr.msk.f32.gmra.mxu1 %vm305_vm2, %v8774_v7 }
 0x5de   : >> { %10323 = vmatprep.subr.mxu1 %v10574_v29  ;;  %10316 = vmatprep.mubr.msk.f32.mxu0 %vm10575_vm0, %v10574_v29 }
 0x5df   : >> { %10324 = vmatpush3.msra.mxu1 %v8795_v8  ;;  %10317 = vmatmul.mubr.msk.f32.gmra.mxu0 %vm305_vm2, %v8784_v9 }
 0x5e0   : >> { %10338 = vmatprep.subr.mxu0 %v10574_v29  ;;  %10325 = vmatprep.mubr.msk.f32.mxu1 %vm10575_vm0, %v10574_v29 }
 0x5e1   : >> { %10339 = vmatpush3.msra.mxu0 %v8805_v10  ;;  %10326 = vmatmul.mubr.msk.f32.vlgmr.msra.gmra.mxu1 %vm305_vm2, %v8792_v11 }
 0x5e2   : >> { %10349 = vmatprep.subr.mxu1 %v10574_v29  ;;  %10340 = vmatprep.mubr.msk.f32.mxu0 %vm10575_vm0, %v10574_v29 }
 0x5e3   : >> { %10350 = vmatpush3.msk.msra.mxu1 %vm1074_vm10, %v8817_v12  ;;  %10341 = vmatmul.mubr.msk.f32.vlgmr.msra.gmra.mxu0 %vm305_vm2, %v8802_v13 }
 0x5e4   : >> { %10364 = vmatprep.subr.mxu0 %v10574_v29  ;;  %10328 = vmatprep.mubr.msk.f32.mxu1 %vm10575_vm0, %v10574_v29 }
 0x5e5   : >> { %10365 = vmatpush3.msk.msra.mxu0 %vm1074_vm10, %v8827_v14  ;;  %10329 = vmatmul.mubr.msk.f32.gmra.mxu1 %vm305_vm2, %v8793_v17 }
 0x5e6   : >> { %10351 = vmatprep.subr.mxu1 %v10574_v29  ;;  %10343 = vmatprep.mubr.msk.f32.mxu0 %vm10575_vm0, %v10574_v29 }
 0x5e7   : >> { %10352 = vmatpush3.msra.mxu1 %v8816_v18  ;;  %10344 = vmatmul.mubr.msk.f32.gmra.mxu0 %vm305_vm2, %v8803_v43 }
 0x5e8   : >> { %10366 = vmatprep.subr.mxu0 %v10574_v29  ;;  %10331 = vmatprep.mubr.msk.f32.mxu1 %vm10575_vm0, %v10574_v29 }
 0x5e9   : >> { %10367 = vmatpush3.msra.mxu0 %v8826_v44  ;;  %10332 = vmatmul.mubr.msk.f32.gmra.mxu1 %vm305_vm2, %v8794_v19 }
 0x5ea   : >> { %10353 = vmatprep.subr.mxu1 %v10574_v29  ;;  %10346 = vmatprep.mubr.msk.f32.mxu0 %vm10575_vm0, %v10574_v29 }
 0x5eb   : >> { %10354 = vmatpush3.msra.mxu1 %v8815_v20  ;;  %10347 = vmatmul.mubr.msk.f32.gmra.mxu0 %vm305_vm2, %v8804_v21 }
 0x5ec   : >> { %10368 = vmatprep.subr.mxu0 %v10574_v29  ;;  %10355 = vmatprep.mubr.msk.f32.mxu1 %vm10575_vm0, %v10574_v29 }
 0x5ed   : >> { %10369 = vmatpush3.msra.mxu0 %v8825_v22  ;;  %10356 = vmatmul.mubr.msk.f32.vlgmr.msra.gmra.mxu1 %vm305_vm2, %v8812_v23 }
 0x5ee   : >> { %10379 = vmatprep.subr.mxu1 %v10574_v29  ;;  %10370 = vmatprep.mubr.msk.f32.mxu0 %vm10575_vm0, %v10574_v29 }
 0x5ef   : >> { %10380 = vmatpush3.msk.msra.mxu1 %vm1074_vm10, %v8837_v24  ;;  %10371 = vmatmul.mubr.msk.f32.vlgmr.msra.gmra.mxu0 %vm305_vm2, %v8822_v25 }
 0x5f0   : >> { %10394 = vmatprep.subr.mxu0 %v10574_v29  ;;  %10358 = vmatprep.mubr.msk.f32.mxu1 %vm10575_vm0, %v10574_v29 }
 0x5f1   : >> { %10395 = vmatpush3.msk.msra.mxu0 %vm1074_vm10, %v8847_v26  ;;  %10359 = vmatmul.mubr.msk.f32.gmra.mxu1 %vm305_vm2, %v8813_v28 }
 0x5f2   : >> { %10381 = vmatprep.subr.mxu1 %v10574_v29  ;;  %10373 = vmatprep.mubr.msk.f32.mxu0 %vm10575_vm0, %v10574_v29 }
 0x5f3   : >> { %10382 = vmatpush3.msra.mxu1 %v8836_v15  ;;  %10374 = vmatmul.mubr.msk.f32.gmra.mxu0 %vm305_vm2, %v8823_v16 }
 0x5f4   : >> { %10396 = vmatprep.subr.mxu0 %v10574_v29  ;;  %10361 = vmatprep.mubr.msk.f32.mxu1 %vm10575_vm0, %v10574_v29 }
 0x5f5   : >> { %10397 = vmatpush3.msra.mxu0 %v8846_v30  ;;  %10362 = vmatmul.mubr.msk.f32.gmra.mxu1 %vm305_vm2, %v8814_v31 }
 0x5f6   : >> { %10383 = vmatprep.subr.mxu1 %v10574_v29  ;;  %10376 = vmatprep.mubr.msk.f32.mxu0 %vm10575_vm0, %v10574_v29 }
 0x5f7   : >> { %10384 = vmatpush3.msra.mxu1 %v8835_v32  ;;  %10377 = vmatmul.mubr.msk.f32.gmra.mxu0 %vm305_vm2, %v8824_v33 }
 0x5f8   : >> { %10398 = vmatprep.subr.mxu0 %v10574_v29  ;;  %10385 = vmatprep.mubr.msk.f32.mxu1 %vm10575_vm0, %v10574_v29 }
 0x5f9   : >> { %10399 = vmatpush3.msra.mxu0 %v8845_v34  ;;  %10386 = vmatmul.mubr.msk.f32.vlgmr.msra.gmra.mxu1 %vm305_vm2, %v8832_v35 }
 0x5fa   : >> { %10409 = vmatprep.subr.mxu1 %v10574_v29  ;;  %10400 = vmatprep.mubr.msk.f32.mxu0 %vm10575_vm0, %v10574_v29 }
 0x5fb   : >> { %10410 = vmatpush3.msk.msra.mxu1 %vm1074_vm10, %v8857_v36  ;;  %10401 = vmatmul.mubr.msk.f32.vlgmr.msra.gmra.mxu0 %vm305_vm2, %v8842_v37 }
 0x5fc   : >> { %10424 = vmatprep.subr.mxu0 %v10574_v29  ;;  %10388 = vmatprep.mubr.msk.f32.mxu1 %vm10575_vm0, %v10574_v29 }
 0x5fd   : >> { %10425 = vmatpush3.msk.msra.mxu0 %vm1074_vm10, %v8867_v38  ;;  %10389 = vmatmul.mubr.msk.f32.gmra.mxu1 %vm305_vm2, %v8833_v39 }
 0x5fe   : >> { %10411 = vmatprep.subr.mxu1 %v10574_v29  ;;  %10403 = vmatprep.mubr.msk.f32.mxu0 %vm10575_vm0, %v10574_v29 }
 0x5ff   : >> { %10412 = vmatpush3.msra.mxu1 %v8856_v40  ;;  %10404 = vmatmul.mubr.msk.f32.gmra.mxu0 %vm305_vm2, %v8843_v41 }
 0x600   : >> { %10426 = vmatprep.subr.mxu0 %v10574_v29  ;;  %10391 = vmatprep.mubr.msk.f32.mxu1 %vm10575_vm0, %v10574_v29 }
 0x601   : >> { %10427 = vmatpush3.msra.mxu0 %v8866_v42  ;;  %10392 = vmatmul.mubr.msk.f32.gmra.mxu1 %vm305_vm2, %v8834_v51 }
 0x602   : >> { %10413 = vmatprep.subr.mxu1 %v10574_v29  ;;  %10406 = vmatprep.mubr.msk.f32.mxu0 %vm10575_vm0, %v10574_v29 }
 0x603   : >> { %10414 = vmatpush3.msra.mxu1 %v8855_v48  ;;  %10407 = vmatmul.mubr.msk.f32.gmra.mxu0 %vm305_vm2, %v8844_v45 }
 0x604   : >> { %10428 = vmatprep.subr.mxu0 %v10574_v29  ;;  %10415 = vmatprep.mubr.msk.f32.mxu1 %vm10575_vm0, %v10574_v29 }
 0x605   : >> { %10429 = vmatpush3.msra.mxu0 %v8865_v46  ;;  %10416 = vmatmul.mubr.msk.f32.vlgmr.msra.gmra.mxu1 %vm305_vm2, %v8852_v47 }
 0x606   : >> { %10430 = vmatprep.mubr.msk.f32.mxu0 %vm10575_vm0, %v10574_v29  ;;  %10418 = vmatprep.mubr.msk.f32.mxu1 %vm10575_vm0, %v10574_v29 }
 0x607   : >> { %10431 = vmatmul.mubr.msk.f32.vlgmr.msra.gmra.mxu0 %vm305_vm2, %v8862_v49 }
 0x608   : >> { %10433 = vmatprep.mubr.msk.f32.mxu0 %vm10575_vm0, %v10574_v29 }
 0x609   : >> { %10419 = vmatmul.mubr.msk.f32.gmra.mxu1 %vm305_vm2, %v8853_v50 }
 0x60a   : >> { %10421 = vmatprep.mubr.msk.f32.mxu1 %vm10575_vm0, %v10574_v29 }
 0x60b   : >> { %10434 = vmatmul.mubr.msk.f32.gmra.mxu0 %vm305_vm2, %v8863_v52 }
 0x60c   : >> { %10436 = vmatprep.mubr.msk.f32.mxu0 %vm10575_vm0, %v10574_v29 }
 0x60d   : >> { %10422 = vmatmul.mubr.msk.f32.gmra.mxu1 %vm305_vm2, %v8854_v53 }
 0x60f   : >> { %10437 = vmatmul.mubr.msk.f32.gmra.mxu0 %vm305_vm2, %v8864_v54 }
 0x639   : >> { %v5529_v55 = vpop.f32.mrf.mxu0  ;;  %v5539_v56 = vpop.f32.mrf.mxu1 }
 0x63b   : >> { %v10072_v57 = vpop.f32.mrf.mxu0  ;;  %v10078_v58 = vpop.f32.mrf.mxu1 }
 0x63e   : >> { %v5534_v59 = vpop.f32.mrf.mxu0 }
 0x640   : >> { %v10075_v60 = vpop.f32.mrf.mxu0 }
 0x641   : >> { %v5621_v61 = vpop.f32.mrf.mxu1 }
 0x642   : >> { %v5622_v62 = vadd.f32 %v5621_v61, %v5529_v55 }
 0x643   : >> { %v10087_v63 = vpop.f32.mrf.mxu1  ;;  %v5720_v0 = vpop.f32.mrf.mxu0 }
 0x644   : >> { %v5734_v1 = vadd.f32 %v5720_v0, %v5622_v62 }
 0x645   : >> { %v5626_v2 = vpop.f32.mrf.mxu1  ;;  %v10102_v3 = vpop.f32.mrf.mxu0 }
 0x646   : >> { %v5627_v4 = vadd.f32 %v5626_v2, %v5534_v59 }
 0x647   : >> { %v10090_v29 = vpop.f32.mrf.mxu1  ;;  %v5725_v5 = vpop.f32.mrf.mxu0 }
 0x648   : >> { %v5735_v6 = vadd.f32 %v5725_v5, %v5627_v4 }
 0x649   : >> { %v5631_v7 = vpop.f32.mrf.mxu1  ;;  %v10105_v8 = vpop.f32.mrf.mxu0 }
 0x64a   : >> { %v5632_v9 = vadd.f32 %v5631_v7, %v5539_v56 }
 0x64b   : >> { %v10093_v10 = vpop.f32.mrf.mxu1  ;;  %v5730_v11 = vpop.f32.mrf.mxu0 }
 0x64c   : >> { %v5736_v12 = vadd.f32 %v5730_v11, %v5632_v9 }
 0x64d   : >> { %v10108_v13 = vpop.f32.mrf.mxu0  ;;  %v5822_v14 = vpop.f32.mrf.mxu1 }
 0x64e   : >> { %v5836_v17 = vadd.f32 %v5822_v14, %v5734_v1 }
 0x64f   : >> { %v10117_v18 = vpop.f32.mrf.mxu1  ;;  %v5924_v43 = vpop.f32.mrf.mxu0 }
 0x650   : >> { %v5938_v44 = vadd.f32 %v5924_v43, %v5836_v17 }
 0x651   : >> { %v5827_v19 = vpop.f32.mrf.mxu1  ;;  %v10132_v20 = vpop.f32.mrf.mxu0 }
 0x652   : >> { %v5837_v21 = vadd.f32 %v5827_v19, %v5735_v6 }
 0x653   : >> { %v10120_v22 = vpop.f32.mrf.mxu1  ;;  %v5929_v23 = vpop.f32.mrf.mxu0 }
 0x654   : >> { %v5939_v24 = vadd.f32 %v5929_v23, %v5837_v21 }
 0x655   : >> { %v5832_v25 = vpop.f32.mrf.mxu1  ;;  %v10135_v26 = vpop.f32.mrf.mxu0 }
 0x656   : >> { %v5838_v28 = vadd.f32 %v5832_v25, %v5736_v12 }
 0x657   : >> { %v10123_v15 = vpop.f32.mrf.mxu1  ;;  %v5934_v16 = vpop.f32.mrf.mxu0 }
 0x658   : >> { %v5940_v30 = vadd.f32 %v5934_v16, %v5838_v28 }
 0x659   : >> { %v10138_v31 = vpop.f32.mrf.mxu0  ;;  %v6029_v32 = vpop.f32.mrf.mxu1 }
 0x65a   : >> { %v6043_v33 = vadd.f32 %v6029_v32, %v5938_v44 }
 0x65b   : >> { %v10147_v34 = vpop.f32.mrf.mxu1  ;;  %v6131_v35 = vpop.f32.mrf.mxu0 }
 0x65c   : >> { %v6145_v36 = vadd.f32 %v6131_v35, %v6043_v33 }
 0x65d   : >> { %v6034_v37 = vpop.f32.mrf.mxu1  ;;  %v10162_v38 = vpop.f32.mrf.mxu0 }
 0x65e   : >> { %v6044_v39 = vadd.f32 %v6034_v37, %v5939_v24 }
 0x65f   : >> { %v10150_v40 = vpop.f32.mrf.mxu1  ;;  %v6136_v41 = vpop.f32.mrf.mxu0 }
 0x660   : >> { %v6146_v42 = vadd.f32 %v6136_v41, %v6044_v39 }
 0x661   : >> { %v6039_v51 = vpop.f32.mrf.mxu1  ;;  %v10165_v48 = vpop.f32.mrf.mxu0 }
 0x662   : >> { %v6045_v45 = vadd.f32 %v6039_v51, %v5940_v30 }
 0x663   : >> { %v10153_v46 = vpop.f32.mrf.mxu1  ;;  %v6141_v47 = vpop.f32.mrf.mxu0 }
 0x664   : >> { %v6147_v49 = vadd.f32 %v6141_v47, %v6045_v45 }
 0x665   : >> { %v10168_v50 = vpop.f32.mrf.mxu0  ;;  %v6233_v52 = vpop.f32.mrf.mxu1 }
 0x666   : >> { %v6247_v53 = vadd.f32 %v6233_v52, %v6145_v36 }
 0x667   : >> { %v10177_v54 = vpop.f32.mrf.mxu1  ;;  %v6335_v55 = vpop.f32.mrf.mxu0 }
 0x668   : >> { %v6349_v56 = vadd.f32 %v6335_v55, %v6247_v53 }
 0x669   : >> { %v6238_v57 = vpop.f32.mrf.mxu1  ;;  %v10192_v58 = vpop.f32.mrf.mxu0 }
 0x66a   : >> { %v6248_v59 = vadd.f32 %v6238_v57, %v6146_v42 }
 0x66b   : >> { %v10180_v60 = vpop.f32.mrf.mxu1  ;;  %v6340_v61 = vpop.f32.mrf.mxu0 }
 0x66c   : >> { %v6350_v62 = vadd.f32 %v6340_v61, %v6248_v59 }
 0x66d   : >> { %v6243_v63 = vpop.f32.mrf.mxu1  ;;  %v10195_v0 = vpop.f32.mrf.mxu0 }
 0x66e   : >> { %v6249_v1 = vadd.f32 %v6243_v63, %v6147_v49 }
 0x66f   : >> { %v10183_v2 = vpop.f32.mrf.mxu1  ;;  %v6345_v3 = vpop.f32.mrf.mxu0 }
 0x670   : >> { %v6351_v4 = vadd.f32 %v6345_v3, %v6249_v1 }
 0x671   : >> { %v10198_v29 = vpop.f32.mrf.mxu0  ;;  %v6437_v5 = vpop.f32.mrf.mxu1 }
 0x672   : >> { %v6451_v49 = vadd.f32 %v6437_v5, %v6349_v56 }
 0x673   : >> { %v10207_v6 = vpop.f32.mrf.mxu1  ;;  %v6542_v7 = vpop.f32.mrf.mxu0 }
 0x674   : >> { %v6556_v55 = vadd.f32 %v6542_v7, %v6451_v49 }
 0x675   : >> { %v6442_v8 = vpop.f32.mrf.mxu1  ;;  %v10222_v9 = vpop.f32.mrf.mxu0 }
 0x676   : >> { %v6452_v57 = vadd.f32 %v6442_v8, %v6350_v62 }
 0x677   : >> { %v10210_v10 = vpop.f32.mrf.mxu1  ;;  %v6547_v11 = vpop.f32.mrf.mxu0 }
 0x678   : >> { %v6557_v0 = vadd.f32 %v6547_v11, %v6452_v57 }
 0x679   : >> { %v6447_v12 = vpop.f32.mrf.mxu1  ;;  %v10225_v13 = vpop.f32.mrf.mxu0 }
 0x67a   : >> { %v6453_v1 = vadd.f32 %v6447_v12, %v6351_v4 }
 0x67b   : >> { %v10213_v14 = vpop.f32.mrf.mxu1  ;;  %v6552_v17 = vpop.f32.mrf.mxu0 }
 0x67c   : >> { %v6558_v56 = vadd.f32 %v6552_v17, %v6453_v1 }
 0x67d   : >> { %v10228_v18 = vpop.f32.mrf.mxu0  ;;  %v6644_v43 = vpop.f32.mrf.mxu1 }
 0x67e   : >> { %v6658_v60 = vadd.f32 %v6644_v43, %v6556_v55 }
 0x67f   : >> { %v10237_v44 = vpop.f32.mrf.mxu1  ;;  %v6746_v19 = vpop.f32.mrf.mxu0 }
 0x680   : >> { %v6760_v29 = vadd.f32 %v6746_v19, %v6658_v60 }
 0x681   : >> { %v6649_v20 = vpop.f32.mrf.mxu1  ;;  %v10252_v21 = vpop.f32.mrf.mxu0 }
 0x682   : >> { %v6659_v6 = vadd.f32 %v6649_v20, %v6557_v0 }
 0x683   : >> { %v10240_v22 = vpop.f32.mrf.mxu1  ;;  %v6751_v23 = vpop.f32.mrf.mxu0 }
 0x684   : >> { %v6761_v18 = vadd.f32 %v6751_v23, %v6659_v6 }
 0x685   : >> { %v6654_v24 = vpop.f32.mrf.mxu1  ;;  %v10255_v25 = vpop.f32.mrf.mxu0 }
 0x686   : >> { %v6660_v7 = vadd.f32 %v6654_v24, %v6558_v56 }
 0x687   : >> { %v10243_v26 = vpop.f32.mrf.mxu1  ;;  %v6756_v28 = vpop.f32.mrf.mxu0 }
 0x688   : >> { %v6762_v11 = vadd.f32 %v6756_v28, %v6660_v7 }
 0x689   : >> { %v10258_v15 = vpop.f32.mrf.mxu0  ;;  %v6848_v16 = vpop.f32.mrf.mxu1 }
 0x68a   : >> { %v6862_v5 = vadd.f32 %v6848_v16, %v6760_v29 }
 0x68b   : >> { %v10267_v30 = vpop.f32.mrf.mxu1  ;;  %v6950_v31 = vpop.f32.mrf.mxu0 }
 0x68c   : >> { %v6964_v44 = vadd.f32 %v6950_v31, %v6862_v5 }
 0x68d   : >> { %v6853_v32 = vpop.f32.mrf.mxu1  ;;  %v10282_v33 = vpop.f32.mrf.mxu0 }
 0x68e   : >> { %v6863_v43 = vadd.f32 %v6853_v32, %v6761_v18 }
 0x68f   : >> { %v10270_v34 = vpop.f32.mrf.mxu1  ;;  %v6955_v35 = vpop.f32.mrf.mxu0 }
 0x690   : >> { %v6965_v19 = vadd.f32 %v6955_v35, %v6863_v43 }
 0x691   : >> { %v6858_v36 = vpop.f32.mrf.mxu1  ;;  %v10285_v37 = vpop.f32.mrf.mxu0 }
 0x692   : >> { %v6864_v20 = vadd.f32 %v6858_v36, %v6762_v11 }
 0x693   : >> { %v10273_v38 = vpop.f32.mrf.mxu1  ;;  %v6960_v39 = vpop.f32.mrf.mxu0 }
 0x694   : >> { %v6966_v23 = vadd.f32 %v6960_v39, %v6864_v20 }
 0x695   : >> { %v10288_v40 = vpop.f32.mrf.mxu0  ;;  %v7055_v41 = vpop.f32.mrf.mxu1 }
 0x696   : >> { %v7069_v4 = vadd.f32 %v7055_v41, %v6964_v44 }
 0x697   : >> { %v10297_v42 = vpop.f32.mrf.mxu1  ;;  %v7157_v51 = vpop.f32.mrf.mxu0 }
 0x698   : >> { %v7171_v17 = vadd.f32 %v7157_v51, %v7069_v4 }
 0x699   : >> { %v7060_v48 = vpop.f32.mrf.mxu1  ;;  %v10312_v45 = vpop.f32.mrf.mxu0 }
 0x69a   : >> { %v7070_v16 = vadd.f32 %v7060_v48, %v6965_v19 }
 0x69b   : >> { %v10300_v46 = vpop.f32.mrf.mxu1  ;;  %v7162_v47 = vpop.f32.mrf.mxu0 }
 0x69c   : >> { %v7172_v31 = vadd.f32 %v7162_v47, %v7070_v16 }
 0x69d   : >> { %v7065_v50 = vpop.f32.mrf.mxu1  ;;  %v10315_v52 = vpop.f32.mrf.mxu0 }
 0x69e   : >> { %v7071_v32 = vadd.f32 %v7065_v50, %v6966_v23 }
 0x69f   : >> { %v10303_v53 = vpop.f32.mrf.mxu1  ;;  %v7167_v54 = vpop.f32.mrf.mxu0 }
 0x6a0   : >> { %v7173_v35 = vadd.f32 %v7167_v54, %v7071_v32 }
 0x6a1   : >> { %v10318_v58 = vpop.f32.mrf.mxu0  ;;  %v7259_v59 = vpop.f32.mrf.mxu1 }
 0x6a2   : >> { %v7273_v24 = vadd.f32 %v7259_v59, %v7171_v17 }
 0x6a3   : >> { %v10327_v61 = vpop.f32.mrf.mxu1  ;;  %v7361_v63 = vpop.f32.mrf.mxu0 }
 0x6a4   : >> { %v7375_v28 = vadd.f32 %v7361_v63, %v7273_v24 }
 0x6a5   : >> { %v7264_v2 = vpop.f32.mrf.mxu1  ;;  %v10342_v3 = vpop.f32.mrf.mxu0 }
 0x6a6   : >> { %v7274_v41 = vadd.f32 %v7264_v2, %v7172_v31 }
 0x6a7   : >> { %v10330_v9 = vpop.f32.mrf.mxu1  ;;  %v7366_v10 = vpop.f32.mrf.mxu0 }
 0x6a8   : >> { %v7376_v51 = vadd.f32 %v7366_v10, %v7274_v41 }
 0x6a9   : >> { %v7269_v13 = vpop.f32.mrf.mxu1  ;;  %v10345_v14 = vpop.f32.mrf.mxu0 }
 0x6aa   : >> { %v7275_v48 = vadd.f32 %v7269_v13, %v7173_v35 }
 0x6ab   : >> { %v10333_v62 = vpop.f32.mrf.mxu1  ;;  %v7371_v8 = vpop.f32.mrf.mxu0 }
 0x6ac   : >> { %v7377_v47 = vadd.f32 %v7371_v8, %v7275_v48 }
 0x6ad   : >> { %v10348_v21 = vpop.f32.mrf.mxu0  ;;  %v7463_v22 = vpop.f32.mrf.mxu1 }
 0x6ae   : >> { %v7477_v36 = vadd.f32 %v7463_v22, %v7375_v28 }
 0x6af   : >> { %v10357_v12 = vpop.f32.mrf.mxu1  ;;  %v7568_v25 = vpop.f32.mrf.mxu0 }
 0x6b0   : >> { %v7582_v39 = vadd.f32 %v7568_v25, %v7477_v36 }
 0x6b1   : >> { %v7468_v26 = vpop.f32.mrf.mxu1  ;;  %v10372_v15 = vpop.f32.mrf.mxu0 }
 0x6b2   : >> { %v7478_v55 = vadd.f32 %v7468_v26, %v7376_v51 }
 0x6b3   : >> { %v10360_v30 = vpop.f32.mrf.mxu1  ;;  %v7573_v33 = vpop.f32.mrf.mxu0 }
 0x6b4   : >> { %v7583_v61 = vadd.f32 %v7573_v33, %v7478_v55 }
 0x6b5   : >> { %v7473_v34 = vpop.f32.mrf.mxu1  ;;  %v10375_v37 = vpop.f32.mrf.mxu0 }
 0x6b6   : >> { %v7479_v63 = vadd.f32 %v7473_v34, %v7377_v47 }
 0x6b7   : >> { %v10363_v38 = vpop.f32.mrf.mxu1  ;;  %v7578_v40 = vpop.f32.mrf.mxu0 }
 0x6b8   : >> { %v7584_v6 = vadd.f32 %v7578_v40, %v7479_v63 }
 0x6b9   : >> { %v10378_v42 = vpop.f32.mrf.mxu0  ;;  %v7670_v45 = vpop.f32.mrf.mxu1 }
 0x6ba   : >> { %v7684_v50 = vadd.f32 %v7670_v45, %v7582_v39 }
 0x6bb   : >> { %v10387_v46 = vpop.f32.mrf.mxu1  ;;  %v7772_v49 = vpop.f32.mrf.mxu0 }
 0x6bc   : >> { %v7786_v54 = vadd.f32 %v7772_v49, %v7684_v50 }
 0x6bd   : >> { %v7675_v52 = vpop.f32.mrf.mxu1  ;;  %v10402_v53 = vpop.f32.mrf.mxu0 }
 0x6be   : >> { %v7685_v2 = vadd.f32 %v7675_v52, %v7583_v61 }
 0x6bf   : >> { %v10390_v57 = vpop.f32.mrf.mxu1  ;;  %v7777_v58 = vpop.f32.mrf.mxu0 }
 0x6c0   : >> { %v7787_v5 = vadd.f32 %v7777_v58, %v7685_v2 }
 0x6c1   : >> { %v7680_v59 = vpop.f32.mrf.mxu1  ;;  %v10405_v60 = vpop.f32.mrf.mxu0 }
 0x6c2   : >> { %v7686_v13 = vadd.f32 %v7680_v59, %v7584_v6 }
 0x6c3   : >> { %v10393_v0 = vpop.f32.mrf.mxu1  ;;  %v7782_v1 = vpop.f32.mrf.mxu0 }
 0x6c4   : >> { %v7788_v21 = vadd.f32 %v7782_v1, %v7686_v13 }
 0x6c5   : >> { %v10408_v3 = vpop.f32.mrf.mxu0  ;;  %v7874_v29 = vpop.f32.mrf.mxu1 }
 0x6c6   : >> { %v7888_v9 = vadd.f32 %v7874_v29, %v7786_v54 }
 0x6c7   : >> { %v10417_v10 = vpop.f32.mrf.mxu1  ;;  %v7976_v56 = vpop.f32.mrf.mxu0 }
 0x6c8   : >> { %v7990_v14 = vadd.f32 %v7976_v56, %v7888_v9 }
 0x6c9   : >> { %v7879_v18 = vpop.f32.mrf.mxu1  ;;  %v10432_v7 = vpop.f32.mrf.mxu0 }
 0x6ca   : >> { %v7999_v62 = vadd.f32 %v12246_v27, %v7990_v14  ;;  %v7889_v8 = vadd.f32 %v7879_v18, %v7787_v5 }
 0x6cb   : >> { %v10420_v44 = vpop.f32.mrf.mxu1  ;;  %v7981_v43 = vpop.f32.mrf.mxu0 }
 0x6cc   : >> { %v8873_v22 = vmul.f32 -1.442695, %v7999_v62  ;;  %v7991_v11 = vadd.f32 %v7981_v43, %v7889_v8 }
 0x6cd   : >> { %v7884_v4 = vpop.f32.mrf.mxu1  ;;  %v10435_v12 = vpop.f32.mrf.mxu0 }
 0x6ce   : >> { %10505 = vpow2.f32 %v8873_v22  ;;  %v8000_v25 = vadd.f32 %v12246_v27, %v7991_v11  ;;  %v7890_v19 = vadd.f32 %v7884_v4, %v7788_v21 }
 0x6cf   : >> { %v10423_v20 = vpop.f32.mrf.mxu1  ;;  %v7986_v26 = vpop.f32.mrf.mxu0 }
 0x6d0   : >> { %v8874_v15 = vmul.f32 -1.442695, %v8000_v25  ;;  %v7992_v17 = vadd.f32 %v7986_v26, %v7890_v19 }
 0x6d1   : >> { %v10438_v16 = vpop.f32.mrf.mxu0 }
 0x6d2   : >> { %10507 = vpow2.f32 %v8874_v15  ;;  %v8001_v30 = vadd.f32 %v12246_v27, %v7992_v17 }
 0x6d4   : >> { %v8875_v33 = vmul.f32 -1.442695, %v8001_v30 }
 0x6d6   : >> { %10509 = vpow2.f32 %v8875_v33 }
 0x6db   : >> { %v10506_v23 = vpop.eup %10505 }
 0x6dc   : >> { %v8011_v24 = vadd.f32 1.0, %v10506_v23 }
 0x6de   : >> { %10511 = vrcp.f32 %v8011_v24 }
 0x6df   : >> { %v10508_v34 = vpop.eup %10507 }
 0x6e0   : >> { %v8012_v37 = vadd.f32 1.0, %v10508_v34 }
 0x6e2   : >> { %10513 = vrcp.f32 %v8012_v37 }
 0x6e3   : >> { %v10510_v31 = vpop.eup %10509 }
 0x6e4   : >> { %v8013_v32 = vadd.f32 1.0, %v10510_v31 }
 0x6e6   : >> { %10515 = vrcp.f32 %v8013_v32 }
 0x6eb   : >> { %v10512_v38 = vpop.eup %10511 }
 0x6ec   : >> { %8022 = vst.msk [vmem:[%s8020_s30] sm:$0xff] %vm8021_vm11, %v10512_v38 }
 0x6ef   : >> { %v10514_v40 = vpop.eup %10513 }
 0x6f0   : >> { %8023 = vst.msk [vmem:[%s8020_s30 + $0x8] sm:$0xff] %vm8021_vm11, %v10514_v40  ;;  %5433 = sbr.rel (!%p5431_p8) target bundleno = 1393 (0x571), region = 257 }
 0x6f3   : >> { %v10516_v28 = vpop.eup %10515 }
 0x6f4   : >> { %8025 = vst.msk [vmem:[%s8020_s30 + $0x10] sm:$0xf] %vm8024_vm14, %v10516_v28 }
 0x6f5 PF: > { %s17_s24 = sadd.s32 1, %s10543_s24  }
 0x6f6   : > { %p14_p9 = scmp.ge.s32.totalorder %s17_s24, 4  }
 0x6f8   :  { %16 = sbr.rel (!%p14_p9) target bundleno = 1 (0x1), region = 268 }

</bundles_post_ra>
